<compile_context>
chip_gen: v7x
topology: tpu7x:2x2x1
jax: 0.10.0
libtpu: 0.0.40
codegen_flags: <defaults>
</compile_context>

<pallas_src>
import functools

import jax
import jax.numpy as jnp
from jax.experimental import pallas as pl
from jax.experimental.pallas import tpu as pltpu


def _traj_mlp_kernel(x_ref, w1_ref, b1_ref, w2_ref, b2_ref, w3_ref, b3_ref,
                     aux_ref, pred_ref, part_ref):
    # ---- fused 3-layer MLP (bf16 matmul operands, f32 accumulation) ----
    x = x_ref[...]                                                    # (tm, token_dim) bf16
    h1 = jnp.dot(x, w1_ref[...], preferred_element_type=jnp.float32) + b1_ref[...]
    h1 = jnp.maximum(h1, 0.0)
    h2 = jnp.dot(h1.astype(jnp.bfloat16), w2_ref[...],
                 preferred_element_type=jnp.float32) + b2_ref[...]
    h2 = jnp.maximum(h2, 0.0)
    pred = jnp.dot(h2.astype(jnp.bfloat16), w3_ref[...],
                   preferred_element_type=jnp.float32) + b3_ref[...]  # (tm, 2) f32
    # TODO(synk): emit pred lane-dense as a (2, N) slab (unmasked full-lane stores) once the
    # in-kernel (tile_m, 2) -> (2, tile_m) transpose is verified to lower on the target
    # Mosaic toolchain; pred is <10% of HBM traffic here, so it is kept row-major for safety.
    pred_ref[...] = pred.astype(pred_ref.dtype)

    # ---- masked squared-error partial sums for this tile ----
    aux = aux_ref[...]                                                # (tm, 4) f32
    gt = aux[:, 0:2]
    valid = aux[:, 2:3]
    err = (pred - gt) ** 2
    per_row = jnp.sum(err, axis=-1, keepdims=True)                    # (tm, 1)
    num = jnp.sum(per_row * valid)                                    # scalar
    den = jnp.sum(valid)                                              # scalar
    lane = jax.lax.broadcasted_iota(jnp.int32, part_ref.shape, 2)
    part_ref[...] = jnp.where(lane == 0, num,
                              jnp.where(lane == 1, den, 0.0)).astype(part_ref.dtype)


@functools.partial(jax.jit, static_argnames=("tile_m",))
def traj_mlp_forward(hand_embedding, shifted_gt_hand, gt_hand_valid, params,
                     tile_m=512):
    """Returns (pred_hand, recon_loss, KLD), matching the PyTorch forward."""
    w1, b1, w2, b2, w3, b3 = params
    N, token_dim = hand_embedding.shape
    hidden_dim = w1.shape[1]
    B = gt_hand_valid.shape[0]
    assert tile_m % 8 == 0, "tile_m must be a multiple of 8"

    num_tiles = pl.cdiv(N, tile_m)
    N_pad = num_tiles * tile_m

    # bf16 matmul operands (accumulation stays f32 inside the kernel).
    x = hand_embedding.astype(jnp.bfloat16)
    w1b = w1.astype(jnp.bfloat16)
    w2b = w2.astype(jnp.bfloat16)
    w3b = w3.astype(jnp.bfloat16)
    b1_2d = b1.reshape(1, hidden_dim).astype(jnp.float32)
    b2_2d = b2.reshape(1, hidden_dim).astype(jnp.float32)
    b3_2d = b3.reshape(1, 2).astype(jnp.float32)

    # Pack gt (cols 0-1) and valid (col 2) into one f32 input -> single DMA per tile.
    valid_flat = gt_hand_valid.reshape(N, 1).astype(jnp.float32)
    aux = jnp.concatenate(
        [shifted_gt_hand.astype(jnp.float32), valid_flat,
         jnp.zeros((N, 1), jnp.float32)], axis=1)                     # (N, 4)

    if N_pad != N:
        # Pad rows carry valid=0 (excluded from loss) and are sliced off pred below.
        x = jnp.pad(x, ((0, N_pad - N), (0, 0)))
        aux = jnp.pad(aux, ((0, N_pad - N), (0, 0)))

    full = lambda i: (0, 0)
    pred_pad, partials = pl.pallas_call(
        _traj_mlp_kernel,
        out_shape=(
            jax.ShapeDtypeStruct((N_pad, 2), jnp.float32),
            jax.ShapeDtypeStruct((num_tiles, 1, 128), jnp.float32),
        ),
        grid_spec=pltpu.PrefetchScalarGridSpec(
            num_scalar_prefetch=0,
            grid=(num_tiles,),
            in_specs=[
                pl.BlockSpec((tile_m, token_dim), lambda i: (i, 0)),   # x
                pl.BlockSpec((token_dim, hidden_dim), full),           # W1
                pl.BlockSpec((1, hidden_dim), full),                   # b1
                pl.BlockSpec((hidden_dim, hidden_dim), full),          # W2
                pl.BlockSpec((1, hidden_dim), full),                   # b2
                pl.BlockSpec((hidden_dim, 2), full),                   # W3
                pl.BlockSpec((1, 2), full),                            # b3
                pl.BlockSpec((tile_m, 4), lambda i: (i, 0)),           # packed gt|valid
            ],
            out_specs=[
                pl.BlockSpec((tile_m, 2), lambda i: (i, 0)),           # pred
                pl.BlockSpec((1, 1, 128), lambda i: (i, 0, 0)),        # per-tile [num, den]
            ],
        ),
        compiler_params=pltpu.CompilerParams(
            dimension_semantics=("parallel",)),                        # megacore-shardable
    )(x, w1b, b1_2d, w2b, b2_2d, w3b, b3_2d, aux)

    pred_hand = pred_pad[:N]
    num = jnp.sum(partials[:, 0, 0])
    den = jnp.sum(partials[:, 0, 1])
    recon = num / (den + 1e-6)
    recon_loss = jnp.full((B,), recon, dtype=jnp.float32)              # torch .repeat(B)
    KLD = jnp.zeros((B,), dtype=jnp.float32)
    return pred_hand, recon_loss, KLD


def init_params(key, token_dim, hidden_dim):
    """Deterministic synthetic params; stored as (in_features, out_features)."""
    k1, k2, k3, k4, k5, k6 = jax.random.split(key, 6)
    s1 = 1.0 / jnp.sqrt(token_dim)
    s2 = 1.0 / jnp.sqrt(hidden_dim)
    w1 = jax.random.uniform(k1, (token_dim, hidden_dim), jnp.float32, -s1, s1)
    b1 = jax.random.uniform(k2, (hidden_dim,), jnp.float32, -s1, s1)
    w2 = jax.random.uniform(k3, (hidden_dim, hidden_dim), jnp.float32, -s2, s2)
    b2 = jax.random.uniform(k4, (hidden_dim,), jnp.float32, -s2, s2)
    w3 = jax.random.uniform(k5, (hidden_dim, 2), jnp.float32, -s2, s2)
    b3 = jax.random.uniform(k6, (2,), jnp.float32, -s2, s2)
    return (w1, b1, w2, b2, w3, b3)


if __name__ == "__main__":
    # Shapes consistent with the module's forward contract; N chosen so the kernel
    # exercises multiple grid tiles AND the tail-padding/masking path (N % tile_m != 0).
    B = 2
    T_pred = 320
    token_dim = 32
    hidden_dim = 32
    N = B * 2 * T_pred  # 1280 rows -> 3 tiles of 512 (padded to 1536)

    key = jax.random.PRNGKey(0)
    kx, kg, kv, kp = jax.random.split(key, 4)

    hand_embedding = jax.random.normal(kx, (N, token_dim), jnp.float32)
    shifted_gt_hand = jax.random.normal(kg, (N, 2), jnp.float32)
    gt_hand_valid = (jax.random.uniform(kv, (B, 2, T_pred)) > 0.3).astype(jnp.float32)
    params = init_params(kp, token_dim, hidden_dim)

    pred_hand, recon_loss, KLD = traj_mlp_forward(
        hand_embedding, shifted_gt_hand, gt_hand_valid, params)
    jax.block_until_ready((pred_hand, recon_loss, KLD))

    # Pure-JAX reference using the same bf16-operand / f32-accumulate recipe.
    w1, b1, w2, b2, w3, b3 = params
    xb = hand_embedding.astype(jnp.bfloat16)
    h = jnp.maximum(jnp.dot(xb, w1.astype(jnp.bfloat16),
                            preferred_element_type=jnp.float32) + b1, 0.0)
    h = jnp.maximum(jnp.dot(h.astype(jnp.bfloat16), w2.astype(jnp.bfloat16),
                            preferred_element_type=jnp.float32) + b2, 0.0)
    pred_ref = jnp.dot(h.astype(jnp.bfloat16), w3.astype(jnp.bfloat16),
                       preferred_element_type=jnp.float32) + b3
    loss_rows = jnp.sum((pred_ref - shifted_gt_hand) ** 2, axis=-1).reshape(B, 2, T_pred)
    loss_ref = jnp.sum(loss_rows * gt_hand_valid) / (jnp.sum(gt_hand_valid) + 1e-6)

    assert pred_hand.shape == (N, 2)
    assert jnp.allclose(pred_hand, pred_ref, atol=2e-3, rtol=2e-3), "pred mismatch"
    assert jnp.allclose(recon_loss, jnp.full((B,), loss_ref),
                        atol=2e-3, rtol=2e-3), "loss mismatch"
    assert jnp.allclose(KLD, jnp.zeros((B,))), "KLD mismatch"

    print("KERNEL_OK")
</pallas_src>

<mosaic_0001>
module attributes {stable_mosaic.version = 11 : i64} {
  func.func @_traj_mlp_kernel(%arg0: i32, %arg1: memref<512x32xbf16, #tpu.memory_space<vmem>>, %arg2: memref<32x32xbf16, #tpu.memory_space<vmem>>, %arg3: memref<1x32xf32, #tpu.memory_space<vmem>>, %arg4: memref<32x32xbf16, #tpu.memory_space<vmem>>, %arg5: memref<1x32xf32, #tpu.memory_space<vmem>>, %arg6: memref<32x2xbf16, #tpu.memory_space<vmem>>, %arg7: memref<1x2xf32, #tpu.memory_space<vmem>>, %arg8: memref<512x4xf32, #tpu.memory_space<vmem>>, %arg9: memref<512x2xf32, #tpu.memory_space<vmem>>, %arg10: memref<1x1x128xf32, #tpu.memory_space<vmem>>) attributes {dimension_semantics = [#tpu.dimension_semantics<parallel>], iteration_bounds = array<i64: 3>, scalar_prefetch = 0 : i64, scratch_operands = 0 : i64, tpu.core_type = #tpu.core_type<tc>, window_params = [{transform_indices = @transform_0, window_bounds = array<i64: 512, 32>}, {pipeline_mode = #tpu.pipeline_mode<synchronous>, transform_indices = @transform_1, window_bounds = array<i64: 32, 32>}, {pipeline_mode = #tpu.pipeline_mode<synchronous>, transform_indices = @transform_2, window_bounds = array<i64: 1, 32>}, {pipeline_mode = #tpu.pipeline_mode<synchronous>, transform_indices = @transform_3, window_bounds = array<i64: 32, 32>}, {pipeline_mode = #tpu.pipeline_mode<synchronous>, transform_indices = @transform_4, window_bounds = array<i64: 1, 32>}, {pipeline_mode = #tpu.pipeline_mode<synchronous>, transform_indices = @transform_5, window_bounds = array<i64: 32, 2>}, {pipeline_mode = #tpu.pipeline_mode<synchronous>, transform_indices = @transform_6, window_bounds = array<i64: 1, 2>}, {transform_indices = @transform_7, window_bounds = array<i64: 512, 4>}, {transform_indices = @transform_8, window_bounds = array<i64: 512, 2>}, {transform_indices = @transform_9, window_bounds = array<i64: 1, 1, 128>}]} {
    %c0 = arith.constant 0 : index
    %c0_0 = arith.constant 0 : index
    %0 = vector.load %arg1[%c0, %c0_0] : memref<512x32xbf16, #tpu.memory_space<vmem>>, vector<512x32xbf16>
    %c0_1 = arith.constant 0 : index
    %c0_2 = arith.constant 0 : index
    %1 = vector.load %arg2[%c0_1, %c0_2] : memref<32x32xbf16, #tpu.memory_space<vmem>>, vector<32x32xbf16>
    %cst = arith.constant dense<0.000000e+00> : vector<512x32xf32>
    %2 = tpu.matmul %0, %1, %cst {dimension_numbers = #tpu.dot_dimension_numbers<[1], [0], [0], [1], [0, 0, 1, 1], [], []>} : vector<512x32xbf16>, vector<32x32xbf16>, vector<512x32xf32> -> vector<512x32xf32>
    %c0_3 = arith.constant 0 : index
    %c0_4 = arith.constant 0 : index
    %3 = vector.load %arg3[%c0_3, %c0_4] : memref<1x32xf32, #tpu.memory_space<vmem>>, vector<1x32xf32>
    %4 = vector.broadcast %3 : vector<1x32xf32> to vector<512x32xf32>
    %5 = arith.addf %2, %4 : vector<512x32xf32>
    %cst_5 = arith.constant 0.000000e+00 : f32
    %6 = vector.broadcast %cst_5 : f32 to vector<512x32xf32>
    %7 = arith.maximumf %5, %6 : vector<512x32xf32>
    %8 = arith.truncf %7 : vector<512x32xf32> to vector<512x32xbf16>
    %c0_6 = arith.constant 0 : index
    %c0_7 = arith.constant 0 : index
    %9 = vector.load %arg4[%c0_6, %c0_7] : memref<32x32xbf16, #tpu.memory_space<vmem>>, vector<32x32xbf16>
    %cst_8 = arith.constant dense<0.000000e+00> : vector<512x32xf32>
    %10 = tpu.matmul %8, %9, %cst_8 {dimension_numbers = #tpu.dot_dimension_numbers<[1], [0], [0], [1], [0, 0, 1, 1], [], []>} : vector<512x32xbf16>, vector<32x32xbf16>, vector<512x32xf32> -> vector<512x32xf32>
    %c0_9 = arith.constant 0 : index
    %c0_10 = arith.constant 0 : index
    %11 = vector.load %arg5[%c0_9, %c0_10] : memref<1x32xf32, #tpu.memory_space<vmem>>, vector<1x32xf32>
    %12 = vector.broadcast %11 : vector<1x32xf32> to vector<512x32xf32>
    %13 = arith.addf %10, %12 : vector<512x32xf32>
    %cst_11 = arith.constant 0.000000e+00 : f32
    %14 = vector.broadcast %cst_11 : f32 to vector<512x32xf32>
    %15 = arith.maximumf %13, %14 : vector<512x32xf32>
    %16 = arith.truncf %15 : vector<512x32xf32> to vector<512x32xbf16>
    %c0_12 = arith.constant 0 : index
    %c0_13 = arith.constant 0 : index
    %17 = vector.load %arg6[%c0_12, %c0_13] : memref<32x2xbf16, #tpu.memory_space<vmem>>, vector<32x2xbf16>
    %cst_14 = arith.constant dense<0.000000e+00> : vector<512x2xf32>
    %18 = tpu.matmul %16, %17, %cst_14 {dimension_numbers = #tpu.dot_dimension_numbers<[1], [0], [0], [1], [0, 0, 1, 1], [], []>} : vector<512x32xbf16>, vector<32x2xbf16>, vector<512x2xf32> -> vector<512x2xf32>
    %c0_15 = arith.constant 0 : index
    %c0_16 = arith.constant 0 : index
    %19 = vector.load %arg7[%c0_15, %c0_16] : memref<1x2xf32, #tpu.memory_space<vmem>>, vector<1x2xf32>
    %20 = vector.broadcast %19 : vector<1x2xf32> to vector<512x2xf32>
    %21 = arith.addf %18, %20 : vector<512x2xf32>
    %c0_17 = arith.constant 0 : index
    %c0_18 = arith.constant 0 : index
    %22 = vector.load %arg9[%c0_17, %c0_18] : memref<512x2xf32, #tpu.memory_space<vmem>>, vector<512x2xf32>
    tpu.vector_store %arg9[%c0_17, %c0_18], %21 {strides = array<i32>} : memref<512x2xf32, #tpu.memory_space<vmem>>, vector<512x2xf32>,
    %c0_19 = arith.constant 0 : index
    %c0_20 = arith.constant 0 : index
    %23 = vector.load %arg8[%c0_19, %c0_20] : memref<512x4xf32, #tpu.memory_space<vmem>>, vector<512x4xf32>
    %24 = vector.extract_strided_slice %23 {offsets = [0, 0], sizes = [512, 2], strides = [1, 1]} : vector<512x4xf32> to vector<512x2xf32>
    %25 = vector.extract_strided_slice %23 {offsets = [0, 2], sizes = [512, 1], strides = [1, 1]} : vector<512x4xf32> to vector<512x1xf32>
    %26 = arith.subf %21, %24 : vector<512x2xf32>
    %27 = arith.mulf %26, %26 : vector<512x2xf32>
    %cst_21 = arith.constant dense<0.000000e+00> : vector<512xf32>
    %28 = vector.multi_reduction <add>, %27, %cst_21 [1] : vector<512x2xf32> to vector<512xf32>
    %29 = vector.shape_cast %28 : vector<512xf32> to vector<512x1xf32>
    %30 = arith.mulf %29, %25 : vector<512x1xf32>
    %31 = vector.shape_cast %30 : vector<512x1xf32> to vector<1x512x1xf32>
    %cst_22 = arith.constant dense<0.000000e+00> : vector<1xf32>
    %32 = vector.multi_reduction <add>, %31, %cst_22 [1, 2] : vector<1x512x1xf32> to vector<1xf32>
    %33 = vector.shape_cast %32 : vector<1xf32> to vector<1x1x1xf32>
    %34 = vector.extract %33[0, 0, 0] : f32 from vector<1x1x1xf32>
    %35 = vector.shape_cast %25 : vector<512x1xf32> to vector<1x512x1xf32>
    %cst_23 = arith.constant dense<0.000000e+00> : vector<1xf32>
    %36 = vector.multi_reduction <add>, %35, %cst_23 [1, 2] : vector<1x512x1xf32> to vector<1xf32>
    %37 = vector.shape_cast %36 : vector<1xf32> to vector<1x1x1xf32>
    %38 = vector.extract %37[0, 0, 0] : f32 from vector<1x1x1xf32>
    %39 = tpu.iota {dimensions = array<i32: 2>} : vector<1x1x128xi32>
    %c0_i32 = arith.constant 0 : i32
    %40 = vector.broadcast %c0_i32 : i32 to vector<1x1x128xi32>
    %41 = arith.cmpi eq, %39, %40 : vector<1x1x128xi32>
    %c1_i32 = arith.constant 1 : i32
    %42 = vector.broadcast %c1_i32 : i32 to vector<1x1x128xi32>
    %43 = arith.cmpi eq, %39, %42 : vector<1x1x128xi32>
    %cst_24 = arith.constant 0.000000e+00 : f32
    %44 = vector.broadcast %38 : f32 to vector<1x1x128xf32>
    %45 = vector.broadcast %cst_24 : f32 to vector<1x1x128xf32>
    %46 = arith.select %43, %44, %45 : vector<1x1x128xi1>, vector<1x1x128xf32>
    %47 = vector.broadcast %34 : f32 to vector<1x1x128xf32>
    %48 = arith.select %41, %47, %46 : vector<1x1x128xi1>, vector<1x1x128xf32>
    %c0_25 = arith.constant 0 : index
    %c0_26 = arith.constant 0 : index
    %c0_27 = arith.constant 0 : index
    %49 = vector.load %arg10[%c0_25, %c0_26, %c0_27] : memref<1x1x128xf32, #tpu.memory_space<vmem>>, vector<1x1x128xf32>
    tpu.vector_store %arg10[%c0_25, %c0_26, %c0_27], %48 {strides = array<i32>} : memref<1x1x128xf32, #tpu.memory_space<vmem>>, vector<1x1x128xf32>,
    return
  }
  func.func @transform_0(%arg0: i32) -> (i32, i32) {
    %c0_i32 = arith.constant 0 : i32
    %c0_i32_0 = arith.constant 0 : i32
    return %arg0, %c0_i32 : i32, i32
  }
  func.func @transform_1(%arg0: i32) -> (i32, i32) {
    %c0_i32 = arith.constant 0 : i32
    %c0_i32_0 = arith.constant 0 : i32
    %c0_i32_1 = arith.constant 0 : i32
    return %c0_i32, %c0_i32_0 : i32, i32
  }
  func.func @transform_2(%arg0: i32) -> (i32, i32) {
    %c0_i32 = arith.constant 0 : i32
    %c0_i32_0 = arith.constant 0 : i32
    %c0_i32_1 = arith.constant 0 : i32
    return %c0_i32, %c0_i32_0 : i32, i32
  }
  func.func @transform_3(%arg0: i32) -> (i32, i32) {
    %c0_i32 = arith.constant 0 : i32
    %c0_i32_0 = arith.constant 0 : i32
    %c0_i32_1 = arith.constant 0 : i32
    return %c0_i32, %c0_i32_0 : i32, i32
  }
  func.func @transform_4(%arg0: i32) -> (i32, i32) {
    %c0_i32 = arith.constant 0 : i32
    %c0_i32_0 = arith.constant 0 : i32
    %c0_i32_1 = arith.constant 0 : i32
    return %c0_i32, %c0_i32_0 : i32, i32
  }
  func.func @transform_5(%arg0: i32) -> (i32, i32) {
    %c0_i32 = arith.constant 0 : i32
    %c0_i32_0 = arith.constant 0 : i32
    %c0_i32_1 = arith.constant 0 : i32
    return %c0_i32, %c0_i32_0 : i32, i32
  }
  func.func @transform_6(%arg0: i32) -> (i32, i32) {
    %c0_i32 = arith.constant 0 : i32
    %c0_i32_0 = arith.constant 0 : i32
    %c0_i32_1 = arith.constant 0 : i32
    return %c0_i32, %c0_i32_0 : i32, i32
  }
  func.func @transform_7(%arg0: i32) -> (i32, i32) {
    %c0_i32 = arith.constant 0 : i32
    %c0_i32_0 = arith.constant 0 : i32
    return %arg0, %c0_i32 : i32, i32
  }
  func.func @transform_8(%arg0: i32) -> (i32, i32) {
    %c0_i32 = arith.constant 0 : i32
    %c0_i32_0 = arith.constant 0 : i32
    return %arg0, %c0_i32 : i32, i32
  }
  func.func @transform_9(%arg0: i32) -> (i32, i32, i32) {
    %c0_i32 = arith.constant 0 : i32
    %c0_i32_0 = arith.constant 0 : i32
    %c0_i32_1 = arith.constant 0 : i32
    return %arg0, %c0_i32, %c0_i32_0 : i32, i32, i32
  }
}

</mosaic_0001>

<bundles_post_ra>
// kernel: traj_mlp_forward.1
= control target key start
LH: loop header
LB: loop body
LE: loop exit
PB: predicated region body
PF: predicated region fallthrough
CT: control target
= control target key end

     0   :  { %s4024_s30 = smov 0   ;;  %s5539_s0 = inlined_call_operand.vmem [shape: bf16[1536,32], index: 0, kind: input, shape index: {}]   ;;  %s5540_s1 = inlined_call_operand.vmem [shape: bf16[32,32], index: 1, kind: input, shape index: {}]   ;;  %s5541_s2 = inlined_call_operand.vmem [shape: f32[1,32], index: 2, kind: input, shape index: {}]   ;;  %s5542_s3 = inlined_call_operand.vmem [shape: bf16[32,32], index: 3, kind: input, shape index: {}]   ;;  %s5543_s4 = inlined_call_operand.vmem [shape: f32[1,32], index: 4, kind: input, shape index: {}]   ;;  %s5544_s5 = inlined_call_operand.vmem [shape: bf16[32,2], index: 5, kind: input, shape index: {}]   ;;  %s5545_s6 = inlined_call_operand.vmem [shape: f32[1,2], index: 6, kind: input, shape index: {}]   ;;  %s5546_s7 = inlined_call_operand.vmem [shape: f32[1536,4], index: 7, kind: input, shape index: {}]   ;;  %s5547_s8 = inlined_call_operand.vmem [shape: f32[1536,2], index: 8, kind: output, shape index: {0}]   ;;  %s5548_s9 = inlined_call_operand.vmem [shape: f32[3,1,128], index: 9, kind: output, shape index: {1}]  }
   0x1 LB: > { %s4030_s10 = sadd.s32 4294967295, %s3971_s30   ;;  %p3413_p0 = scmp.ge.s32.totalorder %s3971_s30, 1  ;;  %s3971_s30 = sphi %s4024_s30, %s20_s30  }
   0x2   : > { %p302_p1 = scmp.lt.s32.totalorder %s3971_s30, 4 }
   0x4   : > { %p303_p2 = pnand %p3413_p0, %p302_p1 }
   0x6   : > { %306 = sbr.rel (%p303_p2) target bundleno = 1354 (0x54a), region = 52 }
   0xd   : > { %v3882_v0 = vld [vmem:[%s5540_s1] sm:$0xff]   ;;  %s3414_s13 = sshll.u32 %s4030_s10, 6  ;;  %v3883_v1 = vld [vmem:[%s5540_s1 + $0x8] sm:$0xff]   ;;  %vm615_vm0 = vcmask 261120   ;;  %s3973_s16 = smov 126   ;;  %vm2009_vm1 = vcmask 15360  }
   0xe   : > { %p347_p3 = scmp.lt.s32.totalorder %s3414_s13, 191  ;;  %3661 = vmatprep.subr.bf16.mxu0 %v3882_v0  ;;  %3865 = vmatprep.subr.bf16.mxu1 %v3882_v0  ;;  %v3916_v2 = vld [vmem:[%s5542_s3] sm:$0xff]   ;;  %v3917_v11 = vld [vmem:[%s5542_s3 + $0x8] sm:$0xff]   ;;  %vm2778_vm2 = vcmask 7168   ;;  %p364_p4 = scmp.lt.s32.totalorder %s4030_s10, 2 }
   0xf   : > { %3662 = vmatpush3.bf16.msra.mxu0 %v3882_v0  ;;  %3867 = vmatpush3.bf16.msra.mxu1 %v3882_v0  ;;  %v4122_v36 = vld [vmem:[%s5541_s2] ss:$0 sm:$0xff]  ;;  %v3919_v45 = vld [vmem:[%s5544_s5 + $0x8] sm:$0xff]  }
  0x10   : > { %s5634_s13 = smov (!%p347_p3, %s3414_s13), 191  ;;  %3663 = vmatprep.subr.bf16.mxu0 %v3883_v1  ;;  %3866 = vmatprep.subr.bf16.mxu1 %v3883_v1  ;;  %v3918_v44 = vld [vmem:[%s5544_s5] sm:$0xff]   ;;  %s5636_s10 = smov (!%p364_p4, %s4030_s10), 2 }
  0x11   : > { %s3415_s18 = sshll.u32 %s5634_s13, 2  ;;  %s3417_s11 = sshll.u32 %s5634_s13, 3 }
  0x12   : > { %s4050_s21 = scalar_lea.vmem %s5539_s0, %s3415_s18  ;;  %s4259_s15 = scalar_lea.vmem %s5546_s7, %s3417_s11 }
  0x13   : > { %3664 = vmatpush3.bf16.msra.mxu0 %v3883_v1  ;;  %v3884_v3 = vld [vmem:[%s4050_s21] sm:$0xff]   ;;  %3868 = vmatpush3.bf16.msra.mxu1 %v3883_v1  ;;  %v3885_v4 = vld [vmem:[%s4050_s21 + $0x8] sm:$0xff]   ;;  %v3886_v5 = vld [vmem:[%s4050_s21 + $0x10] sm:$0xff]   ;;  %s4572_s23 = scalar_lea.vmem %s5547_s8, %s3417_s11  ;;  %s366_s27 = scalar_lea.vmem %s5548_s9, %s5636_s10 }
  0x14   : > { %3729 = vmatprep.subr.bf16.mxu1 %v3916_v2  ;;  %3665 = vmatprep.mubr.msk.bf16.mxu0 %vm615_vm0, %v3884_v3  ;;  %v3887_v6 = vld [vmem:[%s4050_s21 + $0x18] sm:$0xff]   ;;  %v3888_v7 = vld [vmem:[%s4050_s21 + $0x20] sm:$0xff]   ;;  %v3889_v8 = vld [vmem:[%s4050_s21 + $0x28] sm:$0xff]  }
  0x15   : > { %v3890_v9 = vld [vmem:[%s4050_s21 + $0x30] sm:$0xff]   ;;  %v3900_v10 = vld [vmem:[%s4050_s21 + $0x80] sm:$0xff]   ;;  %v3901_v12 = vld [vmem:[%s4050_s21 + $0x88] sm:$0xff]   ;;  %3797 = vmatprep.subr.bf16.mxu0 %v3918_v44 }
  0x16   : > { %3666 = vmatmul.mubr.msk.bf16.vlgmr.msra.gmra.mrb[0].mxu0 %vm615_vm0, %v3885_v4  ;;  %3697 = vmatprep.mubr.msk.bf16.mxu1 %vm615_vm0, %v3900_v10  ;;  %v3902_v13 = vld [vmem:[%s4050_s21 + $0x90] sm:$0xff]   ;;  %v3891_v14 = vld [vmem:[%s4050_s21 + $0x38] sm:$0xff]   ;;  %v3892_v15 = vld [vmem:[%s4050_s21 + $0x40] sm:$0xff]  }
  0x17   : > { %3669 = vmatprep.mubr.msk.bf16.mxu0 %vm615_vm0, %v3886_v5  ;;  %3698 = vmatmul.mubr.msk.bf16.vlgmr.msra.gmra.mrb[0].mxu1 %vm615_vm0, %v3901_v12  ;;  %v3903_v16 = vld [vmem:[%s4050_s21 + $0x98] sm:$0xff]   ;;  %v3904_v17 = vld [vmem:[%s4050_s21 + $0xa0] sm:$0xff]   ;;  %v3893_v18 = vld [vmem:[%s4050_s21 + $0x48] sm:$0xff]  }
  0x18   : > { %3701 = vmatprep.mubr.msk.bf16.mxu1 %vm615_vm0, %v3902_v13  ;;  %3730 = vmatpush3.bf16.msra.mxu1 %v3916_v2  ;;  %v3905_v19 = vld [vmem:[%s4050_s21 + $0xa8] sm:$0xff]   ;;  %v3894_v20 = vld [vmem:[%s4050_s21 + $0x50] sm:$0xff]   ;;  %v3895_v22 = vld [vmem:[%s4050_s21 + $0x58] sm:$0xff]  }
  0x19   : > { %3731 = vmatprep.subr.bf16.mxu1 %v3917_v11  ;;  %v3906_v21 = vld [vmem:[%s4050_s21 + $0xb0] sm:$0xff]   ;;  %v3907_v23 = vld [vmem:[%s4050_s21 + $0xb8] sm:$0xff]   ;;  %v3896_v24 = vld [vmem:[%s4050_s21 + $0x60] sm:$0xff]   ;;  %3798 = vmatpush3.bf16.msra.mxu0 %v3918_v44 }
  0x1a   : > { %v3908_v25 = vld [vmem:[%s4050_s21 + $0xc0] sm:$0xff]   ;;  %v3897_v26 = vld [vmem:[%s4050_s21 + $0x68] sm:$0xff]   ;;  %v3898_v28 = vld [vmem:[%s4050_s21 + $0x70] sm:$0xff]   ;;  %3799 = vmatprep.subr.bf16.mxu0 %v3919_v45 }
  0x1b   : > { %v3909_v27 = vld [vmem:[%s4050_s21 + $0xc8] sm:$0xff]   ;;  %v3910_v29 = vld [vmem:[%s4050_s21 + $0xd0] sm:$0xff]   ;;  %v3899_v30 = vld [vmem:[%s4050_s21 + $0x78] sm:$0xff]  }
  0x1c   : > { %3732 = vmatpush3.bf16.msra.mxu1 %v3917_v11  ;;  %v3911_v31 = vld [vmem:[%s4050_s21 + $0xd8] sm:$0xff]   ;;  %v3912_v32 = vld [vmem:[%s4050_s21 + $0xe0] sm:$0xff]   ;;  %v3913_v33 = vld [vmem:[%s4050_s21 + $0xe8] sm:$0xff]  }
  0x1d   : > { %v3914_v34 = vld [vmem:[%s4050_s21 + $0xf0] sm:$0xff]   ;;  %v3915_v35 = vld [vmem:[%s4050_s21 + $0xf8] sm:$0xff]   ;;  %3800 = vmatpush3.bf16.msra.mxu0 %v3919_v45 }
  0x1e   : > { %3670 = vmatmul.mubr.msk.bf16.gmra.mrb[4].mxu0 %vm615_vm0, %v3887_v6 }
  0x1f   : > { %3673 = vmatprep.mubr.msk.bf16.mxu0 %vm615_vm0, %v3888_v7  ;;  %3702 = vmatmul.mubr.msk.bf16.gmra.mrb[4].mxu1 %vm615_vm0, %v3903_v16 }
  0x20   : > { %3705 = vmatprep.mubr.msk.bf16.mxu1 %vm615_vm0, %v3904_v17 }
  0x26   : > { %3674 = vmatmul.mubr.msk.bf16.gmra.mrb[8].mxu0 %vm615_vm0, %v3889_v8 }
  0x27   : > { %3677 = vmatprep.mubr.msk.bf16.mxu0 %vm615_vm0, %v3890_v9  ;;  %3706 = vmatmul.mubr.msk.bf16.gmra.mrb[8].mxu1 %vm615_vm0, %v3905_v19 }
  0x28   : > { %3709 = vmatprep.mubr.msk.bf16.mxu1 %vm615_vm0, %v3906_v21 }
  0x2e   : > { %3678 = vmatmul.mubr.msk.bf16.gmra.mrb[12].mxu0 %vm615_vm0, %v3891_v14 }
  0x2f   : > { %3681 = vmatprep.mubr.msk.bf16.mxu0 %vm615_vm0, %v3892_v15  ;;  %3710 = vmatmul.mubr.msk.bf16.gmra.mrb[12].mxu1 %vm615_vm0, %v3907_v23 }
  0x30   : > { %3713 = vmatprep.mubr.msk.bf16.mxu1 %vm615_vm0, %v3908_v25 }
  0x36   : > { %3682 = vmatmul.mubr.msk.bf16.gmra.mrb[16].mxu0 %vm615_vm0, %v3893_v18 }
  0x37   : > { %3685 = vmatprep.mubr.msk.bf16.mxu0 %vm615_vm0, %v3894_v20  ;;  %3714 = vmatmul.mubr.msk.bf16.gmra.mrb[16].mxu1 %vm615_vm0, %v3909_v27 }
  0x38   : > { %3717 = vmatprep.mubr.msk.bf16.mxu1 %vm615_vm0, %v3910_v29 }
  0x3e   : > { %3686 = vmatmul.mubr.msk.bf16.gmra.mrb[20].mxu0 %vm615_vm0, %v3895_v22 }
  0x3f   : > { %3689 = vmatprep.mubr.msk.bf16.mxu0 %vm615_vm0, %v3896_v24  ;;  %3718 = vmatmul.mubr.msk.bf16.gmra.mrb[20].mxu1 %vm615_vm0, %v3911_v31 }
  0x40   : > { %3721 = vmatprep.mubr.msk.bf16.mxu1 %vm615_vm0, %v3912_v32 }
  0x46   : > { %3690 = vmatmul.mubr.msk.bf16.gmra.mrb[24].mxu0 %vm615_vm0, %v3897_v26 }
  0x47   : > { %3693 = vmatprep.mubr.msk.bf16.mxu0 %vm615_vm0, %v3898_v28  ;;  %3722 = vmatmul.mubr.msk.bf16.gmra.mrb[24].mxu1 %vm615_vm0, %v3913_v33 }
  0x48   : > { %3725 = vmatprep.mubr.msk.bf16.mxu1 %vm615_vm0, %v3914_v34 }
  0x4e   : > { %3694 = vmatmul.mubr.msk.bf16.gmra.mrb[28].mxu0 %vm615_vm0, %v3899_v30 }
  0x4f   : > { %3726 = vmatmul.mubr.msk.bf16.gmra.mrb[28].mxu1 %vm615_vm0, %v3915_v35 }
  0xe9   : > { %v3667_v37 = vpop.f32.mrb[0].mxu0 }
  0xea   : > { %v755_v38 = vadd.f32 %v3667_v37, %v4122_v36  ;;  %v746_v39 = vpop.f32.mrb[1].mxu0  ;;  %v3699_v4 = vpop.f32.mrb[0].mxu1 }
  0xeb   : > { %v747_v40 = vadd.f32 %v4122_v36, %v746_v39  ;;  %v3668_v41 = vpop.f32.mrb[2].mxu0  ;;  %v883_v7 = vadd.f32 %v3699_v4, %v4122_v36  ;;  %v874_v8 = vpop.f32.mrb[1].mxu1 }
  0xec   : > { %v758_v42 = vadd.f32 %v3668_v41, %v4122_v36  ;;  %v749_v43 = vpop.f32.mrb[3].mxu0  ;;  %v1003_v47 = vmax.f32 %v755_v38, 0.0  ;;  %v875_v11 = vadd.f32 %v4122_v36, %v874_v8  ;;  %v3700_v12 = vpop.f32.mrb[2].mxu1 }
  0xed   : > { %v750_v46 = vadd.f32 %v4122_v36, %v749_v43  ;;  %v1001_v49 = vmax.f32 %v747_v40, 0.0  ;;  %v1035_v15 = vmax.f32 %v883_v7, 0.0  ;;  %v886_v16 = vadd.f32 %v3700_v12, %v4122_v36  ;;  %v877_v17 = vpop.f32.mrb[3].mxu1 }
  0xee   : > { %v1004_v48 = vmax.f32 %v758_v42, 0.0  ;;  %v1033_v19 = vmax.f32 %v875_v11, 0.0  ;;  %v878_v20 = vadd.f32 %v4122_v36, %v877_v17 }
  0xef   : > { %v1002_v50 = vmax.f32 %v750_v46, 0.0  ;;  %v1036_v23 = vmax.f32 %v886_v16, 0.0 }
  0xf0   : > { %v1066_v51 = vpack.c.bf16 %v1004_v48, %v1003_v47  ;;  %v1034_v26 = vmax.f32 %v878_v20, 0.0 }
  0xf1   : > { %v1065_v52 = vpack.c.bf16 %v1002_v50, %v1001_v49  ;;  %v3671_v53 = vpop.f32.mrb[4].mxu0  ;;  %v4150_v28 = vpack.c.bf16 %v1036_v23, %v1035_v15 }
  0xf2   : > { %v771_v54 = vadd.f32 %v3671_v53, %v4122_v36  ;;  %v762_v55 = vpop.f32.mrb[5].mxu0  ;;  %v4152_v31 = vpack.c.bf16 %v1034_v26, %v1033_v19  ;;  %v3703_v32 = vpop.f32.mrb[4].mxu1 }
  0xf3   : > { %v763_v56 = vadd.f32 %v4122_v36, %v762_v55  ;;  %v3672_v57 = vpop.f32.mrb[6].mxu0  ;;  %3733 = vmatprep.mubr.msk.bf16.mxu1 %vm615_vm0, %v1065_v52  ;;  %v899_v35 = vadd.f32 %v3703_v32, %v4122_v36  ;;  %v890_v37 = vpop.f32.mrb[5].mxu1 }
  0xf4   : > { %v774_v58 = vadd.f32 %v3672_v57, %v4122_v36  ;;  %v765_v59 = vpop.f32.mrb[7].mxu0  ;;  %3734 = vmatmul.mubr.msk.bf16.vlgmr.msra.gmra.mrb[32].mxu1 %vm615_vm0, %v1066_v51  ;;  %v1007_v61 = vmax.f32 %v771_v54, 0.0  ;;  %v891_v40 = vadd.f32 %v4122_v36, %v890_v37  ;;  %v3704_v41 = vpop.f32.mrb[6].mxu1 }
  0xf5   : > { %v766_v60 = vadd.f32 %v4122_v36, %v765_v59  ;;  %v1005_v63 = vmax.f32 %v763_v56, 0.0  ;;  %v1039_v44 = vmax.f32 %v899_v35, 0.0  ;;  %v902_v45 = vadd.f32 %v3704_v41, %v4122_v36  ;;  %v893_v46 = vpop.f32.mrb[7].mxu1 }
  0xf6   : > { %v1008_v62 = vmax.f32 %v774_v58, 0.0  ;;  %v1037_v48 = vmax.f32 %v891_v40, 0.0  ;;  %v894_v49 = vadd.f32 %v4122_v36, %v893_v46 }
  0xf7   : > { %v1006_v0 = vmax.f32 %v766_v60, 0.0  ;;  %v1040_v52 = vmax.f32 %v902_v45, 0.0 }
  0xf8   : > { %v1068_v1 = vpack.c.bf16 %v1008_v62, %v1007_v61  ;;  %v1038_v55 = vmax.f32 %v894_v49, 0.0 }
  0xf9   : > { %v1067_v2 = vpack.c.bf16 %v1006_v0, %v1005_v63  ;;  %v3675_v3 = vpop.f32.mrb[8].mxu0  ;;  %v4164_v57 = vpack.c.bf16 %v1040_v52, %v1039_v44 }
  0xfa   : > { %v787_v5 = vadd.f32 %v3675_v3, %v4122_v36  ;;  %v778_v6 = vpop.f32.mrb[9].mxu0  ;;  %v4166_v60 = vpack.c.bf16 %v1038_v55, %v1037_v48  ;;  %v3707_v61 = vpop.f32.mrb[8].mxu1 }
  0xfb   : > { %v779_v9 = vadd.f32 %v4122_v36, %v778_v6  ;;  %v3676_v10 = vpop.f32.mrb[10].mxu0  ;;  %3737 = vmatprep.mubr.msk.bf16.mxu1 %vm615_vm0, %v1067_v2  ;;  %v915_v0 = vadd.f32 %v3707_v61, %v4122_v36 }
  0xfc   : > { %v790_v13 = vadd.f32 %v3676_v10, %v4122_v36  ;;  %v781_v14 = vpop.f32.mrb[11].mxu0  ;;  %3738 = vmatmul.mubr.msk.bf16.gmra.mrb[36].mxu1 %vm615_vm0, %v1068_v1  ;;  %v1011_v21 = vmax.f32 %v787_v5, 0.0  ;;  %v906_v1 = vpop.f32.mrb[9].mxu1 }
  0xfd   : > { %v782_v18 = vadd.f32 %v4122_v36, %v781_v14  ;;  %v1009_v24 = vmax.f32 %v779_v9, 0.0  ;;  %v907_v4 = vadd.f32 %v4122_v36, %v906_v1  ;;  %v3708_v5 = vpop.f32.mrb[10].mxu1  ;;  %v1043_v8 = vmax.f32 %v915_v0, 0.0 }
  0xfe   : > { %v1012_v22 = vmax.f32 %v790_v13, 0.0  ;;  %v918_v9 = vadd.f32 %v3708_v5, %v4122_v36  ;;  %v909_v10 = vpop.f32.mrb[11].mxu1 }
  0xff   : > { %v1010_v25 = vmax.f32 %v782_v18, 0.0  ;;  %v1041_v12 = vmax.f32 %v907_v4, 0.0  ;;  %v910_v13 = vadd.f32 %v4122_v36, %v909_v10 }
 0x100   : > { %v1070_v27 = vpack.c.bf16 %v1012_v22, %v1011_v21  ;;  %v1044_v16 = vmax.f32 %v918_v9, 0.0 }
 0x101   : > { %v1069_v29 = vpack.c.bf16 %v1010_v25, %v1009_v24  ;;  %v3679_v30 = vpop.f32.mrb[12].mxu0  ;;  %v1042_v19 = vmax.f32 %v910_v13, 0.0 }
 0x102   : > { %v803_v33 = vadd.f32 %v3679_v30, %v4122_v36  ;;  %v794_v34 = vpop.f32.mrb[13].mxu0  ;;  %v4178_v21 = vpack.c.bf16 %v1044_v16, %v1043_v8  ;;  %v3711_v25 = vpop.f32.mrb[12].mxu1 }
 0x103   : > { %v795_v38 = vadd.f32 %v4122_v36, %v794_v34  ;;  %v3680_v39 = vpop.f32.mrb[14].mxu0  ;;  %3741 = vmatprep.mubr.msk.bf16.mxu1 %vm615_vm0, %v1069_v29  ;;  %v4180_v24 = vpack.c.bf16 %v1042_v19, %v1041_v12  ;;  %v931_v29 = vadd.f32 %v3711_v25, %v4122_v36  ;;  %v922_v30 = vpop.f32.mrb[13].mxu1 }
 0x104   : > { %v806_v42 = vadd.f32 %v3680_v39, %v4122_v36  ;;  %v797_v43 = vpop.f32.mrb[15].mxu0  ;;  %3742 = vmatmul.mubr.msk.bf16.gmra.mrb[40].mxu1 %vm615_vm0, %v1070_v27  ;;  %v1015_v50 = vmax.f32 %v803_v33, 0.0  ;;  %v923_v34 = vadd.f32 %v4122_v36, %v922_v30  ;;  %v3712_v35 = vpop.f32.mrb[14].mxu1 }
 0x105   : > { %v798_v47 = vadd.f32 %v4122_v36, %v797_v43  ;;  %v1013_v53 = vmax.f32 %v795_v38, 0.0  ;;  %v1047_v39 = vmax.f32 %v931_v29, 0.0  ;;  %v934_v40 = vadd.f32 %v3712_v35, %v4122_v36  ;;  %v925_v41 = vpop.f32.mrb[15].mxu1 }
 0x106   : > { %v1016_v51 = vmax.f32 %v806_v42, 0.0  ;;  %v1045_v43 = vmax.f32 %v923_v34, 0.0  ;;  %v926_v44 = vadd.f32 %v4122_v36, %v925_v41 }
 0x107   : > { %v1014_v54 = vmax.f32 %v798_v47, 0.0  ;;  %v1048_v47 = vmax.f32 %v934_v40, 0.0 }
 0x108   : > { %v1072_v56 = vpack.c.bf16 %v1016_v51, %v1015_v50  ;;  %v1046_v50 = vmax.f32 %v926_v44, 0.0 }
 0x109   : > { %v1071_v58 = vpack.c.bf16 %v1014_v54, %v1013_v53  ;;  %v3683_v59 = vpop.f32.mrb[16].mxu0  ;;  %v4192_v52 = vpack.c.bf16 %v1048_v47, %v1047_v39 }
 0x10a   : > { %v819_v62 = vadd.f32 %v3683_v59, %v4122_v36  ;;  %v810_v63 = vpop.f32.mrb[17].mxu0  ;;  %v4194_v55 = vpack.c.bf16 %v1046_v50, %v1045_v43 }
 0x10b   : > { %v811_v2 = vadd.f32 %v4122_v36, %v810_v63  ;;  %v3684_v3 = vpop.f32.mrb[18].mxu0  ;;  %3745 = vmatprep.mubr.msk.bf16.mxu1 %vm615_vm0, %v1071_v58 }
 0x10c   : > { %v822_v6 = vadd.f32 %v3684_v3, %v4122_v36  ;;  %v813_v7 = vpop.f32.mrb[19].mxu0  ;;  %3746 = vmatmul.mubr.msk.bf16.gmra.mrb[44].mxu1 %vm615_vm0, %v1072_v56  ;;  %v1019_v14 = vmax.f32 %v819_v62, 0.0  ;;  %v3715_v56 = vpop.f32.mrb[16].mxu1 }
 0x10d   : > { %v814_v11 = vadd.f32 %v4122_v36, %v813_v7  ;;  %v1017_v17 = vmax.f32 %v811_v2, 0.0  ;;  %v947_v61 = vadd.f32 %v3715_v56, %v4122_v36  ;;  %v938_v62 = vpop.f32.mrb[17].mxu1 }
 0x10e   : > { %v1020_v15 = vmax.f32 %v822_v6, 0.0  ;;  %v939_v1 = vadd.f32 %v4122_v36, %v938_v62  ;;  %v3716_v2 = vpop.f32.mrb[18].mxu1 }
 0x10f   : > { %v1018_v18 = vmax.f32 %v814_v11, 0.0  ;;  %v1051_v6 = vmax.f32 %v947_v61, 0.0  ;;  %v950_v7 = vadd.f32 %v3716_v2, %v4122_v36  ;;  %v941_v8 = vpop.f32.mrb[19].mxu1 }
 0x110   : > { %v1074_v20 = vpack.c.bf16 %v1020_v15, %v1019_v14  ;;  %v1049_v11 = vmax.f32 %v939_v1, 0.0  ;;  %v942_v12 = vadd.f32 %v4122_v36, %v941_v8 }
 0x111   : > { %v1073_v22 = vpack.c.bf16 %v1018_v18, %v1017_v17  ;;  %v3687_v23 = vpop.f32.mrb[20].mxu0  ;;  %v1052_v14 = vmax.f32 %v950_v7, 0.0 }
 0x112   : > { %v835_v26 = vadd.f32 %v3687_v23, %v4122_v36  ;;  %v826_v27 = vpop.f32.mrb[21].mxu0  ;;  %v1050_v16 = vmax.f32 %v942_v12, 0.0  ;;  %v3719_v23 = vpop.f32.mrb[20].mxu1 }
 0x113   : > { %v827_v32 = vadd.f32 %v4122_v36, %v826_v27  ;;  %v3688_v33 = vpop.f32.mrb[22].mxu0  ;;  %3749 = vmatprep.mubr.msk.bf16.mxu1 %vm615_vm0, %v1073_v22  ;;  %v4206_v18 = vpack.c.bf16 %v1052_v14, %v1051_v6  ;;  %v963_v27 = vadd.f32 %v3719_v23, %v4122_v36  ;;  %v954_v29 = vpop.f32.mrb[21].mxu1 }
 0x114   : > { %v838_v37 = vadd.f32 %v3688_v33, %v4122_v36  ;;  %v829_v38 = vpop.f32.mrb[23].mxu0  ;;  %3750 = vmatmul.mubr.msk.bf16.gmra.mrb[48].mxu1 %vm615_vm0, %v1074_v20  ;;  %v1023_v45 = vmax.f32 %v835_v26, 0.0  ;;  %v4208_v22 = vpack.c.bf16 %v1050_v16, %v1049_v11  ;;  %v955_v33 = vadd.f32 %v4122_v36, %v954_v29  ;;  %v3720_v34 = vpop.f32.mrb[22].mxu1  ;;  %v4330_v29 = vld [vmem:[%s4259_s15 + $0x68] sm:$0xff] }
 0x115   : > { %v830_v42 = vadd.f32 %v4122_v36, %v829_v38  ;;  %v1021_v48 = vmax.f32 %v827_v32, 0.0  ;;  %v1055_v39 = vmax.f32 %v963_v27, 0.0  ;;  %v966_v40 = vadd.f32 %v3720_v34, %v4122_v36  ;;  %v957_v41 = vpop.f32.mrb[23].mxu1  ;;  %v4325_v27 = vld [vmem:[%s4259_s15 + $0x60] sm:$0xff]  ;;  %v4350_v34 = vld [vmem:[%s4259_s15 + $0x88] sm:$0xff] }
 0x116   : > { %v1024_v46 = vmax.f32 %v838_v37, 0.0  ;;  %v1053_v44 = vmax.f32 %v955_v33, 0.0  ;;  %v4345_v33 = vld [vmem:[%s4259_s15 + $0x80] sm:$0xff] }
 0x117   : > { %v1022_v49 = vmax.f32 %v830_v42, 0.0  ;;  %v1056_v47 = vmax.f32 %v966_v40, 0.0  ;;  %v4375_v40 = vld [vmem:[%s4259_s15 + $0xc8] sm:$0xff] }
 0x118   : > { %v1076_v51 = vpack.c.bf16 %v1024_v46, %v1023_v45  ;;  %v958_v45 = vadd.f32 %v4122_v36, %v957_v41  ;;  %v4378_v41 = vld [vmem:[%s4259_s15 + $0xa8] sm:$0xff] }
 0x119   : > { %v1075_v53 = vpack.c.bf16 %v1022_v49, %v1021_v48  ;;  %v3691_v54 = vpop.f32.mrb[24].mxu0 }
 0x11a   : > { %v851_v58 = vadd.f32 %v3691_v54, %v4122_v36  ;;  %v842_v59 = vpop.f32.mrb[25].mxu0  ;;  %v1054_v49 = vmax.f32 %v958_v45, 0.0  ;;  %v3723_v56 = vpop.f32.mrb[24].mxu1  ;;  %v4393_v45 = vld [vmem:[%s4259_s15 + $0xc0] sm:$0xff] }
 0x11b   : > { %v843_v63 = vadd.f32 %v4122_v36, %v842_v59  ;;  %v3692_v0 = vpop.f32.mrb[26].mxu0  ;;  %3753 = vmatprep.mubr.msk.bf16.mxu1 %vm615_vm0, %v1075_v53  ;;  %v970_v59 = vpop.f32.mrb[25].mxu1 }
 0x11c   : > { %v1027_v3 = vmax.f32 %v851_v58, 0.0  ;;  %v854_v4 = vadd.f32 %v3692_v0, %v4122_v36  ;;  %v845_v5 = vpop.f32.mrb[27].mxu0  ;;  %3754 = vmatmul.mubr.msk.bf16.gmra.mrb[52].mxu1 %vm615_vm0, %v1076_v51  ;;  %v1092_v51 = vpack.c.bf16 %v1056_v47, %v1055_v39  ;;  %v1091_v54 = vpack.c.bf16 %v1054_v49, %v1053_v44  ;;  %v3724_v62 = vpop.f32.mrb[26].mxu1  ;;  %v4368_v39 = vld [vmem:[%s4259_s15 + $0xa0] sm:$0xff]  ;;  %v4400_v47 = vld [vmem:[%s4259_s15 + $0xd0] sm:$0xff] }
 0x11d   : > { %v1025_v9 = vmax.f32 %v843_v63, 0.0  ;;  %v846_v10 = vadd.f32 %v4122_v36, %v845_v5  ;;  %v979_v58 = vadd.f32 %v3723_v56, %v4122_v36  ;;  %v971_v61 = vadd.f32 %v4122_v36, %v970_v59  ;;  %v973_v1 = vpop.f32.mrb[27].mxu1  ;;  %v2106_v44 = vld [vmem:[%s4259_s15 + $0x100] sm:$0xff] }
 0x11e   : > { %v1028_v13 = vmax.f32 %v854_v4, 0.0  ;;  %v982_v0 = vadd.f32 %v3724_v62, %v4122_v36  ;;  %v2109_v62 = vld [vmem:[%s4259_s15 + $0x118] sm:$0xff] }
 0x11f   : > { %v1026_v15 = vmax.f32 %v846_v10, 0.0  ;;  %v1059_v63 = vmax.f32 %v979_v58, 0.0  ;;  %v1057_v2 = vmax.f32 %v971_v61, 0.0 }
 0x120   : > { %v1078_v17 = vpack.c.bf16 %v1028_v13, %v1027_v3  ;;  %v974_v3 = vadd.f32 %v4122_v36, %v973_v1  ;;  %v1060_v4 = vmax.f32 %v982_v0, 0.0 }
 0x121   : > { %v1077_v19 = vpack.c.bf16 %v1026_v15, %v1025_v9  ;;  %v3695_v20 = vpop.f32.mrb[28].mxu0 }
 0x122   : > { %v867_v25 = vadd.f32 %v3695_v20, %v4122_v36  ;;  %v858_v26 = vpop.f32.mrb[29].mxu0  ;;  %v1058_v5 = vmax.f32 %v974_v3, 0.0  ;;  %v1094_v6 = vpack.c.bf16 %v1060_v4, %v1059_v63  ;;  %v3727_v8 = vpop.f32.mrb[28].mxu1  ;;  %v4422_v63 = vld [vmem:[%s4259_s15 + $0xe0] sm:$0xff] }
 0x123   : > { %v859_v30 = vadd.f32 %v4122_v36, %v858_v26  ;;  %v3696_v32 = vpop.f32.mrb[30].mxu0  ;;  %3757 = vmatprep.mubr.msk.bf16.mxu1 %vm615_vm0, %v1077_v19  ;;  %v995_v9 = vadd.f32 %v3727_v8, %v4122_v36  ;;  %v986_v10 = vpop.f32.mrb[29].mxu1  ;;  %v4320_v26 = vld [vmem:[%s4259_s15 + $0x58] sm:$0xff] }
 0x124   : > { %v1031_v35 = vmax.f32 %v867_v25, 0.0  ;;  %v870_v37 = vadd.f32 %v3696_v32, %v4122_v36  ;;  %v861_v38 = vpop.f32.mrb[31].mxu0  ;;  %3758 = vmatmul.mubr.msk.bf16.gmra.mrb[56].mxu1 %vm615_vm0, %v1078_v17  ;;  %v1093_v7 = vpack.c.bf16 %v1058_v5, %v1057_v2  ;;  %v987_v11 = vadd.f32 %v4122_v36, %v986_v10  ;;  %v3728_v12 = vpop.f32.mrb[30].mxu1  ;;  %v4315_v25 = vld [vmem:[%s4259_s15 + $0x50] sm:$0xff]  ;;  %v4340_v32 = vld [vmem:[%s4259_s15 + $0x78] sm:$0xff] }
 0x125   : > { %v1029_v42 = vmax.f32 %v859_v30, 0.0  ;;  %v862_v43 = vadd.f32 %v4122_v36, %v861_v38  ;;  %v1063_v13 = vmax.f32 %v995_v9, 0.0  ;;  %v989_v14 = vpop.f32.mrb[31].mxu1  ;;  %v4335_v30 = vld [vmem:[%s4259_s15 + $0x70] sm:$0xff]  ;;  %v4430_v9 = vld [vmem:[%s4259_s15 + $0xe8] sm:$0xff] }
 0x126   : > { %v1032_v46 = vmax.f32 %v870_v37, 0.0  ;;  %v1061_v15 = vmax.f32 %v987_v11, 0.0  ;;  %v990_v16 = vadd.f32 %v4122_v36, %v989_v14  ;;  %v4360_v37 = vld [vmem:[%s4259_s15 + $0x98] sm:$0xff]  ;;  %v4365_v38 = vld [vmem:[%s4259_s15 + $0xb0] sm:$0xff] }
 0x127   : > { %v1030_v48 = vmax.f32 %v862_v43, 0.0  ;;  %3023 = vrot.lane.b32.xlu0 %v4365_v38, %s3973_s16  ;;  %v4386_v43 = vld [vmem:[%s4259_s15 + $0xb8] sm:$0xff] }
 0x128   : > { %v1080_v50 = vpack.c.bf16 %v1032_v46, %v1031_v35  ;;  %v1062_v19 = vmax.f32 %v990_v16, 0.0  ;;  %v4355_v35 = vld [vmem:[%s4259_s15 + $0x90] sm:$0xff]  ;;  %v2107_v46 = vld [vmem:[%s4259_s15 + $0x108] sm:$0xff] }
 0x129   : > { %v1079_v53 = vpack.c.bf16 %v1030_v48, %v1029_v42  ;;  %v2105_v42 = vld [vmem:[%s4259_s15 + $0xf8] sm:$0xff]  ;;  %v4405_v48 = vld [vmem:[%s5543_s4] ss:$0 sm:$0xff] }
 0x12a   : > { %v1095_v23 = vpack.c.bf16 %v1062_v19, %v1061_v15  ;;  %v2111_v15 = vld [vmem:[%s4259_s15 + $0x128] sm:$0xff] }
 0x12b   : > { %3761 = vmatprep.mubr.msk.bf16.mxu1 %vm615_vm0, %v1079_v53  ;;  %3029 = vrot.lane.b32.xlu0 %v4375_v40, %s3973_s16 }
 0x12c   : > { %3762 = vmatmul.mubr.msk.bf16.gmra.mrb[60].mxu1 %vm615_vm0, %v1080_v50  ;;  %v2108_v50 = vld [vmem:[%s4259_s15 + $0x110] sm:$0xff] }
 0x12d   : > { %3765 = vmatprep.mubr.msk.bf16.mxu1 %vm615_vm0, %v4152_v31  ;;  %v998_v31 = vadd.f32 %v3728_v12, %v4122_v36  ;;  %v4263_v36 = vld [vmem:[%s4259_s15] sm:$0xff] }
 0x12e   : > { %2979 = vrot.lane.b32.xlu1 %v4263_v36, %s3973_s16 }
 0x12f   : > { %v1064_v17 = vmax.f32 %v998_v31, 0.0  ;;  %3041 = vrot.lane.b32.xlu0 %v2105_v42, %s3973_s16 }
 0x131   : > { %v1096_v20 = vpack.c.bf16 %v1064_v17, %v1063_v13  ;;  %v4443_v17 = vld [vmem:[%s4259_s15 + $0xf0] sm:$0xff] }
 0x133   : > { %3043 = vrot.lane.b32.xlu0 %v2106_v44, %s3973_s16 }
 0x134   : > { %3766 = vmatmul.mubr.msk.bf16.gmra.mrb[64].mxu1 %vm615_vm0, %v4150_v28  ;;  %v4269_v28 = vld [vmem:[%s4259_s15 + $0x8] sm:$0xff] }
 0x135   : > { %3769 = vmatprep.mubr.msk.bf16.mxu1 %vm615_vm0, %v4166_v60  ;;  %2981 = vrot.lane.b32.xlu1 %v4269_v28, %s3973_s16  ;;  %v4280_v60 = vld [vmem:[%s4259_s15 + $0x18] sm:$0xff] }
 0x137   : > { %3045 = vrot.lane.b32.xlu0 %v2107_v46, %s3973_s16  ;;  %v2112_v46 = vld [vmem:[%s4259_s15 + $0x130] sm:$0xff] }
 0x13b   : > { %3047 = vrot.lane.b32.xlu0 %v2108_v50, %s3973_s16 }
 0x13c   : > { %3770 = vmatmul.mubr.msk.bf16.gmra.mrb[68].mxu1 %vm615_vm0, %v4164_v57  ;;  %v4275_v57 = vld [vmem:[%s4259_s15 + $0x10] sm:$0xff] }
 0x13d   : > { %3773 = vmatprep.mubr.msk.bf16.mxu1 %vm615_vm0, %v4180_v24  ;;  %2983 = vrot.lane.b32.xlu1 %v4275_v57, %s3973_s16  ;;  %v4290_v24 = vld [vmem:[%s4259_s15 + $0x28] sm:$0xff] }
 0x13f   : > { %3049 = vrot.lane.b32.xlu0 %v2109_v62, %s3973_s16  ;;  %v2113_v62 = vld [vmem:[%s4259_s15 + $0x138] sm:$0xff] }
 0x141   : > { %2985 = vrot.lane.b32.xlu1 %v4280_v60, %s3973_s16 }
 0x144   : > { %3774 = vmatmul.mubr.msk.bf16.gmra.mrb[72].mxu1 %vm615_vm0, %v4178_v21  ;;  %v4285_v21 = vld [vmem:[%s4259_s15 + $0x20] sm:$0xff] }
 0x145   : > { %3777 = vmatprep.mubr.msk.bf16.mxu1 %vm615_vm0, %v4194_v55  ;;  %2987 = vrot.lane.b32.xlu1 %v4285_v21, %s3973_s16  ;;  %v4300_v55 = vld [vmem:[%s4259_s15 + $0x38] sm:$0xff] }
 0x149   : > { %2989 = vrot.lane.b32.xlu1 %v4290_v24, %s3973_s16 }
 0x14c   : > { %3778 = vmatmul.mubr.msk.bf16.gmra.mrb[76].mxu1 %vm615_vm0, %v4192_v52  ;;  %v4295_v52 = vld [vmem:[%s4259_s15 + $0x30] sm:$0xff] }
 0x14d   : > { %3781 = vmatprep.mubr.msk.bf16.mxu1 %vm615_vm0, %v4208_v22  ;;  %2991 = vrot.lane.b32.xlu1 %v4295_v52, %s3973_s16  ;;  %v4310_v22 = vld [vmem:[%s4259_s15 + $0x48] sm:$0xff] }
 0x151   : > { %2993 = vrot.lane.b32.xlu1 %v4300_v55, %s3973_s16 }
 0x154   : > { %3782 = vmatmul.mubr.msk.bf16.gmra.mrb[80].mxu1 %vm615_vm0, %v4206_v18  ;;  %v4305_v18 = vld [vmem:[%s4259_s15 + $0x40] sm:$0xff] }
 0x155   : > { %3785 = vmatprep.mubr.msk.bf16.mxu1 %vm615_vm0, %v1091_v54  ;;  %2995 = vrot.lane.b32.xlu1 %v4305_v18, %s3973_s16 }
 0x159   : > { %2997 = vrot.lane.b32.xlu1 %v4310_v22, %s3973_s16 }
 0x15c   : > { %3786 = vmatmul.mubr.msk.bf16.gmra.mrb[84].mxu1 %vm615_vm0, %v1092_v51  ;;  %v4412_v51 = vld [vmem:[%s4259_s15 + $0xd8] sm:$0xff] }
 0x15d   : > { %3789 = vmatprep.mubr.msk.bf16.mxu1 %vm615_vm0, %v1093_v7  ;;  %2999 = vrot.lane.b32.xlu1 %v4315_v25, %s3973_s16 }
 0x161   : > { %3001 = vrot.lane.b32.xlu1 %v4320_v26, %s3973_s16 }
 0x164   : > { %3790 = vmatmul.mubr.msk.bf16.gmra.mrb[88].mxu1 %vm615_vm0, %v1094_v6  ;;  %v2110_v6 = vld [vmem:[%s4259_s15 + $0x120] sm:$0xff] }
 0x165   : > { %3793 = vmatprep.mubr.msk.bf16.mxu1 %vm615_vm0, %v1095_v23  ;;  %3003 = vrot.lane.b32.xlu1 %v4325_v27, %s3973_s16 }
 0x166   : > { %3051 = vrot.lane.b32.xlu0 %v2110_v6, %s3973_s16  ;;  %v2114_v6 = vld [vmem:[%s4259_s15 + $0x140] sm:$0xff] }
 0x169   : > { %3005 = vrot.lane.b32.xlu1 %v4330_v29, %s3973_s16 }
 0x16a   : > { %3053 = vrot.lane.b32.xlu0 %v2111_v15, %s3973_s16  ;;  %v2115_v15 = vld [vmem:[%s4259_s15 + $0x148] sm:$0xff] }
 0x16c   : > { %3794 = vmatmul.mubr.msk.bf16.gmra.mrb[92].mxu1 %vm615_vm0, %v1096_v20 }
 0x16d   : > { %3007 = vrot.lane.b32.xlu1 %v4335_v30, %s3973_s16 }
 0x16e   : > { %3055 = vrot.lane.b32.xlu0 %v2112_v46, %s3973_s16  ;;  %v4469_v46 = vld [vmem:[%s4259_s15 + $0x150] sm:$0xff] }
 0x171   : > { %3009 = vrot.lane.b32.xlu1 %v4340_v32, %s3973_s16 }
 0x172   : > { %3057 = vrot.lane.b32.xlu0 %v2113_v62, %s3973_s16  ;;  %v4479_v62 = vld [vmem:[%s4259_s15 + $0x158] sm:$0xff] }
 0x175   : > { %3011 = vrot.lane.b32.xlu1 %v4345_v33, %s3973_s16 }
 0x176   : > { %3059 = vrot.lane.b32.xlu0 %v2114_v6, %s3973_s16  ;;  %v2118_v6 = vld [vmem:[%s4259_s15 + $0x160] sm:$0xff] }
 0x179   : > { %3013 = vrot.lane.b32.xlu1 %v4350_v34, %s3973_s16 }
 0x17a   : > { %3061 = vrot.lane.b32.xlu0 %v2115_v15, %s3973_s16 }
 0x17d   : > { %3015 = vrot.lane.b32.xlu1 %v4355_v35, %s3973_s16 }
 0x17e   : > { %3063 = vrot.lane.b32.xlu0 %v4469_v46, %s3973_s16 }
 0x181   : > { %3017 = vrot.lane.b32.xlu1 %v4360_v37, %s3973_s16 }
 0x182   : > { %3065 = vrot.lane.b32.xlu0 %v4479_v62, %s3973_s16 }
 0x185   : > { %3019 = vrot.lane.b32.xlu1 %v4368_v39, %s3973_s16 }
 0x186   : > { %3067 = vrot.lane.b32.xlu0 %v2118_v6, %s3973_s16 }
 0x189   : > { %3021 = vrot.lane.b32.xlu1 %v4378_v41, %s3973_s16 }
 0x18d   : > { %3025 = vrot.lane.b32.xlu1 %v4386_v43, %s3973_s16 }
 0x191   : > { %3027 = vrot.lane.b32.xlu1 %v4393_v45, %s3973_s16 }
 0x195   : > { %3031 = vrot.lane.b32.xlu1 %v4400_v47, %s3973_s16 }
 0x199   : > { %3033 = vrot.lane.b32.xlu1 %v4412_v51, %s3973_s16 }
 0x19d   : > { %3035 = vrot.lane.b32.xlu1 %v4422_v63, %s3973_s16 }
 0x1a1   : > { %3037 = vrot.lane.b32.xlu1 %v4430_v9, %s3973_s16 }
 0x1a5   : > { %3039 = vrot.lane.b32.xlu1 %v4443_v17, %s3973_s16 }
 0x1c7   : > { %v3735_v49 = vpop.f32.mrb[32].mxu1 }
 0x1c8   : > { %v1259_v53 = vadd.f32 %v3735_v49, %v4405_v48  ;;  %v1250_v54 = vpop.f32.mrb[33].mxu1 }
 0x1c9   : > { %v1251_v56 = vadd.f32 %v4405_v48, %v1250_v54  ;;  %v3736_v58 = vpop.f32.mrb[34].mxu1 }
 0x1ca   : > { %v1262_v59 = vadd.f32 %v3736_v58, %v4405_v48  ;;  %v1253_v61 = vpop.f32.mrb[35].mxu1  ;;  %v1507_v1 = vmax.f32 %v1259_v53, 0.0 }
 0x1cb   : > { %v1254_v0 = vadd.f32 %v4405_v48, %v1253_v61  ;;  %v1505_v3 = vmax.f32 %v1251_v56, 0.0 }
 0x1cc   : > { %v1508_v2 = vmax.f32 %v1262_v59, 0.0 }
 0x1cd   : > { %v1506_v4 = vmax.f32 %v1254_v0, 0.0 }
 0x1ce   : > { %v1570_v5 = vpack.c.bf16 %v1508_v2, %v1507_v1 }
 0x1cf   : > { %v1569_v7 = vpack.c.bf16 %v1506_v4, %v1505_v3  ;;  %v3739_v8 = vpop.f32.mrb[36].mxu1 }
 0x1d0   : > { %v1275_v10 = vadd.f32 %v3739_v8, %v4405_v48  ;;  %v1266_v11 = vpop.f32.mrb[37].mxu1 }
 0x1d1   : > { %v1267_v12 = vadd.f32 %v4405_v48, %v1266_v11  ;;  %v3740_v13 = vpop.f32.mrb[38].mxu1  ;;  %3801 = vmatprep.mubr.msk.bf16.mxu0 %vm615_vm0, %v1569_v7 }
 0x1d2   : > { %v1278_v31 = vadd.f32 %v3740_v13, %v4405_v48  ;;  %v1269_v14 = vpop.f32.mrb[39].mxu1  ;;  %3802 = vmatmul.mubr.msk.bf16.vlgmr.msra.gmra.mrb[32].mxu0 %vm615_vm0, %v1570_v5  ;;  %v1511_v19 = vmax.f32 %v1275_v10, 0.0 }
 0x1d3   : > { %v1270_v16 = vadd.f32 %v4405_v48, %v1269_v14  ;;  %v1509_v23 = vmax.f32 %v1267_v12, 0.0 }
 0x1d4   : > { %v1512_v20 = vmax.f32 %v1278_v31, 0.0 }
 0x1d5   : > { %v1510_v42 = vmax.f32 %v1270_v16, 0.0 }
 0x1d6   : > { %v1572_v44 = vpack.c.bf16 %v1512_v20, %v1511_v19 }
 0x1d7   : > { %v1571_v49 = vpack.c.bf16 %v1510_v42, %v1509_v23  ;;  %v3743_v50 = vpop.f32.mrb[40].mxu1 }
 0x1d8   : > { %v1291_v53 = vadd.f32 %v3743_v50, %v4405_v48  ;;  %v1282_v54 = vpop.f32.mrb[41].mxu1 }
 0x1d9   : > { %v1283_v56 = vadd.f32 %v4405_v48, %v1282_v54  ;;  %v3744_v58 = vpop.f32.mrb[42].mxu1  ;;  %3805 = vmatprep.mubr.msk.bf16.mxu0 %vm615_vm0, %v1571_v49 }
 0x1da   : > { %v1294_v59 = vadd.f32 %v3744_v58, %v4405_v48  ;;  %v1285_v61 = vpop.f32.mrb[43].mxu1  ;;  %3806 = vmatmul.mubr.msk.bf16.gmra.mrb[36].mxu0 %vm615_vm0, %v1572_v44  ;;  %v1515_v1 = vmax.f32 %v1291_v53, 0.0 }
 0x1db   : > { %v1286_v0 = vadd.f32 %v4405_v48, %v1285_v61  ;;  %v1513_v3 = vmax.f32 %v1283_v56, 0.0 }
 0x1dc   : > { %v1516_v2 = vmax.f32 %v1294_v59, 0.0 }
 0x1dd   : > { %v1514_v4 = vmax.f32 %v1286_v0, 0.0 }
 0x1de   : > { %v1574_v5 = vpack.c.bf16 %v1516_v2, %v1515_v1 }
 0x1df   : > { %v1573_v7 = vpack.c.bf16 %v1514_v4, %v1513_v3  ;;  %v3747_v8 = vpop.f32.mrb[44].mxu1 }
 0x1e0   : > { %v1307_v10 = vadd.f32 %v3747_v8, %v4405_v48  ;;  %v1298_v11 = vpop.f32.mrb[45].mxu1 }
 0x1e1   : > { %v1299_v12 = vadd.f32 %v4405_v48, %v1298_v11  ;;  %v3748_v13 = vpop.f32.mrb[46].mxu1  ;;  %3809 = vmatprep.mubr.msk.bf16.mxu0 %vm615_vm0, %v1573_v7 }
 0x1e2   : > { %v1310_v31 = vadd.f32 %v3748_v13, %v4405_v48  ;;  %v1301_v14 = vpop.f32.mrb[47].mxu1  ;;  %3810 = vmatmul.mubr.msk.bf16.gmra.mrb[40].mxu0 %vm615_vm0, %v1574_v5  ;;  %v1519_v19 = vmax.f32 %v1307_v10, 0.0 }
 0x1e3   : > { %v1302_v16 = vadd.f32 %v4405_v48, %v1301_v14  ;;  %v1517_v23 = vmax.f32 %v1299_v12, 0.0 }
 0x1e4   : > { %v1520_v20 = vmax.f32 %v1310_v31, 0.0 }
 0x1e5   : > { %v1518_v42 = vmax.f32 %v1302_v16, 0.0 }
 0x1e6   : > { %v1576_v44 = vpack.c.bf16 %v1520_v20, %v1519_v19 }
 0x1e7   : > { %v1575_v49 = vpack.c.bf16 %v1518_v42, %v1517_v23  ;;  %v3751_v50 = vpop.f32.mrb[48].mxu1 }
 0x1e8   : > { %v1323_v53 = vadd.f32 %v3751_v50, %v4405_v48  ;;  %v1314_v54 = vpop.f32.mrb[49].mxu1 }
 0x1e9   : > { %v1315_v56 = vadd.f32 %v4405_v48, %v1314_v54  ;;  %v3752_v58 = vpop.f32.mrb[50].mxu1  ;;  %3813 = vmatprep.mubr.msk.bf16.mxu0 %vm615_vm0, %v1575_v49 }
 0x1ea   : > { %v1326_v59 = vadd.f32 %v3752_v58, %v4405_v48  ;;  %v1317_v61 = vpop.f32.mrb[51].mxu1  ;;  %3814 = vmatmul.mubr.msk.bf16.gmra.mrb[44].mxu0 %vm615_vm0, %v1576_v44  ;;  %v1523_v1 = vmax.f32 %v1323_v53, 0.0 }
 0x1eb   : > { %v1318_v0 = vadd.f32 %v4405_v48, %v1317_v61  ;;  %v1521_v3 = vmax.f32 %v1315_v56, 0.0 }
 0x1ec   : > { %v1524_v2 = vmax.f32 %v1326_v59, 0.0 }
 0x1ed   : > { %v1522_v4 = vmax.f32 %v1318_v0, 0.0 }
 0x1ee   : > { %v1578_v5 = vpack.c.bf16 %v1524_v2, %v1523_v1 }
 0x1ef   : > { %v1577_v7 = vpack.c.bf16 %v1522_v4, %v1521_v3  ;;  %v3755_v8 = vpop.f32.mrb[52].mxu1 }
 0x1f0   : > { %v1339_v10 = vadd.f32 %v3755_v8, %v4405_v48  ;;  %v1330_v11 = vpop.f32.mrb[53].mxu1 }
 0x1f1   : > { %v1331_v12 = vadd.f32 %v4405_v48, %v1330_v11  ;;  %v3756_v13 = vpop.f32.mrb[54].mxu1  ;;  %3817 = vmatprep.mubr.msk.bf16.mxu0 %vm615_vm0, %v1577_v7 }
 0x1f2   : > { %v1342_v31 = vadd.f32 %v3756_v13, %v4405_v48  ;;  %v1333_v14 = vpop.f32.mrb[55].mxu1  ;;  %3818 = vmatmul.mubr.msk.bf16.gmra.mrb[48].mxu0 %vm615_vm0, %v1578_v5  ;;  %v1527_v16 = vmax.f32 %v1339_v10, 0.0 }
 0x1f3   : > { %v1334_v15 = vadd.f32 %v4405_v48, %v1333_v14  ;;  %v1525_v20 = vmax.f32 %v1331_v12, 0.0 }
 0x1f4   : > { %v1528_v19 = vmax.f32 %v1342_v31, 0.0 }
 0x1f5   : > { %v1526_v23 = vmax.f32 %v1334_v15, 0.0 }
 0x1f6   : > { %v1580_v42 = vpack.c.bf16 %v1528_v19, %v1527_v16 }
 0x1f7   : > { %v1579_v44 = vpack.c.bf16 %v1526_v23, %v1525_v20  ;;  %v3759_v49 = vpop.f32.mrb[56].mxu1 }
 0x1f8   : > { %v1355_v50 = vadd.f32 %v3759_v49, %v4405_v48  ;;  %v1346_v53 = vpop.f32.mrb[57].mxu1 }
 0x1f9   : > { %v1347_v54 = vadd.f32 %v4405_v48, %v1346_v53  ;;  %v3760_v56 = vpop.f32.mrb[58].mxu1  ;;  %3821 = vmatprep.mubr.msk.bf16.mxu0 %vm615_vm0, %v1579_v44 }
 0x1fa   : > { %v1358_v58 = vadd.f32 %v3760_v56, %v4405_v48  ;;  %v1349_v59 = vpop.f32.mrb[59].mxu1  ;;  %3822 = vmatmul.mubr.msk.bf16.gmra.mrb[52].mxu0 %vm615_vm0, %v1580_v42  ;;  %v1531_v0 = vmax.f32 %v1355_v50, 0.0 }
 0x1fb   : > { %v1350_v61 = vadd.f32 %v4405_v48, %v1349_v59  ;;  %v1529_v2 = vmax.f32 %v1347_v54, 0.0 }
 0x1fc   : > { %v1532_v1 = vmax.f32 %v1358_v58, 0.0 }
 0x1fd   : > { %v1530_v3 = vmax.f32 %v1350_v61, 0.0 }
 0x1fe   : > { %v1582_v4 = vpack.c.bf16 %v1532_v1, %v1531_v0 }
 0x1ff   : > { %v1581_v5 = vpack.c.bf16 %v1530_v3, %v1529_v2  ;;  %v3763_v6 = vpop.f32.mrb[60].mxu1 }
 0x200   : > { %v1371_v7 = vadd.f32 %v3763_v6, %v4405_v48  ;;  %v1362_v8 = vpop.f32.mrb[61].mxu1 }
 0x201   : > { %v1363_v10 = vadd.f32 %v4405_v48, %v1362_v8  ;;  %v3764_v11 = vpop.f32.mrb[62].mxu1  ;;  %3825 = vmatprep.mubr.msk.bf16.mxu0 %vm615_vm0, %v1581_v5 }
 0x202   : > { %v1535_v12 = vmax.f32 %v1371_v7, 0.0  ;;  %v1374_v13 = vadd.f32 %v3764_v11, %v4405_v48  ;;  %v1365_v31 = vpop.f32.mrb[63].mxu1  ;;  %3826 = vmatmul.mubr.msk.bf16.gmra.mrb[56].mxu0 %vm615_vm0, %v1582_v4 }
 0x203   : > { %v1533_v14 = vmax.f32 %v1363_v10, 0.0  ;;  %v1366_v15 = vadd.f32 %v4405_v48, %v1365_v31 }
 0x204   : > { %v1536_v16 = vmax.f32 %v1374_v13, 0.0 }
 0x205   : > { %v1534_v19 = vmax.f32 %v1366_v15, 0.0 }
 0x206   : > { %v1584_v20 = vpack.c.bf16 %v1536_v16, %v1535_v12 }
 0x207   : > { %v1583_v23 = vpack.c.bf16 %v1534_v19, %v1533_v14  ;;  %v3767_v42 = vpop.f32.mrb[64].mxu1 }
 0x208   : > { %v1387_v44 = vadd.f32 %v3767_v42, %v4405_v48  ;;  %v1378_v49 = vpop.f32.mrb[65].mxu1 }
 0x209   : > { %v1379_v50 = vadd.f32 %v4405_v48, %v1378_v49  ;;  %v3768_v53 = vpop.f32.mrb[66].mxu1  ;;  %3829 = vmatprep.mubr.msk.bf16.mxu0 %vm615_vm0, %v1583_v23 }
 0x20a   : > { %v1539_v54 = vmax.f32 %v1387_v44, 0.0  ;;  %v1390_v56 = vadd.f32 %v3768_v53, %v4405_v48  ;;  %v1381_v58 = vpop.f32.mrb[67].mxu1  ;;  %3830 = vmatmul.mubr.msk.bf16.gmra.mrb[60].mxu0 %vm615_vm0, %v1584_v20 }
 0x20b   : > { %v1537_v59 = vmax.f32 %v1379_v50, 0.0  ;;  %v1382_v61 = vadd.f32 %v4405_v48, %v1381_v58 }
 0x20c   : > { %v1540_v0 = vmax.f32 %v1390_v56, 0.0 }
 0x20d   : > { %v1538_v1 = vmax.f32 %v1382_v61, 0.0 }
 0x20e   : > { %v1586_v2 = vpack.c.bf16 %v1540_v0, %v1539_v54 }
 0x20f   : > { %v1585_v3 = vpack.c.bf16 %v1538_v1, %v1537_v59  ;;  %v3771_v4 = vpop.f32.mrb[68].mxu1 }
 0x210   : > { %v1403_v5 = vadd.f32 %v3771_v4, %v4405_v48  ;;  %v1394_v6 = vpop.f32.mrb[69].mxu1 }
 0x211   : > { %v1395_v7 = vadd.f32 %v4405_v48, %v1394_v6  ;;  %v3772_v8 = vpop.f32.mrb[70].mxu1  ;;  %3833 = vmatprep.mubr.msk.bf16.mxu0 %vm615_vm0, %v1585_v3 }
 0x212   : > { %v1543_v10 = vmax.f32 %v1403_v5, 0.0  ;;  %v1406_v11 = vadd.f32 %v3772_v8, %v4405_v48  ;;  %v1397_v12 = vpop.f32.mrb[71].mxu1  ;;  %3834 = vmatmul.mubr.msk.bf16.gmra.mrb[64].mxu0 %vm615_vm0, %v1586_v2 }
 0x213   : > { %v1541_v13 = vmax.f32 %v1395_v7, 0.0  ;;  %v1398_v31 = vadd.f32 %v4405_v48, %v1397_v12 }
 0x214   : > { %v1544_v14 = vmax.f32 %v1406_v11, 0.0 }
 0x215   : > { %v1542_v15 = vmax.f32 %v1398_v31, 0.0 }
 0x216   : > { %v1588_v16 = vpack.c.bf16 %v1544_v14, %v1543_v10 }
 0x217   : > { %v1587_v19 = vpack.c.bf16 %v1542_v15, %v1541_v13  ;;  %v3775_v20 = vpop.f32.mrb[72].mxu1 }
 0x218   : > { %v1419_v23 = vadd.f32 %v3775_v20, %v4405_v48  ;;  %v1410_v42 = vpop.f32.mrb[73].mxu1 }
 0x219   : > { %v1411_v44 = vadd.f32 %v4405_v48, %v1410_v42  ;;  %v3776_v49 = vpop.f32.mrb[74].mxu1  ;;  %3837 = vmatprep.mubr.msk.bf16.mxu0 %vm615_vm0, %v1587_v19 }
 0x21a   : > { %v1547_v50 = vmax.f32 %v1419_v23, 0.0  ;;  %v1422_v53 = vadd.f32 %v3776_v49, %v4405_v48  ;;  %v1413_v54 = vpop.f32.mrb[75].mxu1  ;;  %3838 = vmatmul.mubr.msk.bf16.gmra.mrb[68].mxu0 %vm615_vm0, %v1588_v16 }
 0x21b   : > { %v1545_v56 = vmax.f32 %v1411_v44, 0.0  ;;  %v1414_v58 = vadd.f32 %v4405_v48, %v1413_v54 }
 0x21c   : > { %v1548_v59 = vmax.f32 %v1422_v53, 0.0 }
 0x21d   : > { %v1546_v61 = vmax.f32 %v1414_v58, 0.0 }
 0x21e   : > { %v1590_v0 = vpack.c.bf16 %v1548_v59, %v1547_v50 }
 0x21f   : > { %v1589_v1 = vpack.c.bf16 %v1546_v61, %v1545_v56  ;;  %v3779_v2 = vpop.f32.mrb[76].mxu1 }
 0x220   : > { %v1435_v3 = vadd.f32 %v3779_v2, %v4405_v48  ;;  %v1426_v4 = vpop.f32.mrb[77].mxu1 }
 0x221   : > { %v1427_v5 = vadd.f32 %v4405_v48, %v1426_v4  ;;  %v3780_v6 = vpop.f32.mrb[78].mxu1  ;;  %3841 = vmatprep.mubr.msk.bf16.mxu0 %vm615_vm0, %v1589_v1 }
 0x222   : > { %v1551_v7 = vmax.f32 %v1435_v3, 0.0  ;;  %v1438_v8 = vadd.f32 %v3780_v6, %v4405_v48  ;;  %v1429_v10 = vpop.f32.mrb[79].mxu1  ;;  %3842 = vmatmul.mubr.msk.bf16.gmra.mrb[72].mxu0 %vm615_vm0, %v1590_v0 }
 0x223   : > { %v1549_v11 = vmax.f32 %v1427_v5, 0.0  ;;  %v1430_v12 = vadd.f32 %v4405_v48, %v1429_v10 }
 0x224   : > { %v1552_v13 = vmax.f32 %v1438_v8, 0.0 }
 0x225   : > { %v1550_v31 = vmax.f32 %v1430_v12, 0.0 }
 0x226   : > { %v1592_v14 = vpack.c.bf16 %v1552_v13, %v1551_v7 }
 0x227   : > { %v1591_v15 = vpack.c.bf16 %v1550_v31, %v1549_v11  ;;  %v3783_v16 = vpop.f32.mrb[80].mxu1 }
 0x228   : > { %v1451_v19 = vadd.f32 %v3783_v16, %v4405_v48  ;;  %v1442_v20 = vpop.f32.mrb[81].mxu1 }
 0x229   : > { %v1443_v23 = vadd.f32 %v4405_v48, %v1442_v20  ;;  %v3784_v42 = vpop.f32.mrb[82].mxu1  ;;  %3845 = vmatprep.mubr.msk.bf16.mxu0 %vm615_vm0, %v1591_v15 }
 0x22a   : > { %v1555_v44 = vmax.f32 %v1451_v19, 0.0  ;;  %v1454_v49 = vadd.f32 %v3784_v42, %v4405_v48  ;;  %v1445_v50 = vpop.f32.mrb[83].mxu1  ;;  %3846 = vmatmul.mubr.msk.bf16.gmra.mrb[76].mxu0 %vm615_vm0, %v1592_v14 }
 0x22b   : > { %v1553_v53 = vmax.f32 %v1443_v23, 0.0  ;;  %v1446_v54 = vadd.f32 %v4405_v48, %v1445_v50 }
 0x22c   : > { %v1556_v56 = vmax.f32 %v1454_v49, 0.0 }
 0x22d   : > { %v1554_v58 = vmax.f32 %v1446_v54, 0.0 }
 0x22e   : > { %v1594_v59 = vpack.c.bf16 %v1556_v56, %v1555_v44 }
 0x22f   : > { %v1593_v61 = vpack.c.bf16 %v1554_v58, %v1553_v53  ;;  %v3787_v0 = vpop.f32.mrb[84].mxu1 }
 0x230   : > { %v1467_v1 = vadd.f32 %v3787_v0, %v4405_v48  ;;  %v1458_v2 = vpop.f32.mrb[85].mxu1 }
 0x231   : > { %v1459_v3 = vadd.f32 %v4405_v48, %v1458_v2  ;;  %v3788_v4 = vpop.f32.mrb[86].mxu1  ;;  %3849 = vmatprep.mubr.msk.bf16.mxu0 %vm615_vm0, %v1593_v61 }
 0x232   : > { %v1559_v5 = vmax.f32 %v1467_v1, 0.0  ;;  %v1470_v6 = vadd.f32 %v3788_v4, %v4405_v48  ;;  %v1461_v7 = vpop.f32.mrb[87].mxu1  ;;  %3850 = vmatmul.mubr.msk.bf16.gmra.mrb[80].mxu0 %vm615_vm0, %v1594_v59 }
 0x233   : > { %v1557_v8 = vmax.f32 %v1459_v3, 0.0  ;;  %v1462_v10 = vadd.f32 %v4405_v48, %v1461_v7 }
 0x234   : > { %v1560_v11 = vmax.f32 %v1470_v6, 0.0 }
 0x235   : > { %v1558_v12 = vmax.f32 %v1462_v10, 0.0 }
 0x236   : > { %v1596_v13 = vpack.c.bf16 %v1560_v11, %v1559_v5 }
 0x237   : > { %v1595_v31 = vpack.c.bf16 %v1558_v12, %v1557_v8  ;;  %v3791_v14 = vpop.f32.mrb[88].mxu1 }
 0x238   : > { %v1483_v15 = vadd.f32 %v3791_v14, %v4405_v48  ;;  %v1474_v16 = vpop.f32.mrb[89].mxu1 }
 0x239   : > { %v1475_v19 = vadd.f32 %v4405_v48, %v1474_v16  ;;  %v3792_v20 = vpop.f32.mrb[90].mxu1  ;;  %3853 = vmatprep.mubr.msk.bf16.mxu0 %vm615_vm0, %v1595_v31 }
 0x23a   : > { %v1563_v23 = vmax.f32 %v1483_v15, 0.0  ;;  %v1486_v42 = vadd.f32 %v3792_v20, %v4405_v48  ;;  %v1477_v44 = vpop.f32.mrb[91].mxu1  ;;  %3854 = vmatmul.mubr.msk.bf16.gmra.mrb[84].mxu0 %vm615_vm0, %v1596_v13  ;;  %v4554_v13 = vpop.permute.xlu1 %2979 }
 0x23b   : > { %v1561_v49 = vmax.f32 %v1475_v19, 0.0  ;;  %v1478_v50 = vadd.f32 %v4405_v48, %v1477_v44 }
 0x23c   : > { %v1564_v53 = vmax.f32 %v1486_v42, 0.0 }
 0x23d   : > { %v1562_v54 = vmax.f32 %v1478_v50, 0.0 }
 0x23e   : > { %v1598_v56 = vpack.c.bf16 %v1564_v53, %v1563_v23  ;;  %v4556_v31 = vpop.permute.xlu1 %2981 }
 0x23f   : > { %v1597_v58 = vpack.c.bf16 %v1562_v54, %v1561_v49  ;;  %v3795_v59 = vpop.f32.mrb[92].mxu1 }
 0x240   : > { %v1499_v61 = vadd.f32 %v3795_v59, %v4405_v48  ;;  %v1490_v0 = vpop.f32.mrb[93].mxu1 }
 0x241   : > { %v1491_v1 = vadd.f32 %v4405_v48, %v1490_v0  ;;  %v3796_v2 = vpop.f32.mrb[94].mxu1  ;;  %3857 = vmatprep.mubr.msk.bf16.mxu0 %vm615_vm0, %v1597_v58 }
 0x242   : > { %v1567_v3 = vmax.f32 %v1499_v61, 0.0  ;;  %v1502_v4 = vadd.f32 %v3796_v2, %v4405_v48  ;;  %v1493_v5 = vpop.f32.mrb[95].mxu1  ;;  %3858 = vmatmul.mubr.msk.bf16.gmra.mrb[88].mxu0 %vm615_vm0, %v1598_v56  ;;  %v4558_v14 = vpop.permute.xlu1 %2983 }
 0x243   : > { %v1565_v6 = vmax.f32 %v1491_v1, 0.0  ;;  %v1494_v7 = vadd.f32 %v4405_v48, %v1493_v5  ;;  %v4565_v48 = vld [vmem:[%s5545_s6] ss:$0 sm:$0xff] }
 0x244   : > { %v1568_v8 = vmax.f32 %v1502_v4, 0.0 }
 0x245   : > { %v1566_v10 = vmax.f32 %v1494_v7, 0.0 }
 0x246   : > { %v1600_v11 = vpack.c.bf16 %v1568_v8, %v1567_v3  ;;  %v4560_v15 = vpop.permute.xlu1 %2985 }
 0x247   : > { %v1599_v12 = vpack.c.bf16 %v1566_v10, %v1565_v6 }
 0x249   : > { %3861 = vmatprep.mubr.msk.bf16.mxu0 %vm615_vm0, %v1599_v12 }
 0x24a   : > { %3862 = vmatmul.mubr.msk.bf16.gmra.mrb[92].mxu0 %vm615_vm0, %v1600_v11  ;;  %v4574_v19 = vpop.permute.xlu1 %2987 }
 0x24e   : > { %v4592_v0 = vpop.permute.xlu1 %2989 }
 0x2a5   : > { %v3803_v16 = vpop.f32.mrb[32].mxu0 }
 0x2a6   : > { %v1763_v20 = vadd.f32 %v3803_v16, %v4565_v48  ;;  %v1754_v23 = vpop.f32.mrb[33].mxu0 }
 0x2a7   : > { %v1755_v42 = vadd.f32 %v4565_v48, %v1754_v23  ;;  %v3804_v44 = vpop.f32.mrb[34].mxu0  ;;  %v4608_v23 = vpop.permute.xlu1 %2991 }
 0x2a8   : > { %2012 = vst.msk [vmem:[%s4572_s23 + $0x10] sm:$0xff] %vm2009_vm1, %v1763_v20  ;;  %v2140_v49 = vsub.f32 %v1763_v20, %v4275_v57  ;;  %v1766_v50 = vadd.f32 %v3804_v44, %v4565_v48  ;;  %v1757_v53 = vpop.f32.mrb[35].mxu0 }
 0x2a9   : > { %2010 = vst.msk [vmem:[%s4572_s23] sm:$0xff] %vm2009_vm1, %v1755_v42  ;;  %v2138_v54 = vsub.f32 %v1755_v42, %v4263_v36  ;;  %v1758_v56 = vadd.f32 %v4565_v48, %v1757_v53 }
 0x2aa   : > { %2013 = vst.msk [vmem:[%s4572_s23 + $0x18] sm:$0xff] %vm2009_vm1, %v1766_v50  ;;  %v2141_v58 = vsub.f32 %v1766_v50, %v4280_v60  ;;  %v2204_v59 = vmul.f32 %v2140_v49, %v2140_v49 }
 0x2ab   : > { %2011 = vst.msk [vmem:[%s4572_s23 + $0x8] sm:$0xff] %vm2009_vm1, %v1758_v56  ;;  %v2139_v61 = vsub.f32 %v1758_v56, %v4269_v28  ;;  %v2202_v57 = vmul.f32 %v2138_v54, %v2138_v54 }
 0x2ac   : > { %v2272_v1 = vsel %vm2009_vm1, %v2204_v59, 0.0  ;;  %v2205_v2 = vmul.f32 %v2141_v58, %v2141_v58 }
 0x2ad   : > { %2273 = vadd.xlane.f32.xlu1 %v2272_v1  ;;  %v3807_v36 = vpop.f32.mrb[36].mxu0  ;;  %v2266_v3 = vsel %vm2009_vm1, %v2202_v57, 0.0  ;;  %v2203_v4 = vmul.f32 %v2139_v61, %v2139_v61 }
 0x2ae   : > { %v1779_v60 = vadd.f32 %v3807_v36, %v4565_v48  ;;  %v1770_v5 = vpop.f32.mrb[37].mxu0  ;;  %2267 = vadd.xlane.f32.xlu0 %v2266_v3  ;;  %v2275_v11 = vsel %vm2009_vm1, %v2205_v2, 0.0 }
 0x2af   : > { %v1771_v6 = vadd.f32 %v4565_v48, %v1770_v5  ;;  %v3808_v28 = vpop.f32.mrb[38].mxu0  ;;  %v2269_v20 = vsel %vm2009_vm1, %v2203_v4, 0.0 }
 0x2b0   : > { %2016 = vst.msk [vmem:[%s4572_s23 + $0x30] sm:$0xff] %vm2009_vm1, %v1779_v60  ;;  %v2144_v7 = vsub.f32 %v1779_v60, %v4295_v52  ;;  %v1782_v8 = vadd.f32 %v3808_v28, %v4565_v48  ;;  %v1773_v10 = vpop.f32.mrb[39].mxu0 }
 0x2b1   : > { %2014 = vst.msk [vmem:[%s4572_s23 + $0x20] sm:$0xff] %vm2009_vm1, %v1771_v6  ;;  %v2142_v12 = vsub.f32 %v1771_v6, %v4285_v21  ;;  %v1774_v16 = vadd.f32 %v4565_v48, %v1773_v10  ;;  %2276 = vadd.xlane.f32.xlu1 %v2275_v11 }
 0x2b2   : > { %2017 = vst.msk [vmem:[%s4572_s23 + $0x38] sm:$0xff] %vm2009_vm1, %v1782_v8  ;;  %v2145_v52 = vsub.f32 %v1782_v8, %v4300_v55  ;;  %2270 = vadd.xlane.f32.xlu0 %v2269_v20  ;;  %v2208_v42 = vmul.f32 %v2144_v7, %v2144_v7 }
 0x2b3   : > { %2015 = vst.msk [vmem:[%s4572_s23 + $0x28] sm:$0xff] %vm2009_vm1, %v1774_v16  ;;  %v2143_v44 = vsub.f32 %v1774_v16, %v4290_v24  ;;  %v2206_v53 = vmul.f32 %v2142_v12, %v2142_v12  ;;  %v4620_v24 = vpop.permute.xlu1 %2993 }
 0x2b4   : > { %v2284_v21 = vsel %vm2009_vm1, %v2208_v42, 0.0  ;;  %v2209_v49 = vmul.f32 %v2145_v52, %v2145_v52 }
 0x2b5   : > { %v3811_v50 = vpop.f32.mrb[40].mxu0  ;;  %v2207_v58 = vmul.f32 %v2143_v44, %v2143_v44  ;;  %v2278_v4 = vsel %vm2009_vm1, %v2206_v53, 0.0 }
 0x2b6   : > { %v1795_v54 = vadd.f32 %v3811_v50, %v4565_v48  ;;  %v1786_v56 = vpop.f32.mrb[41].mxu0  ;;  %2285 = vadd.xlane.f32.xlu0 %v2284_v21  ;;  %v2287_v55 = vsel %vm2009_vm1, %v2209_v49, 0.0 }
 0x2b7   : > { %v1787_v59 = vadd.f32 %v4565_v48, %v1786_v56  ;;  %2288 = vadd.xlane.f32.xlu1 %v2287_v55  ;;  %v3812_v61 = vpop.f32.mrb[42].mxu0  ;;  %v2281_v5 = vsel %vm2009_vm1, %v2207_v58, 0.0  ;;  %v4639_v10 = vpop.permute.xlu1 %2995 }
 0x2b8   : > { %2020 = vst.msk [vmem:[%s4572_s23 + $0x50] sm:$0xff] %vm2009_vm1, %v1795_v54  ;;  %v2148_v57 = vsub.f32 %v1795_v54, %v4315_v25  ;;  %v1798_v1 = vadd.f32 %v3812_v61, %v4565_v48  ;;  %v1789_v2 = vpop.f32.mrb[43].mxu0 }
 0x2b9   : > { %2018 = vst.msk [vmem:[%s4572_s23 + $0x40] sm:$0xff] %vm2009_vm1, %v1787_v59  ;;  %v2146_v36 = vsub.f32 %v1787_v59, %v4305_v18  ;;  %v1790_v3 = vadd.f32 %v4565_v48, %v1789_v2 }
 0x2ba   : > { %2021 = vst.msk [vmem:[%s4572_s23 + $0x58] sm:$0xff] %vm2009_vm1, %v1798_v1  ;;  %v2149_v60 = vsub.f32 %v1798_v1, %v4320_v26  ;;  %2279 = vadd.xlane.f32.xlu0 %v2278_v4  ;;  %v2212_v6 = vmul.f32 %v2148_v57, %v2148_v57 }
 0x2bb   : > { %2019 = vst.msk [vmem:[%s4572_s23 + $0x48] sm:$0xff] %vm2009_vm1, %v1790_v3  ;;  %v2147_v25 = vsub.f32 %v1790_v3, %v4310_v22  ;;  %2282 = vadd.xlane.f32.xlu1 %v2281_v5  ;;  %v2210_v8 = vmul.f32 %v2146_v36, %v2146_v36  ;;  %v4660_v55 = vpop.permute.xlu1 %2997 }
 0x2bc   : > { %v2296_v18 = vsel %vm2009_vm1, %v2212_v6, 0.0  ;;  %v2213_v28 = vmul.f32 %v2149_v60, %v2149_v60 }
 0x2bd   : > { %v3815_v7 = vpop.f32.mrb[44].mxu0  ;;  %v2211_v16 = vmul.f32 %v2147_v25, %v2147_v25  ;;  %v2290_v50 = vsel %vm2009_vm1, %v2210_v8, 0.0 }
 0x2be   : > { %v1811_v26 = vadd.f32 %v3815_v7, %v4565_v48  ;;  %v1802_v11 = vpop.f32.mrb[45].mxu0  ;;  %2297 = vadd.xlane.f32.xlu0 %v2296_v18  ;;  %v2299_v12 = vsel %vm2009_vm1, %v2213_v28, 0.0 }
 0x2bf   : > { %v1803_v20 = vadd.f32 %v4565_v48, %v1802_v11  ;;  %v3816_v22 = vpop.f32.mrb[46].mxu0  ;;  %2300 = vadd.xlane.f32.xlu1 %v2299_v12  ;;  %v2293_v54 = vsel %vm2009_vm1, %v2211_v16, 0.0  ;;  %v4675_v18 = vpop.permute.xlu1 %2999 }
 0x2c0   : > { %2024 = vst.msk [vmem:[%s4572_s23 + $0x70] sm:$0xff] %vm2009_vm1, %v1811_v26  ;;  %v2152_v52 = vsub.f32 %v1811_v26, %v4335_v30  ;;  %v1814_v42 = vadd.f32 %v3816_v22, %v4565_v48  ;;  %v1805_v44 = vpop.f32.mrb[47].mxu0 }
 0x2c1   : > { %2022 = vst.msk [vmem:[%s4572_s23 + $0x60] sm:$0xff] %vm2009_vm1, %v1803_v20  ;;  %v2150_v21 = vsub.f32 %v1803_v20, %v4325_v27  ;;  %v1806_v49 = vadd.f32 %v4565_v48, %v1805_v44 }
 0x2c2   : > { %2025 = vst.msk [vmem:[%s4572_s23 + $0x78] sm:$0xff] %vm2009_vm1, %v1814_v42  ;;  %v2153_v53 = vsub.f32 %v1814_v42, %v4340_v32  ;;  %2291 = vadd.xlane.f32.xlu0 %v2290_v50  ;;  %v2216_v56 = vmul.f32 %v2152_v52, %v2152_v52 }
 0x2c3   : > { %2023 = vst.msk [vmem:[%s4572_s23 + $0x68] sm:$0xff] %vm2009_vm1, %v1806_v49  ;;  %v2151_v30 = vsub.f32 %v1806_v49, %v4330_v29  ;;  %2294 = vadd.xlane.f32.xlu1 %v2293_v54  ;;  %v2214_v61 = vmul.f32 %v2150_v21, %v2150_v21 }
 0x2c4   : > { %v2308_v27 = vsel %vm2009_vm1, %v2216_v56, 0.0  ;;  %v2217_v58 = vmul.f32 %v2153_v53, %v2153_v53 }
 0x2c5   : > { %v3819_v59 = vpop.f32.mrb[48].mxu0  ;;  %v2215_v2 = vmul.f32 %v2151_v30, %v2151_v30  ;;  %v2302_v25 = vsel %vm2009_vm1, %v2214_v61, 0.0 }
 0x2c6   : > { %v1827_v32 = vadd.f32 %v3819_v59, %v4565_v48  ;;  %v1818_v57 = vpop.f32.mrb[49].mxu0  ;;  %2309 = vadd.xlane.f32.xlu0 %v2308_v27  ;;  %v2311_v1 = vsel %vm2009_vm1, %v2217_v58, 0.0 }
 0x2c7   : > { %v1819_v36 = vadd.f32 %v4565_v48, %v1818_v57  ;;  %v3820_v29 = vpop.f32.mrb[50].mxu0  ;;  %2312 = vadd.xlane.f32.xlu1 %v2311_v1 }
 0x2c8   : > { %2028 = vst.msk [vmem:[%s4572_s23 + $0x90] sm:$0xff] %vm2009_vm1, %v1827_v32  ;;  %v2156_v3 = vsub.f32 %v1827_v32, %v4355_v35  ;;  %v1830_v4 = vadd.f32 %v3820_v29, %v4565_v48  ;;  %v1821_v60 = vpop.f32.mrb[51].mxu0  ;;  %v2305_v35 = vsel %vm2009_vm1, %v2215_v2, 0.0 }
 0x2c9   : > { %2026 = vst.msk [vmem:[%s4572_s23 + $0x80] sm:$0xff] %vm2009_vm1, %v1819_v36  ;;  %v2154_v5 = vsub.f32 %v1819_v36, %v4345_v33  ;;  %v1822_v6 = vadd.f32 %v4565_v48, %v1821_v60 }
 0x2ca   : > { %2029 = vst.msk [vmem:[%s4572_s23 + $0x98] sm:$0xff] %vm2009_vm1, %v1830_v4  ;;  %v2157_v28 = vsub.f32 %v1830_v4, %v4360_v37  ;;  %2303 = vadd.xlane.f32.xlu0 %v2302_v25  ;;  %v2220_v7 = vmul.f32 %v2156_v3, %v2156_v3 }
 0x2cb   : > { %2027 = vst.msk [vmem:[%s4572_s23 + $0x88] sm:$0xff] %vm2009_vm1, %v1822_v6  ;;  %v2155_v8 = vsub.f32 %v1822_v6, %v4350_v34  ;;  %2306 = vadd.xlane.f32.xlu1 %v2305_v35  ;;  %v2218_v12 = vmul.f32 %v2154_v5, %v2154_v5  ;;  %v4688_v34 = vpop.permute.xlu1 %3001 }
 0x2cc   : > { %v2320_v33 = vsel %vm2009_vm1, %v2220_v7, 0.0  ;;  %v2221_v26 = vmul.f32 %v2157_v28, %v2157_v28 }
 0x2cd   : > { %v3823_v11 = vpop.f32.mrb[52].mxu0  ;;  %v2219_v22 = vmul.f32 %v2155_v8, %v2155_v8  ;;  %v2314_v54 = vsel %vm2009_vm1, %v2218_v12, 0.0 }
 0x2ce   : > { %v1843_v16 = vadd.f32 %v3823_v11, %v4565_v48  ;;  %v1834_v20 = vpop.f32.mrb[53].mxu0  ;;  %2321 = vadd.xlane.f32.xlu0 %v2320_v33  ;;  %v2323_v37 = vsel %vm2009_vm1, %v2221_v26, 0.0  ;;  %v4731_v33 = vpop.permute.xlu0 %3023 }
 0x2cf   : > { %v1835_v52 = vadd.f32 %v4565_v48, %v1834_v20  ;;  %v3824_v42 = vpop.f32.mrb[54].mxu0  ;;  %2324 = vadd.xlane.f32.xlu1 %v2323_v37  ;;  %v2317_v30 = vsel %vm2009_vm1, %v2219_v22, 0.0  ;;  %v4707_v32 = vpop.permute.xlu1 %3003  ;;  %5563 = vst [vmem:[#allocation2_spill] sm:$0xff] %v4731_v33 }
 0x2d0   : > { %2032 = vst.msk [vmem:[%s4572_s23 + $0xb0] sm:$0xff] %vm2009_vm1, %v1843_v16  ;;  %v2160_v44 = vsub.f32 %v1843_v16, %v4365_v38  ;;  %v1846_v21 = vadd.f32 %v3824_v42, %v4565_v48  ;;  %v1837_v49 = vpop.f32.mrb[55].mxu0 }
 0x2d1   : > { %2030 = vst.msk [vmem:[%s4572_s23 + $0xa0] sm:$0xff] %vm2009_vm1, %v1835_v52  ;;  %v2158_v50 = vsub.f32 %v1835_v52, %v4368_v39  ;;  %v1838_v53 = vadd.f32 %v4565_v48, %v1837_v49 }
 0x2d2   : > { %2033 = vst.msk [vmem:[%s4572_s23 + $0xb8] sm:$0xff] %vm2009_vm1, %v1846_v21  ;;  %v2161_v56 = vsub.f32 %v1846_v21, %v4386_v43  ;;  %2315 = vadd.xlane.f32.xlu0 %v2314_v54  ;;  %v2224_v27 = vmul.f32 %v2160_v44, %v2160_v44 }
 0x2d3   : > { %2031 = vst.msk [vmem:[%s4572_s23 + $0xa8] sm:$0xff] %vm2009_vm1, %v1838_v53  ;;  %v2159_v38 = vsub.f32 %v1838_v53, %v4378_v41  ;;  %2318 = vadd.xlane.f32.xlu1 %v2317_v30  ;;  %v2222_v61 = vmul.f32 %v2158_v50, %v2158_v50  ;;  %v4728_v7 = vpop.permute.xlu1 %3005  ;;  %v4750_v53 = vld [vmem:[%s4259_s15 + $0xf8] sm:$0xff]  ;;  %v4754_v30 = vpop.permute.xlu0 %3029 }
 0x2d4   : > { %v2332_v39 = vsel %vm2009_vm1, %v2224_v27, 0.0  ;;  %v2225_v58 = vmul.f32 %v2161_v56, %v2161_v56  ;;  %5564 = vst [vmem:[#allocation3_spill] sm:$0xff] %v4754_v30  ;;  %v4979_v30 = vld [vmem:[%s4259_s15 + $0x1d0] sm:$0xff] }
 0x2d5   : > { %v3827_v59 = vpop.f32.mrb[56].mxu0  ;;  %v2223_v2 = vmul.f32 %v2159_v38, %v2159_v38  ;;  %v2326_v6 = vsel %vm2009_vm1, %v2222_v61, 0.0  ;;  %5579 = vst [vmem:[#allocation18_spill] sm:$0xff] %v4979_v30 }
 0x2d6   : > { %v1859_v43 = vadd.f32 %v3827_v59, %v4565_v48  ;;  %v1850_v57 = vpop.f32.mrb[57].mxu0  ;;  %2333 = vadd.xlane.f32.xlu0 %v2332_v39  ;;  %v2335_v1 = vsel %vm2009_vm1, %v2225_v58, 0.0 }
 0x2d7   : > { %v1851_v36 = vadd.f32 %v4565_v48, %v1850_v57  ;;  %v3828_v41 = vpop.f32.mrb[58].mxu0  ;;  %2336 = vadd.xlane.f32.xlu1 %v2335_v1  ;;  %v2329_v28 = vsel %vm2009_vm1, %v2223_v2, 0.0  ;;  %v4745_v50 = vpop.permute.xlu1 %3007 }
 0x2d8   : > { %2036 = vst.msk [vmem:[%s4572_s23 + $0xd0] sm:$0xff] %vm2009_vm1, %v1859_v43  ;;  %v2164_v29 = vsub.f32 %v1859_v43, %v4400_v47  ;;  %v1862_v3 = vadd.f32 %v3828_v41, %v4565_v48  ;;  %v1853_v4 = vpop.f32.mrb[59].mxu0 }
 0x2d9   : > { %2034 = vst.msk [vmem:[%s4572_s23 + $0xc0] sm:$0xff] %vm2009_vm1, %v1851_v36  ;;  %v2162_v60 = vsub.f32 %v1851_v36, %v4393_v45  ;;  %v1854_v5 = vadd.f32 %v4565_v48, %v1853_v4  ;;  %v4768_v36 = vld [vmem:[%s4259_s15 + $0x110] sm:$0xff]  ;;  %v4772_v4 = vpop.permute.xlu0 %3041 }
 0x2da   : > { %2037 = vst.msk [vmem:[%s4572_s23 + $0xd8] sm:$0xff] %vm2009_vm1, %v1862_v3  ;;  %v2165_v25 = vsub.f32 %v1862_v3, %v4412_v51  ;;  %2327 = vadd.xlane.f32.xlu0 %v2326_v6  ;;  %v2228_v35 = vmul.f32 %v2164_v29, %v2164_v29  ;;  %5565 = vst [vmem:[#allocation4_spill] sm:$0xff] %v4772_v4 }
 0x2db   : > { %2035 = vst.msk [vmem:[%s4572_s23 + $0xc8] sm:$0xff] %vm2009_vm1, %v1854_v5  ;;  %v2163_v47 = vsub.f32 %v1854_v5, %v4375_v40  ;;  %2330 = vadd.xlane.f32.xlu1 %v2329_v28  ;;  %v2226_v51 = vmul.f32 %v2162_v60, %v2162_v60  ;;  %v4763_v2 = vpop.permute.xlu1 %3009  ;;  %v4777_v60 = vld [vmem:[%s4259_s15 + $0x100] sm:$0xff]  ;;  %v4785_v28 = vld [vmem:[%s4259_s15 + $0x118] sm:$0xff] }
 0x2dc   : > { %v2344_v45 = vsel %vm2009_vm1, %v2228_v35, 0.0  ;;  %v2229_v8 = vmul.f32 %v2165_v25, %v2165_v25 }
 0x2dd   : > { %v3831_v26 = vpop.f32.mrb[60].mxu0  ;;  %v2227_v16 = vmul.f32 %v2163_v47, %v2163_v47  ;;  %v2338_v49 = vsel %vm2009_vm1, %v2226_v51, 0.0 }
 0x2de   : > { %v1875_v11 = vadd.f32 %v3831_v26, %v4565_v48  ;;  %v1866_v12 = vpop.f32.mrb[61].mxu0  ;;  %2345 = vadd.xlane.f32.xlu0 %v2344_v45  ;;  %v2347_v40 = vsel %vm2009_vm1, %v2229_v8, 0.0  ;;  %v4792_v8 = vld [vmem:[%s4259_s15 + $0x108] sm:$0xff] }
 0x2df   : > { %v1867_v20 = vadd.f32 %v4565_v48, %v1866_v12  ;;  %v3832_v37 = vpop.f32.mrb[62].mxu0  ;;  %2348 = vadd.xlane.f32.xlu1 %v2347_v40 }
 0x2e0   : > { %2040 = vst.msk [vmem:[%s4572_s23 + $0xf0] sm:$0xff] %vm2009_vm1, %v1875_v11  ;;  %v2168_v22 = vsub.f32 %v1875_v11, %v4443_v17  ;;  %v1878_v52 = vadd.f32 %v3832_v37, %v4565_v48  ;;  %v1869_v42 = vpop.f32.mrb[63].mxu0  ;;  %v2341_v17 = vsel %vm2009_vm1, %v2227_v16, 0.0  ;;  %v4796_v16 = vpop.permute.xlu1 %3011 }
 0x2e1   : > { %2038 = vst.msk [vmem:[%s4572_s23 + $0xe0] sm:$0xff] %vm2009_vm1, %v1867_v20  ;;  %v2166_v44 = vsub.f32 %v1867_v20, %v4422_v63  ;;  %v1870_v21 = vadd.f32 %v4565_v48, %v1869_v42  ;;  %v4800_v42 = vpop.permute.xlu0 %3043 }
 0x2e2   : > { %2041 = vst.msk [vmem:[%s4572_s23 + $0xf8] sm:$0xff] %vm2009_vm1, %v1878_v52  ;;  %v2169_v54 = vsub.f32 %v1878_v52, %v4750_v53  ;;  %2339 = vadd.xlane.f32.xlu0 %v2338_v49  ;;  %v2232_v56 = vmul.f32 %v2168_v22, %v2168_v22  ;;  %5566 = vst [vmem:[#allocation5_spill] sm:$0xff] %v4800_v42  ;;  %v4806_v49 = vld [vmem:[%s4259_s15 + $0x130] sm:$0xff] }
 0x2e3   : > { %2039 = vst.msk [vmem:[%s4572_s23 + $0xe8] sm:$0xff] %vm2009_vm1, %v1870_v21  ;;  %v2167_v63 = vsub.f32 %v1870_v21, %v4430_v9  ;;  %2342 = vadd.xlane.f32.xlu1 %v2341_v17  ;;  %v2230_v58 = vmul.f32 %v2166_v44, %v2166_v44 }
 0x2e4   : > { %v2356_v27 = vsel %vm2009_vm1, %v2232_v56, 0.0  ;;  %v2233_v38 = vmul.f32 %v2169_v54, %v2169_v54 }
 0x2e5   : > { %v3835_v39 = vpop.f32.mrb[64].mxu0  ;;  %v2231_v57 = vmul.f32 %v2167_v63, %v2167_v63  ;;  %v2350_v25 = vsel %vm2009_vm1, %v2230_v58, 0.0  ;;  %v4813_v63 = vld [vmem:[%s4259_s15 + $0x120] sm:$0xff]  ;;  %v4821_v58 = vld [vmem:[%s4259_s15 + $0x138] sm:$0xff] }
 0x2e6   : > { %v1891_v59 = vadd.f32 %v3835_v39, %v4565_v48  ;;  %v1882_v61 = vpop.f32.mrb[65].mxu0  ;;  %2357 = vadd.xlane.f32.xlu0 %v2356_v27  ;;  %v2359_v43 = vsel %vm2009_vm1, %v2233_v38, 0.0 }
 0x2e7   : > { %v1883_v1 = vadd.f32 %v4565_v48, %v1882_v61  ;;  %v3836_v9 = vpop.f32.mrb[66].mxu0  ;;  %2360 = vadd.xlane.f32.xlu1 %v2359_v43  ;;  %v2353_v47 = vsel %vm2009_vm1, %v2231_v57, 0.0  ;;  %v4828_v57 = vld [vmem:[%s4259_s15 + $0x128] sm:$0xff] }
 0x2e8   : > { %2044 = vst.msk [vmem:[%s4572_s23 + $0x110] sm:$0xff] %vm2009_vm1, %v1891_v59  ;;  %v2172_v41 = vsub.f32 %v1891_v59, %v4768_v36  ;;  %v1894_v29 = vadd.f32 %v3836_v9, %v4565_v48  ;;  %v1885_v3 = vpop.f32.mrb[67].mxu0 }
 0x2e9   : > { %2042 = vst.msk [vmem:[%s4572_s23 + $0x100] sm:$0xff] %vm2009_vm1, %v1883_v1  ;;  %v2170_v5 = vsub.f32 %v1883_v1, %v4777_v60  ;;  %v1886_v6 = vadd.f32 %v4565_v48, %v1885_v3 }
 0x2ea   : > { %2045 = vst.msk [vmem:[%s4572_s23 + $0x118] sm:$0xff] %vm2009_vm1, %v1894_v29  ;;  %v2173_v35 = vsub.f32 %v1894_v29, %v4785_v28  ;;  %2351 = vadd.xlane.f32.xlu0 %v2350_v25  ;;  %v2236_v45 = vmul.f32 %v2172_v41, %v2172_v41  ;;  %v4831_v41 = vpop.permute.xlu1 %3013 }
 0x2eb   : > { %2043 = vst.msk [vmem:[%s4572_s23 + $0x108] sm:$0xff] %vm2009_vm1, %v1886_v6  ;;  %v2171_v26 = vsub.f32 %v1886_v6, %v4792_v8  ;;  %2354 = vadd.xlane.f32.xlu1 %v2353_v47  ;;  %v2234_v40 = vmul.f32 %v2170_v5, %v2170_v5  ;;  %5567 = vst [vmem:[#allocation6_spill] sm:$0xff] %v4831_v41  ;;  %v4834_v5 = vpop.permute.xlu0 %3045 }
 0x2ec   : > { %v2368_v51 = vsel %vm2009_vm1, %v2236_v45, 0.0  ;;  %v2237_v11 = vmul.f32 %v2173_v35, %v2173_v35  ;;  %5568 = vst [vmem:[#allocation7_spill] sm:$0xff] %v4834_v5 }
 0x2ed   : > { %v3839_v12 = vpop.f32.mrb[68].mxu0  ;;  %v2235_v52 = vmul.f32 %v2171_v26, %v2171_v26  ;;  %v2362_v38 = vsel %vm2009_vm1, %v2234_v40, 0.0 }
 0x2ee   : > { %v1907_v20 = vadd.f32 %v3839_v12, %v4565_v48  ;;  %v1898_v37 = vpop.f32.mrb[69].mxu0  ;;  %2369 = vadd.xlane.f32.xlu0 %v2368_v51  ;;  %v2371_v22 = vsel %vm2009_vm1, %v2237_v11, 0.0 }
 0x2ef   : > { %v1899_v44 = vadd.f32 %v4565_v48, %v1898_v37  ;;  %v3840_v21 = vpop.f32.mrb[70].mxu0  ;;  %2372 = vadd.xlane.f32.xlu1 %v2371_v22  ;;  %v2365_v61 = vsel %vm2009_vm1, %v2235_v52, 0.0  ;;  %v4848_v22 = vld [vmem:[%s4259_s15 + $0x140] sm:$0xff] }
 0x2f0   : > { %2048 = vst.msk [vmem:[%s4572_s23 + $0x130] sm:$0xff] %vm2009_vm1, %v1907_v20  ;;  %v2176_v54 = vsub.f32 %v1907_v20, %v4806_v49  ;;  %v1910_v17 = vadd.f32 %v3840_v21, %v4565_v48  ;;  %v1901_v56 = vpop.f32.mrb[71].mxu0  ;;  %v4852_v21 = vpop.permute.xlu1 %3015 }
 0x2f1   : > { %2046 = vst.msk [vmem:[%s4572_s23 + $0x120] sm:$0xff] %vm2009_vm1, %v1899_v44  ;;  %v2174_v27 = vsub.f32 %v1899_v44, %v4813_v63  ;;  %v1902_v39 = vadd.f32 %v4565_v48, %v1901_v56  ;;  %5569 = vst [vmem:[#allocation8_spill] sm:$0xff] %v4852_v21  ;;  %v4862_v56 = vld [vmem:[%s4259_s15 + $0x148] sm:$0xff]  ;;  %v3947_v21 = vld [vmem:[%s4259_s15 + $0xd0] sm:$0xff] }
 0x2f2   : > { %2049 = vst.msk [vmem:[%s4572_s23 + $0x138] sm:$0xff] %vm2009_vm1, %v1910_v17  ;;  %v2177_v59 = vsub.f32 %v1910_v17, %v4821_v58  ;;  %2363 = vadd.xlane.f32.xlu0 %v2362_v38  ;;  %v2240_v43 = vmul.f32 %v2176_v54, %v2176_v54  ;;  %v4857_v17 = vpop.permute.xlu0 %3047 }
 0x2f3   : > { %2047 = vst.msk [vmem:[%s4572_s23 + $0x128] sm:$0xff] %vm2009_vm1, %v1902_v39  ;;  %v2175_v1 = vsub.f32 %v1902_v39, %v4828_v57  ;;  %2366 = vadd.xlane.f32.xlu1 %v2365_v61  ;;  %v2238_v9 = vmul.f32 %v2174_v27, %v2174_v27  ;;  %5570 = vst [vmem:[#allocation9_spill] sm:$0xff] %v4857_v17  ;;  %v4960_v17 = vld [vmem:[%s4259_s15 + $0x1a8] sm:$0xff] }
 0x2f4   : > { %v2241_v29 = vmul.f32 %v2177_v59, %v2177_v59  ;;  %v2380_v3 = vsel %vm2009_vm1, %v2240_v43, 0.0 }
 0x2f5   : > { %v3843_v6 = vpop.f32.mrb[72].mxu0  ;;  %v2239_v25 = vmul.f32 %v2175_v1, %v2175_v1  ;;  %v2374_v11 = vsel %vm2009_vm1, %v2238_v9, 0.0 }
 0x2f6   : > { %v1923_v35 = vadd.f32 %v3843_v6, %v4565_v48  ;;  %v1914_v47 = vpop.f32.mrb[73].mxu0  ;;  %v2383_v45 = vsel %vm2009_vm1, %v2241_v29, 0.0  ;;  %2381 = vadd.xlane.f32.xlu0 %v2380_v3 }
 0x2f7   : > { %v1915_v26 = vadd.f32 %v4565_v48, %v1914_v47  ;;  %v3844_v51 = vpop.f32.mrb[74].mxu0  ;;  %2384 = vadd.xlane.f32.xlu1 %v2383_v45  ;;  %v2377_v37 = vsel %vm2009_vm1, %v2239_v25, 0.0  ;;  %v4873_v25 = vld [vmem:[%s4259_s15 + $0x178] sm:$0xff]  ;;  %v4876_v47 = vpop.permute.xlu1 %3017 }
 0x2f8   : > { %2052 = vst.msk [vmem:[%s4572_s23 + $0x150] sm:$0xff] %vm2009_vm1, %v1923_v35  ;;  %v2180_v12 = vsub.f32 %v1923_v35, %v4469_v46  ;;  %v1926_v40 = vadd.f32 %v3844_v51, %v4565_v48  ;;  %v1917_v20 = vpop.f32.mrb[75].mxu0  ;;  %5571 = vst [vmem:[#allocation10_spill] sm:$0xff] %v4876_v47 }
 0x2f9   : > { %2050 = vst.msk [vmem:[%s4572_s23 + $0x140] sm:$0xff] %vm2009_vm1, %v1915_v26  ;;  %v2178_v52 = vsub.f32 %v1915_v26, %v4848_v22  ;;  %v1918_v44 = vadd.f32 %v4565_v48, %v1917_v20  ;;  %v4891_v20 = vld [vmem:[%s4259_s15 + $0x160] sm:$0xff] }
 0x2fa   : > { %2053 = vst.msk [vmem:[%s4572_s23 + $0x158] sm:$0xff] %vm2009_vm1, %v1926_v40  ;;  %v2181_v46 = vsub.f32 %v1926_v40, %v4479_v62  ;;  %2375 = vadd.xlane.f32.xlu0 %v2374_v11  ;;  %v2244_v54 = vmul.f32 %v2180_v12, %v2180_v12  ;;  %v4867_v62 = vld [vmem:[%s4259_s15 + $0x170] sm:$0xff]  ;;  %v4883_v11 = vld [vmem:[%s4259_s15 + $0x168] sm:$0xff]  ;;  %v4886_v40 = vpop.permute.xlu0 %3049 }
 0x2fb   : > { %2051 = vst.msk [vmem:[%s4572_s23 + $0x148] sm:$0xff] %vm2009_vm1, %v1918_v44  ;;  %v2179_v27 = vsub.f32 %v1918_v44, %v4862_v56  ;;  %2378 = vadd.xlane.f32.xlu1 %v2377_v37  ;;  %v2242_v38 = vmul.f32 %v2178_v52, %v2178_v52  ;;  %5572 = vst [vmem:[#allocation11_spill] sm:$0xff] %v4886_v40 }
 0x2fc   : > { %v2245_v39 = vmul.f32 %v2181_v46, %v2181_v46  ;;  %v2392_v59 = vsel %vm2009_vm1, %v2244_v54, 0.0 }
 0x2fd   : > { %v2243_v61 = vmul.f32 %v2179_v27, %v2179_v27  ;;  %v3847_v43 = vpop.f32.mrb[76].mxu0  ;;  %v2386_v35 = vsel %vm2009_vm1, %v2242_v38, 0.0 }
 0x2fe   : > { %v1939_v1 = vadd.f32 %v3847_v43, %v4565_v48  ;;  %v1930_v9 = vpop.f32.mrb[77].mxu0  ;;  %v2395_v29 = vsel %vm2009_vm1, %v2245_v39, 0.0  ;;  %2393 = vadd.xlane.f32.xlu0 %v2392_v59  ;;  %v4903_v43 = vld [vmem:[%s4259_s15 + $0x190] sm:$0xff] }
 0x2ff   : > { %v1931_v3 = vadd.f32 %v4565_v48, %v1930_v9  ;;  %v3848_v6 = vpop.f32.mrb[78].mxu0  ;;  %2396 = vadd.xlane.f32.xlu1 %v2395_v29  ;;  %v2389_v12 = vsel %vm2009_vm1, %v2243_v61, 0.0 }
 0x300   : > { %2056 = vst.msk [vmem:[%s4572_s23 + $0x170] sm:$0xff] %vm2009_vm1, %v1939_v1  ;;  %v2184_v45 = vsub.f32 %v1939_v1, %v4867_v62  ;;  %v1942_v26 = vadd.f32 %v3848_v6, %v4565_v48  ;;  %v1933_v51 = vpop.f32.mrb[79].mxu0  ;;  %v4905_v1 = vpop.permute.xlu1 %3019 }
 0x301   : > { %2054 = vst.msk [vmem:[%s4572_s23 + $0x160] sm:$0xff] %vm2009_vm1, %v1931_v3  ;;  %v2182_v37 = vsub.f32 %v1931_v3, %v4891_v20  ;;  %v1934_v52 = vadd.f32 %v4565_v48, %v1933_v51  ;;  %5573 = vst [vmem:[#allocation12_spill] sm:$0xff] %v4905_v1  ;;  %v4909_v3 = vld [vmem:[%s4259_s15 + $0x180] sm:$0xff]  ;;  %v4916_v51 = vld [vmem:[%s4259_s15 + $0x198] sm:$0xff] }
 0x302   : > { %2057 = vst.msk [vmem:[%s4572_s23 + $0x178] sm:$0xff] %vm2009_vm1, %v1942_v26  ;;  %v2185_v44 = vsub.f32 %v1942_v26, %v4873_v25  ;;  %2387 = vadd.xlane.f32.xlu0 %v2386_v35  ;;  %v2248_v46 = vmul.f32 %v2184_v45, %v2184_v45  ;;  %v4912_v35 = vpop.permute.xlu0 %3051 }
 0x303   : > { %2055 = vst.msk [vmem:[%s4572_s23 + $0x168] sm:$0xff] %vm2009_vm1, %v1934_v52  ;;  %v2183_v54 = vsub.f32 %v1934_v52, %v4883_v11  ;;  %2390 = vadd.xlane.f32.xlu1 %v2389_v12  ;;  %v2246_v27 = vmul.f32 %v2182_v37, %v2182_v37  ;;  %5574 = vst [vmem:[#allocation13_spill] sm:$0xff] %v4912_v35  ;;  %v4952_v35 = vld [vmem:[%s4259_s15 + $0x1b8] sm:$0xff] }
 0x304   : > { %v2249_v38 = vmul.f32 %v2185_v44, %v2185_v44  ;;  %v2404_v39 = vsel %vm2009_vm1, %v2248_v46, 0.0  ;;  %v4924_v46 = vld [vmem:[%s4259_s15 + $0x188] sm:$0xff] }
 0x305   : > { %v2247_v59 = vmul.f32 %v2183_v54, %v2183_v54  ;;  %v3851_v61 = vpop.f32.mrb[80].mxu0  ;;  %v2398_v12 = vsel %vm2009_vm1, %v2246_v27, 0.0 }
 0x306   : > { %v1955_v9 = vadd.f32 %v3851_v61, %v4565_v48  ;;  %v1946_v29 = vpop.f32.mrb[81].mxu0  ;;  %v2407_v6 = vsel %vm2009_vm1, %v2249_v38, 0.0  ;;  %2405 = vadd.xlane.f32.xlu0 %v2404_v39 }
 0x307   : > { %v1947_v45 = vadd.f32 %v4565_v48, %v1946_v29  ;;  %v3852_v26 = vpop.f32.mrb[82].mxu0  ;;  %2408 = vadd.xlane.f32.xlu1 %v2407_v6  ;;  %v2401_v54 = vsel %vm2009_vm1, %v2247_v59, 0.0  ;;  %v4937_v29 = vpop.permute.xlu1 %3021 }
 0x308   : > { %2060 = vst.msk [vmem:[%s4572_s23 + $0x190] sm:$0xff] %vm2009_vm1, %v1955_v9  ;;  %v2188_v37 = vsub.f32 %v1955_v9, %v4903_v43  ;;  %v1958_v52 = vadd.f32 %v3852_v26, %v4565_v48  ;;  %v1949_v44 = vpop.f32.mrb[83].mxu0  ;;  %5575 = vst [vmem:[#allocation14_spill] sm:$0xff] %v4937_v29  ;;  %v4940_v26 = vpop.permute.xlu0 %3053  ;;  %v5015_v29 = vld [vmem:[%s4259_s15 + $0x1f0] sm:$0xff] }
 0x309   : > { %2058 = vst.msk [vmem:[%s4572_s23 + $0x180] sm:$0xff] %vm2009_vm1, %v1947_v45  ;;  %v2186_v38 = vsub.f32 %v1947_v45, %v4909_v3  ;;  %v1950_v39 = vadd.f32 %v4565_v48, %v1949_v44  ;;  %5576 = vst [vmem:[#allocation15_spill] sm:$0xff] %v4940_v26 }
 0x30a   : > { %2061 = vst.msk [vmem:[%s4572_s23 + $0x198] sm:$0xff] %vm2009_vm1, %v1958_v52  ;;  %v2189_v27 = vsub.f32 %v1958_v52, %v4916_v51  ;;  %2399 = vadd.xlane.f32.xlu0 %v2398_v12  ;;  %v2252_v61 = vmul.f32 %v2188_v37, %v2188_v37  ;;  %v4943_v12 = vld [vmem:[%s4259_s15 + $0x1b0] sm:$0xff]  ;;  %5584 = vst [vmem:[#allocation23_spill] sm:$0xff] %v5015_v29 }
 0x30b   : > { %2059 = vst.msk [vmem:[%s4572_s23 + $0x188] sm:$0xff] %vm2009_vm1, %v1950_v39  ;;  %v2187_v9 = vsub.f32 %v1950_v39, %v4924_v46  ;;  %2402 = vadd.xlane.f32.xlu1 %v2401_v54  ;;  %v2250_v59 = vmul.f32 %v2186_v38, %v2186_v38  ;;  %v4947_v54 = vld [vmem:[%s4259_s15 + $0x1a0] sm:$0xff] }
 0x30c   : > { %v2253_v6 = vmul.f32 %v2189_v27, %v2189_v27  ;;  %v2416_v45 = vsel %vm2009_vm1, %v2252_v61, 0.0 }
 0x30d   : > { %v2251_v44 = vmul.f32 %v2187_v9, %v2187_v9  ;;  %v3855_v52 = vpop.f32.mrb[84].mxu0  ;;  %v2410_v9 = vsel %vm2009_vm1, %v2250_v59, 0.0  ;;  %v4967_v59 = vpop.permute.xlu1 %3025 }
 0x30e   : > { %v1971_v37 = vadd.f32 %v3855_v52, %v4565_v48  ;;  %v1962_v39 = vpop.f32.mrb[85].mxu0  ;;  %v2419_v38 = vsel %vm2009_vm1, %v2253_v6, 0.0  ;;  %2417 = vadd.xlane.f32.xlu0 %v2416_v45  ;;  %5577 = vst [vmem:[#allocation16_spill] sm:$0xff] %v4967_v59 }
 0x30f   : > { %v1963_v27 = vadd.f32 %v4565_v48, %v1962_v39  ;;  %v3856_v61 = vpop.f32.mrb[86].mxu0  ;;  %2420 = vadd.xlane.f32.xlu1 %v2419_v38  ;;  %v2413_v6 = vsel %vm2009_vm1, %v2251_v44, 0.0 }
 0x310   : > { %2064 = vst.msk [vmem:[%s4572_s23 + $0x1b0] sm:$0xff] %vm2009_vm1, %v1971_v37  ;;  %v2192_v52 = vsub.f32 %v1971_v37, %v4943_v12  ;;  %v1974_v26 = vadd.f32 %v3856_v61, %v4565_v48  ;;  %v1965_v40 = vpop.f32.mrb[87].mxu0  ;;  %v4972_v61 = vpop.permute.xlu0 %3055 }
 0x311   : > { %2062 = vst.msk [vmem:[%s4572_s23 + $0x1a0] sm:$0xff] %vm2009_vm1, %v1963_v27  ;;  %v2190_v45 = vsub.f32 %v1963_v27, %v4947_v54  ;;  %v1966_v39 = vadd.f32 %v4565_v48, %v1965_v40  ;;  %5578 = vst [vmem:[#allocation17_spill] sm:$0xff] %v4972_v61 }
 0x312   : > { %2065 = vst.msk [vmem:[%s4572_s23 + $0x1b8] sm:$0xff] %vm2009_vm1, %v1974_v26  ;;  %v2193_v37 = vsub.f32 %v1974_v26, %v4952_v35  ;;  %2411 = vadd.xlane.f32.xlu0 %v2410_v9  ;;  %v2256_v38 = vmul.f32 %v2192_v52, %v2192_v52  ;;  %v4983_v52 = vld [vmem:[%s4259_s15 + $0x1c0] sm:$0xff] }
 0x313   : > { %2063 = vst.msk [vmem:[%s4572_s23 + $0x1a8] sm:$0xff] %vm2009_vm1, %v1966_v39  ;;  %v2191_v44 = vsub.f32 %v1966_v39, %v4960_v17  ;;  %2414 = vadd.xlane.f32.xlu1 %v2413_v6  ;;  %v2254_v27 = vmul.f32 %v2190_v45, %v2190_v45  ;;  %v4988_v39 = vld [vmem:[%s4259_s15 + $0x1d8] sm:$0xff] }
 0x314   : > { %v2257_v5 = vmul.f32 %v2193_v37, %v2193_v37  ;;  %v2428_v40 = vsel %vm2009_vm1, %v2256_v38, 0.0  ;;  %5580 = vst [vmem:[#allocation19_spill] sm:$0xff] %v4988_v39  ;;  %v4991_v38 = vpop.permute.xlu1 %3027  ;;  %v5001_v59 = vpop.permute.xlu0 %3057 }
 0x315   : > { %v2255_v42 = vmul.f32 %v2191_v44, %v2191_v44  ;;  %v3859_v4 = vpop.f32.mrb[88].mxu0  ;;  %v2422_v37 = vsel %vm2009_vm1, %v2254_v27, 0.0  ;;  %5581 = vst [vmem:[#allocation20_spill] sm:$0xff] %v4991_v38  ;;  %5583 = vst [vmem:[#allocation22_spill] sm:$0xff] %v5001_v59 }
 0x316   : > { %v1987_v26 = vadd.f32 %v3859_v4, %v4565_v48  ;;  %v1978_v9 = vpop.f32.mrb[89].mxu0  ;;  %v2431_v61 = vsel %vm2009_vm1, %v2257_v5, 0.0  ;;  %2429 = vadd.xlane.f32.xlu0 %v2428_v40  ;;  %v4998_v40 = vld [vmem:[%s4259_s15 + $0x1c8] sm:$0xff] }
 0x317   : > { %v1979_v6 = vadd.f32 %v4565_v48, %v1978_v9  ;;  %v3860_v45 = vpop.f32.mrb[90].mxu0  ;;  %2432 = vadd.xlane.f32.xlu1 %v2431_v61  ;;  %5582 = vst [vmem:[#allocation21_spill] sm:$0xff] %v4998_v40  ;;  %v2425_v9 = vsel %vm2009_vm1, %v2255_v42, 0.0 }
 0x318   : > { %2068 = vst.msk [vmem:[%s4572_s23 + $0x1d0] sm:$0xff] %vm2009_vm1, %v1987_v26  ;;  %v2196_v4 = vsub.f32 %v1987_v26, %v4979_v30  ;;  %v1990_v44 = vadd.f32 %v3860_v45, %v4565_v48  ;;  %v1981_v5 = vpop.f32.mrb[91].mxu0  ;;  %v5017_v1 = vpop.permute.xlu1 %3031 }
 0x319   : > { %2066 = vst.msk [vmem:[%s4572_s23 + $0x1c0] sm:$0xff] %vm2009_vm1, %v1979_v6  ;;  %v2194_v61 = vsub.f32 %v1979_v6, %v4983_v52  ;;  %v1982_v27 = vadd.f32 %v4565_v48, %v1981_v5  ;;  %5585 = vst [vmem:[#allocation24_spill] sm:$0xff] %v5017_v1 }
 0x31a   : > { %2069 = vst.msk [vmem:[%s4572_s23 + $0x1d8] sm:$0xff] %vm2009_vm1, %v1990_v44  ;;  %v2197_v26 = vsub.f32 %v1990_v44, %v4988_v39  ;;  %2423 = vadd.xlane.f32.xlu0 %v2422_v37  ;;  %v2260_v45 = vmul.f32 %v2196_v4, %v2196_v4  ;;  %v5021_v44 = vld [vmem:[%s4259_s15 + $0x1e0] sm:$0xff] }
 0x31b   : > { %2067 = vst.msk [vmem:[%s4572_s23 + $0x1c8] sm:$0xff] %vm2009_vm1, %v1982_v27  ;;  %v2195_v42 = vsub.f32 %v1982_v27, %v4998_v40  ;;  %2426 = vadd.xlane.f32.xlu1 %v2425_v9  ;;  %v2258_v59 = vmul.f32 %v2194_v61, %v2194_v61  ;;  %5586 = vst [vmem:[#allocation25_spill] sm:$0xff] %v5021_v44  ;;  %v5024_v61 = vpop.permute.xlu0 %3059 }
 0x31c   : > { %v2261_v38 = vmul.f32 %v2197_v26, %v2197_v26  ;;  %v2440_v33 = vsel %vm2009_vm1, %v2260_v45, 0.0  ;;  %5587 = vst [vmem:[#allocation26_spill] sm:$0xff] %v5024_v61  ;;  %v5028_v45 = vld [vmem:[%s4259_s15 + $0x1f8] sm:$0xff] }
 0x31d   : > { %v2259_v6 = vmul.f32 %v2195_v42, %v2195_v42  ;;  %v3863_v5 = vpop.f32.mrb[92].mxu0  ;;  %5588 = vst [vmem:[#allocation27_spill] sm:$0xff] %v5028_v45  ;;  %v2434_v42 = vsel %vm2009_vm1, %v2258_v59, 0.0 }
 0x31e   : > { %v2003_v37 = vadd.f32 %v3863_v5, %v4565_v48  ;;  %v1994_v4 = vpop.f32.mrb[93].mxu0  ;;  %v2443_v9 = vsel %vm2009_vm1, %v2261_v38, 0.0  ;;  %2441 = vadd.xlane.f32.xlu0 %v2440_v33  ;;  %v5036_v33 = vld [vmem:[%s4259_s15 + $0x1e8] sm:$0xff] }
 0x31f   : > { %v1995_v27 = vadd.f32 %v4565_v48, %v1994_v4  ;;  %v3864_v26 = vpop.f32.mrb[94].mxu0  ;;  %2444 = vadd.xlane.f32.xlu1 %v2443_v9  ;;  %5589 = vst [vmem:[#allocation28_spill] sm:$0xff] %v5036_v33  ;;  %v2437_v61 = vsel %vm2009_vm1, %v2259_v6, 0.0 }
 0x320   : > { %2072 = vst.msk [vmem:[%s4572_s23 + $0x1f0] sm:$0xff] %vm2009_vm1, %v2003_v37  ;;  %v2200_v5 = vsub.f32 %v2003_v37, %v5015_v29  ;;  %v2006_v1 = vadd.f32 %v3864_v26, %v4565_v48  ;;  %v1997_v38 = vpop.f32.mrb[95].mxu0  ;;  %v5049_v26 = vpop.permute.xlu1 %3033 }
 0x321   : > { %2070 = vst.msk [vmem:[%s4572_s23 + $0x1e0] sm:$0xff] %vm2009_vm1, %v1995_v27  ;;  %v2198_v4 = vsub.f32 %v1995_v27, %v5021_v44  ;;  %v1998_v39 = vadd.f32 %v4565_v48, %v1997_v38  ;;  %5590 = vst [vmem:[#allocation29_spill] sm:$0xff] %v5049_v26  ;;  %v5052_v27 = vpop.permute.xlu0 %3061 }
 0x322   : > { %v2264_v9 = vmul.f32 %v2200_v5, %v2200_v5  ;;  %2073 = vst.msk [vmem:[%s4572_s23 + $0x1f8] sm:$0xff] %vm2009_vm1, %v2006_v1  ;;  %v2201_v59 = vsub.f32 %v2006_v1, %v5028_v45  ;;  %2435 = vadd.xlane.f32.xlu0 %v2434_v42  ;;  %5591 = vst [vmem:[#allocation30_spill] sm:$0xff] %v5052_v27 }
 0x323   : > { %2071 = vst.msk [vmem:[%s4572_s23 + $0x1e8] sm:$0xff] %vm2009_vm1, %v1998_v39  ;;  %v2199_v37 = vsub.f32 %v1998_v39, %v5036_v33  ;;  %2438 = vadd.xlane.f32.xlu1 %v2437_v61  ;;  %v2262_v6 = vmul.f32 %v2198_v4, %v2198_v4 }
 0x324   : > { %v2452_v29 = vsel %vm2009_vm1, %v2264_v9, 0.0  ;;  %v2265_v47 = vmul.f32 %v2201_v59, %v2201_v59  ;;  %v5057_v61 = vpop.permute.xlu1 %3035 }
 0x325   : > { %v2263_v48 = vmul.f32 %v2199_v37, %v2199_v37  ;;  %v2446_v1 = vsel %vm2009_vm1, %v2262_v6, 0.0  ;;  %5592 = vst [vmem:[#allocation31_spill] sm:$0xff] %v5057_v61  ;;  %v5059_v42 = vpop.permute.xlu0 %3063  ;;  %v3932_v37 = vld [vmem:[%s4259_s15 + $0x10] sm:$0xff] }
 0x326   : > { %v2455_v5 = vsel %vm2009_vm1, %v2265_v47, 0.0  ;;  %5593 = vst [vmem:[#allocation32_spill] sm:$0xff] %v5059_v42  ;;  %v3933_v42 = vld [vmem:[%s4259_s15 + $0x8] sm:$0xff] }
 0x327   : > { %2453 = vadd.xlane.f32.xlu1 %v2452_v29  ;;  %2456 = vadd.xlane.f32.xlu0 %v2455_v5  ;;  %v2449_v39 = vsel %vm2009_vm1, %v2263_v48, 0.0 }
 0x328   : > { %v5061_v38 = vpop.permute.xlu1 %3037 }
 0x329   : > { %5594 = vst [vmem:[#allocation33_spill] sm:$0xff] %v5061_v38  ;;  %v5063_v4 = vpop.permute.xlu0 %3065 }
 0x32a   : > { %5595 = vst [vmem:[#allocation34_spill] sm:$0xff] %v5063_v4 }
 0x32b   : > { %2447 = vadd.xlane.f32.xlu1 %v2446_v1  ;;  %2450 = vadd.xlane.f32.xlu0 %v2449_v39  ;;  %v3934_v39 = vld [vmem:[%s4259_s15] sm:$0xff] }
 0x32c   : > { %v5065_v9 = vpop.permute.xlu1 %3039 }
 0x32d   : > { %5596 = vst [vmem:[#allocation35_spill] sm:$0xff] %v5065_v9  ;;  %v5067_v47 = vpop.permute.xlu0 %3067 }
 0x32e   : > { %5597 = vst [vmem:[#allocation36_spill] sm:$0xff] %v5067_v47  ;;  %v3935_v47 = vld [vmem:[%s4259_s15 + $0x18] sm:$0xff] }
 0x33a   : > { %v2274_v29 = vpop.xlane.xlu1 %2273 }
 0x33b   : > { %v2268_v59 = vpop.xlane.xlu0 %2267  ;;  %v2460_v6 = vmul.f32 %v3932_v37, %v2274_v29 }
 0x33c   : > { %v2458_v4 = vmul.f32 %v3934_v39, %v2268_v59  ;;  %v3937_v59 = vld [vmem:[%s4259_s15 + $0x20] sm:$0xff] }
 0x33e   : > { %v2277_v5 = vpop.xlane.xlu1 %2276 }
 0x33f   : > { %v2271_v48 = vpop.xlane.xlu0 %2270  ;;  %v2461_v38 = vmul.f32 %v3935_v47, %v2277_v5 }
 0x340   : > { %v2459_v1 = vmul.f32 %v3933_v42, %v2271_v48  ;;  %v3936_v42 = vld [vmem:[%s4259_s15 + $0x30] sm:$0xff] }
 0x341   : > { %2590 = vrot.lane.b32.xlu0 %v2460_v6, %s3973_s16 }
 0x342   : > { %2588 = vrot.lane.b32.xlu1 %v2459_v1, %s3973_s16 }
 0x343   : > { %v2286_v27 = vpop.xlane.xlu0 %2285 }
 0x344   : > { %v2289_v9 = vpop.xlane.xlu1 %2288  ;;  %v2464_v48 = vmul.f32 %v3936_v42, %v2286_v27  ;;  %v3939_v27 = vld [vmem:[%s4259_s15 + $0x28] sm:$0xff] }
 0x345   : > { %2586 = vrot.lane.b32.xlu0 %v2458_v4, %s3973_s16  ;;  %v3938_v4 = vld [vmem:[%s4259_s15 + $0x38] sm:$0xff] }
 0x346   : > { %v2465_v47 = vmul.f32 %v3938_v4, %v2289_v9  ;;  %v3942_v9 = vld [vmem:[%s4259_s15 + $0x40] sm:$0xff] }
 0x347   : > { %v2280_v29 = vpop.xlane.xlu0 %2279 }
 0x348   : > { %v2283_v37 = vpop.xlane.xlu1 %2282  ;;  %v2462_v1 = vmul.f32 %v3937_v59, %v2280_v29  ;;  %v3940_v29 = vld [vmem:[%s4259_s15 + $0x50] sm:$0xff] }
 0x349   : > { %2592 = vrot.lane.b32.xlu0 %v2461_v38, %s3973_s16  ;;  %v2463_v42 = vmul.f32 %v3939_v27, %v2283_v37  ;;  %v3943_v27 = vld [vmem:[%s4259_s15 + $0x58] sm:$0xff] }
 0x34b   : > { %v2298_v6 = vpop.xlane.xlu0 %2297 }
 0x34c   : > { %v2301_v61 = vpop.xlane.xlu1 %2300  ;;  %v2468_v59 = vmul.f32 %v3940_v29, %v2298_v6 }
 0x34d   : > { %2598 = vrot.lane.b32.xlu0 %v2464_v48, %s3973_s16  ;;  %v2469_v6 = vmul.f32 %v3943_v27, %v2301_v61 }
 0x34f   : > { %v2292_v39 = vpop.xlane.xlu0 %2291 }
 0x350   : > { %v2295_v26 = vpop.xlane.xlu1 %2294  ;;  %v2466_v4 = vmul.f32 %v3942_v9, %v2292_v39 }
 0x351   : > { %2594 = vrot.lane.b32.xlu0 %v2462_v1, %s3973_s16  ;;  %v3941_v1 = vld [vmem:[%s4259_s15 + $0x98] sm:$0xff] }
 0x353   : > { %v2310_v5 = vpop.xlane.xlu0 %2309 }
 0x354   : > { %v2313_v38 = vpop.xlane.xlu1 %2312 }
 0x355   : > { %2600 = vrot.lane.b32.xlu0 %v2465_v47, %s3973_s16 }
 0x357   : > { %v2304_v45 = vpop.xlane.xlu0 %2303 }
 0x358   : > { %v2307_v48 = vpop.xlane.xlu1 %2306 }
 0x359   : > { %2596 = vrot.lane.b32.xlu0 %v2463_v42, %s3973_s16 }
 0x35b   : > { %v2322_v33 = vpop.xlane.xlu0 %2321 }
 0x35c   : > { %v2325_v44 = vpop.xlane.xlu1 %2324 }
 0x35d   : > { %v2477_v30 = vmul.f32 %v3941_v1, %v2325_v44  ;;  %2606 = vrot.lane.b32.xlu0 %v2468_v59, %s3973_s16  ;;  %v3944_v44 = vld [vmem:[%s4259_s15 + $0x48] sm:$0xff] }
 0x35e   : > { %v2467_v59 = vmul.f32 %v3944_v44, %v2295_v26  ;;  %v3945_v1 = vld [vmem:[%s4259_s15 + $0xa8] sm:$0xff]  ;;  %v3948_v26 = vld [vmem:[%s4259_s15 + $0x60] sm:$0xff] }
 0x35f   : > { %2624 = vrot.lane.b32.xlu1 %v2477_v30, %s3973_s16  ;;  %v2316_v37 = vpop.xlane.xlu0 %2315  ;;  %v2470_v44 = vmul.f32 %v3948_v26, %v2304_v45 }
 0x360   : > { %v2319_v47 = vpop.xlane.xlu1 %2318 }
 0x361   : > { %2602 = vrot.lane.b32.xlu0 %v2466_v4, %s3973_s16  ;;  %v3946_v4 = vld [vmem:[%s4259_s15 + $0x70] sm:$0xff] }
 0x362   : > { %v2472_v61 = vmul.f32 %v3946_v4, %v2310_v5  ;;  %v3950_v5 = vld [vmem:[%s4259_s15 + $0x78] sm:$0xff] }
 0x363   : > { %v5092_v42 = vpop.xlane.xlu0 %2333 }
 0x364   : > { %v5094_v29 = vpop.xlane.xlu1 %2336 }
 0x365   : > { %2608 = vrot.lane.b32.xlu0 %v2469_v6, %s3973_s16 }
 0x367   : > { %v5098_v39 = vpop.xlane.xlu0 %2327 }
 0x368   : > { %v2331_v30 = vpop.xlane.xlu1 %2330 }
 0x369   : > { %v2479_v9 = vmul.f32 %v3945_v1, %v2331_v30  ;;  %2604 = vrot.lane.b32.xlu0 %v2467_v59, %s3973_s16  ;;  %v3949_v1 = vld [vmem:[%s4259_s15 + $0xc0] sm:$0xff] }
 0x36b   : > { %2628 = vrot.lane.b32.xlu1 %v2479_v9, %s3973_s16  ;;  %v2346_v27 = vpop.xlane.xlu0 %2345 }
 0x36c   : > { %v2484_v40 = vmul.f32 %v3947_v21, %v2346_v27  ;;  %v2349_v6 = vpop.xlane.xlu1 %2348  ;;  %v2473_v21 = vmul.f32 %v3950_v5, %v2313_v38  ;;  %v3954_v38 = vld [vmem:[%s4259_s15 + $0x90] sm:$0xff] }
 0x36d   : > { %2614 = vrot.lane.b32.xlu0 %v2472_v61, %s3973_s16  ;;  %v3951_v61 = vld [vmem:[%s4259_s15 + $0xd8] sm:$0xff] }
 0x36e   : > { %v2485_v27 = vmul.f32 %v3951_v61, %v2349_v6 }
 0x36f   : > { %2638 = vrot.lane.b32.xlu1 %v2484_v40, %s3973_s16  ;;  %v2340_v30 = vpop.xlane.xlu0 %2339  ;;  %v3952_v40 = vld [vmem:[%s4259_s15 + $0x68] sm:$0xff] }
 0x370   : > { %v2482_v59 = vmul.f32 %v3949_v1, %v2340_v30  ;;  %v5109_v41 = vpop.xlane.xlu1 %2342  ;;  %v2471_v45 = vmul.f32 %v3952_v40, %v2307_v48  ;;  %v3955_v48 = vld [vmem:[%s4259_s15 + $0x80] sm:$0xff]  ;;  %v3956_v40 = vld [vmem:[%s4259_s15 + $0xe8] sm:$0xff] }
 0x371   : > { %2610 = vrot.lane.b32.xlu0 %v2470_v44, %s3973_s16  ;;  %v3953_v44 = vld [vmem:[%s4259_s15 + $0xf0] sm:$0xff]  ;;  %v2474_v61 = vmul.f32 %v3955_v48, %v2316_v37 }
 0x372   : > { %v3958_v37 = vld [vmem:[%s4259_s15 + $0xb0] sm:$0xff] }
 0x373   : > { %2634 = vrot.lane.b32.xlu1 %v2482_v59, %s3973_s16  ;;  %v2358_v9 = vpop.xlane.xlu0 %2357  ;;  %v2476_v59 = vmul.f32 %v3954_v38, %v2322_v33  ;;  %v3957_v33 = vld [vmem:[%s4259_s15 + $0x88] sm:$0xff]  ;;  %v2480_v38 = vmul.f32 %v3958_v37, %v5092_v42  ;;  %v3171_v42 = vsel %vm2778_vm2, %v4554_v13, 0.0  ;;  %v3960_v13 = vld [vmem:[%s4259_s15 + $0xb8] sm:$0xff] }
 0x374   : > { %v2361_v4 = vpop.xlane.xlu1 %2360  ;;  %v2488_v1 = vmul.f32 %v3953_v44, %v2358_v9  ;;  %v2475_v44 = vmul.f32 %v3957_v33, %v2319_v47  ;;  %v3959_v47 = vld [vmem:[%s4259_s15 + $0xa0] sm:$0xff] }
 0x375   : > { %2616 = vrot.lane.b32.xlu0 %v2473_v21, %s3973_s16  ;;  %v2489_v21 = vmul.f32 %v4750_v53, %v2361_v4  ;;  %v2478_v48 = vmul.f32 %v3959_v47, %v5098_v39 }
 0x377   : > { %2640 = vrot.lane.b32.xlu1 %v2485_v27, %s3973_s16  ;;  %v5118_v26 = vpop.xlane.xlu0 %2351 }
 0x378   : > { %v2355_v30 = vpop.xlane.xlu1 %2354 }
 0x379   : > { %2612 = vrot.lane.b32.xlu0 %v2471_v45, %s3973_s16  ;;  %v2487_v45 = vmul.f32 %v3956_v40, %v2355_v30 }
 0x37b   : > { %2646 = vrot.lane.b32.xlu1 %v2488_v1, %s3973_s16  ;;  %v2370_v6 = vpop.xlane.xlu0 %2369 }
 0x37c   : > { %v2373_v5 = vpop.xlane.xlu1 %2372  ;;  %v2492_v4 = vmul.f32 %v4768_v36, %v2370_v6 }
 0x37d   : > { %2622 = vrot.lane.b32.xlu0 %v2476_v59, %s3973_s16 }
 0x37f   : > { %2648 = vrot.lane.b32.xlu1 %v2489_v21, %s3973_s16  ;;  %v2364_v27 = vpop.xlane.xlu0 %2363 }
 0x380   : > { %v2367_v9 = vpop.xlane.xlu1 %2366  ;;  %v2490_v21 = vmul.f32 %v4777_v60, %v2364_v27  ;;  %v2493_v60 = vmul.f32 %v4785_v28, %v2373_v5 }
 0x381   : > { %2618 = vrot.lane.b32.xlu0 %v2474_v61, %s3973_s16  ;;  %v3172_v61 = vsel %vm2778_vm2, %v4556_v31, 0.0  ;;  %v2491_v33 = vmul.f32 %v4792_v8, %v2367_v9  ;;  %v2481_v31 = vmul.f32 %v3960_v13, %v5094_v29  ;;  %v3961_v8 = vld [vmem:[%s4259_s15 + $0xc8] sm:$0xff] }
 0x382   : > { %v3173_v39 = vadd.f32 %v3172_v61, %v3171_v42  ;;  %v2483_v9 = vmul.f32 %v3961_v8, %v5109_v41 }
 0x383   : > { %2644 = vrot.lane.b32.xlu1 %v2487_v45, %s3973_s16  ;;  %v2382_v1 = vpop.xlane.xlu0 %2381  ;;  %v3174_v45 = vsel %vm2778_vm2, %v4558_v14, 0.0 }
 0x384   : > { %v2385_v53 = vpop.xlane.xlu1 %2384  ;;  %v3175_v5 = vadd.f32 %v3174_v45, %v3173_v39  ;;  %v2496_v14 = vmul.f32 %v4806_v49, %v2382_v1  ;;  %v3963_v39 = vld [vmem:[%s4259_s15 + $0x150] sm:$0xff] }
 0x385   : > { %2620 = vrot.lane.b32.xlu0 %v2475_v44, %s3973_s16  ;;  %v2497_v42 = vmul.f32 %v4821_v58, %v2385_v53 }
 0x387   : > { %2654 = vrot.lane.b32.xlu1 %v2492_v4, %s3973_s16  ;;  %v2376_v59 = vpop.xlane.xlu0 %2375  ;;  %v3176_v4 = vsel %vm2778_vm2, %v4560_v15, 0.0  ;;  %v3962_v15 = vld [vmem:[%s4259_s15 + $0xe0] sm:$0xff] }
 0x388   : > { %v2379_v30 = vpop.xlane.xlu1 %2378  ;;  %v3177_v37 = vadd.f32 %v3176_v4, %v3175_v5  ;;  %v2494_v47 = vmul.f32 %v4813_v63, %v2376_v59  ;;  %v2486_v49 = vmul.f32 %v3962_v15, %v5118_v26  ;;  %v3182_v59 = vsel %vm2778_vm2, %v4608_v23, 0.0  ;;  %v3964_v5 = vld [vmem:[%s4259_s15 + $0x158] sm:$0xff] }
 0x389   : > { %2630 = vrot.lane.b32.xlu0 %v2480_v38, %s3973_s16  ;;  %v2495_v61 = vmul.f32 %v4828_v57, %v2379_v30  ;;  %v3186_v30 = vsel %vm2778_vm2, %v4639_v10, 0.0  ;;  %v3196_v15 = vsel %vm2778_vm2, %v4728_v7, 0.0 }
 0x38b   : > { %2650 = vrot.lane.b32.xlu1 %v2490_v21, %s3973_s16  ;;  %v2394_v36 = vpop.xlane.xlu0 %2393  ;;  %v3178_v21 = vsel %vm2778_vm2, %v4574_v19, 0.0 }
 0x38c   : > { %v5142_v6 = vpop.xlane.xlu1 %2396  ;;  %v3179_v41 = vadd.f32 %v3178_v21, %v3177_v37  ;;  %v2500_v45 = vmul.f32 %v3963_v39, %v2394_v36  ;;  %v3194_v21 = vsel %vm2778_vm2, %v4707_v32, 0.0 }
 0x38d   : > { %2626 = vrot.lane.b32.xlu0 %v2478_v48, %s3973_s16  ;;  %v3180_v48 = vsel %vm2778_vm2, %v4592_v0, 0.0  ;;  %v2501_v4 = vmul.f32 %v3964_v5, %v5142_v6  ;;  %v5602_v5 = vld [vmem:[#allocation10_spill] sm:$0xff] }
 0x38e   : > { %v3181_v26 = vadd.f32 %v3180_v48, %v3179_v41  ;;  %v3200_v48 = vsel %vm2778_vm2, %v4763_v2, 0.0 }
 0x38f   : > { %2656 = vrot.lane.b32.xlu1 %v2493_v60, %s3973_s16  ;;  %v2388_v27 = vpop.xlane.xlu0 %2387  ;;  %v3184_v60 = vsel %vm2778_vm2, %v4620_v24, 0.0 }
 0x390   : > { %v5151_v40 = vpop.xlane.xlu1 %2390  ;;  %v3183_v58 = vadd.f32 %v3182_v59, %v3181_v26  ;;  %v3202_v26 = vsel %vm2778_vm2, %v4796_v16, 0.0 }
 0x391   : > { %3069 = vrot.lane.b32.xlu0 %v4883_v11, %s3973_s16  ;;  %v2499_v8 = vmul.f32 %v4862_v56, %v5151_v40 }
 0x392   : > { %v3185_v57 = vadd.f32 %v3184_v60, %v3183_v58  ;;  %v5599_v60 = vld [vmem:[#allocation21_spill] sm:$0xff] }
 0x393   : > { %2652 = vrot.lane.b32.xlu1 %v2491_v33, %s3973_s16  ;;  %v5161_v28 = vpop.xlane.xlu0 %2405  ;;  %v2498_v33 = vmul.f32 %v4848_v22, %v2388_v27 }
 0x394   : > { %v5163_v44 = vpop.xlane.xlu1 %2408  ;;  %v3187_v36 = vadd.f32 %v3186_v30, %v3185_v57  ;;  %v2504_v37 = vmul.f32 %v5161_v28, %v4867_v62 }
 0x395   : > { %2632 = vrot.lane.b32.xlu0 %v2481_v31, %s3973_s16  ;;  %v3188_v31 = vsel %vm2778_vm2, %v4660_v55, 0.0 }
 0x396   : > { %v3189_v22 = vadd.f32 %v3188_v31, %v3187_v36 }
 0x397   : > { %2662 = vrot.lane.b32.xlu1 %v2496_v14, %s3973_s16  ;;  %v2400_v29 = vpop.xlane.xlu0 %2399  ;;  %v3190_v14 = vsel %vm2778_vm2, %v4675_v18, 0.0 }
 0x398   : > { %v5172_v38 = vpop.xlane.xlu1 %2402  ;;  %v3191_v55 = vadd.f32 %v3190_v14, %v3189_v22 }
 0x399   : > { %2636 = vrot.lane.b32.xlu0 %v2483_v9, %s3973_s16  ;;  %v3192_v9 = vsel %vm2778_vm2, %v4688_v34, 0.0  ;;  %v2503_v41 = vmul.f32 %v5172_v38, %v4883_v11 }
 0x39a   : > { %v3193_v56 = vadd.f32 %v3192_v9, %v3191_v55 }
 0x39b   : > { %2658 = vrot.lane.b32.xlu1 %v2494_v47, %s3973_s16  ;;  %v5181_v1 = vpop.xlane.xlu0 %2417  ;;  %v2502_v47 = vmul.f32 %v4891_v20, %v2400_v29  ;;  %v3198_v29 = vsel %vm2778_vm2, %v4745_v50, 0.0 }
 0x39c   : > { %v5187_v19 = vpop.xlane.xlu1 %2420  ;;  %v3195_v34 = vadd.f32 %v3194_v21, %v3193_v56 }
 0x39d   : > { %2642 = vrot.lane.b32.xlu0 %v2486_v49, %s3973_s16  ;;  %v2505_v49 = vmul.f32 %v5163_v44, %v4873_v25  ;;  %v2509_v58 = vmul.f32 %v5187_v19, %v4916_v51 }
 0x39e   : > { %v3197_v32 = vadd.f32 %v3196_v15, %v3195_v34 }
 0x39f   : > { %2664 = vrot.lane.b32.xlu1 %v2497_v42, %s3973_s16  ;;  %v5190_v63 = vpop.xlane.xlu0 %2411  ;;  %v2508_v42 = vmul.f32 %v5181_v1, %v4903_v43  ;;  %v5598_v1 = vld [vmem:[#allocation6_spill] sm:$0xff] }
 0x3a0   : > { %v5200_v53 = vpop.xlane.xlu1 %2414  ;;  %v2506_v59 = vmul.f32 %v5190_v63, %v4909_v3 }
 0x3a1   : > { %3071 = vrot.lane.b32.xlu0 %v4867_v62, %s3973_s16  ;;  %v2507_v30 = vmul.f32 %v5200_v53, %v4924_v46 }
 0x3a3   : > { %2660 = vrot.lane.b32.xlu1 %v2495_v61, %s3973_s16  ;;  %v5198_v0 = vpop.xlane.xlu0 %2429  ;;  %v3204_v61 = vsel %vm2778_vm2, %v5598_v1, 0.0 }
 0x3a4   : > { %v5215_v13 = vpop.xlane.xlu1 %2432  ;;  %v2512_v22 = vmul.f32 %v5198_v0, %v4943_v12 }
 0x3a5   : > { %3073 = vrot.lane.b32.xlu0 %v4873_v25, %s3973_s16  ;;  %v3199_v25 = vadd.f32 %v3198_v29, %v3197_v32 }
 0x3a7   : > { %2670 = vrot.lane.b32.xlu1 %v2500_v45, %s3973_s16  ;;  %v5208_v23 = vpop.xlane.xlu0 %2423  ;;  %v3201_v50 = vadd.f32 %v3200_v48, %v3199_v25  ;;  %v5600_v45 = vld [vmem:[#allocation8_spill] sm:$0xff] }
 0x3a8   : > { %v5229_v27 = vpop.xlane.xlu1 %2426  ;;  %v3206_v57 = vsel %vm2778_vm2, %v5600_v45, 0.0  ;;  %v2510_v21 = vmul.f32 %v5208_v23, %v4947_v54 }
 0x3a9   : > { %3075 = vrot.lane.b32.xlu0 %v4909_v3, %s3973_s16  ;;  %v3203_v2 = vadd.f32 %v3202_v26, %v3201_v50  ;;  %v2511_v26 = vmul.f32 %v5229_v27, %v4960_v17 }
 0x3ab   : > { %2666 = vrot.lane.b32.xlu1 %v2498_v33, %s3973_s16  ;;  %v5218_v24 = vpop.xlane.xlu0 %2441  ;;  %v3205_v3 = vadd.f32 %v3204_v61, %v3203_v2  ;;  %v5610_v61 = vld [vmem:[#allocation16_spill] sm:$0xff] }
 0x3ac   : > { %v5246_v18 = vpop.xlane.xlu1 %2444 }
 0x3ad   : > { %3077 = vrot.lane.b32.xlu0 %v4924_v46, %s3973_s16  ;;  %v3207_v36 = vadd.f32 %v3206_v57, %v3205_v3  ;;  %v5603_v46 = vld [vmem:[#allocation19_spill] sm:$0xff] }
 0x3af   : > { %2672 = vrot.lane.b32.xlu1 %v2501_v4, %s3973_s16  ;;  %v5227_v10 = vpop.xlane.xlu0 %2435  ;;  %v3208_v4 = vsel %vm2778_vm2, %v5602_v5, 0.0 }
 0x3b0   : > { %v5257_v62 = vpop.xlane.xlu1 %2438  ;;  %v3209_v55 = vadd.f32 %v3208_v4, %v3207_v36  ;;  %v5613_v4 = vld [vmem:[#allocation3_spill] sm:$0xff] }
 0x3b1   : > { %3079 = vrot.lane.b32.xlu0 %v4903_v43, %s3973_s16 }
 0x3b3   : > { %2668 = vrot.lane.b32.xlu1 %v2499_v8, %s3973_s16 }
 0x3b4   : > { %v5238_v6 = vpop.xlane.xlu0 %2456  ;;  %v5272_v7 = vpop.xlane.xlu1 %2453 }
 0x3b5   : > { %3081 = vrot.lane.b32.xlu0 %v4916_v51, %s3973_s16  ;;  %v5601_v51 = vld [vmem:[#allocation18_spill] sm:$0xff] }
 0x3b7   : > { %2678 = vrot.lane.b32.xlu1 %v2504_v37, %s3973_s16  ;;  %v5604_v37 = vld [vmem:[#allocation12_spill] sm:$0xff] }
 0x3b8   : > { %v5249_v40 = vpop.xlane.xlu0 %2450  ;;  %v5282_v11 = vpop.xlane.xlu1 %2447  ;;  %v3210_v56 = vsel %vm2778_vm2, %v5604_v37, 0.0  ;;  %v5614_v37 = vld [vmem:[#allocation24_spill] sm:$0xff] }
 0x3b9   : > { %3083 = vrot.lane.b32.xlu0 %v4947_v54, %s3973_s16  ;;  %v3211_v15 = vadd.f32 %v3210_v56, %v3209_v55  ;;  %v2513_v54 = vmul.f32 %v5215_v13, %v4952_v35  ;;  %v3222_v56 = vsel %vm2778_vm2, %v5614_v37, 0.0 }
 0x3bb   : > { %2674 = vrot.lane.b32.xlu1 %v2502_v47, %s3973_s16  ;;  %v5605_v47 = vld [vmem:[#allocation25_spill] sm:$0xff] }
 0x3bc   : > { %v2591_v28 = vpop.permute.xlu0 %2590  ;;  %v2589_v16 = vpop.permute.xlu1 %2588 }
 0x3bd   : > { %3085 = vrot.lane.b32.xlu0 %v4960_v17, %s3973_s16  ;;  %v2780_v33 = vsel %vm2778_vm2, %v2589_v16, 0.0  ;;  %v2782_v14 = vsel %vm2778_vm2, %v2591_v28, 0.0  ;;  %v2516_v16 = vmul.f32 %v5218_v24, %v5601_v51 }
 0x3bf   : > { %2680 = vrot.lane.b32.xlu1 %v2505_v49, %s3973_s16 }
 0x3c0   : > { %v2587_v20 = vpop.permute.xlu0 %2586 }
 0x3c1   : > { %3087 = vrot.lane.b32.xlu0 %v4943_v12, %s3973_s16  ;;  %v2779_v39 = vsel %vm2778_vm2, %v2587_v20, 0.0  ;;  %v5606_v20 = vld [vmem:[#allocation14_spill] sm:$0xff] }
 0x3c2   : > { %v2781_v19 = vadd.f32 %v2780_v33, %v2779_v39  ;;  %v3212_v29 = vsel %vm2778_vm2, %v5606_v20, 0.0  ;;  %v5611_v39 = vld [vmem:[#allocation27_spill] sm:$0xff] }
 0x3c3   : > { %2676 = vrot.lane.b32.xlu1 %v2503_v41, %s3973_s16  ;;  %v5607_v41 = vld [vmem:[#allocation28_spill] sm:$0xff] }
 0x3c4   : > { %v2593_v44 = vpop.permute.xlu0 %2592  ;;  %v2783_v53 = vadd.f32 %v2782_v14, %v2781_v19  ;;  %v5612_v19 = vld [vmem:[#allocation20_spill] sm:$0xff]  ;;  %v2517_v14 = vmul.f32 %v5246_v18, %v5603_v46 }
 0x3c5   : > { %3089 = vrot.lane.b32.xlu0 %v4952_v35, %s3973_s16  ;;  %v2784_v8 = vsel %vm2778_vm2, %v2593_v44, 0.0  ;;  %v3213_v44 = vadd.f32 %v3212_v29, %v3211_v15  ;;  %v5609_v35 = vld [vmem:[#allocation23_spill] sm:$0xff]  ;;  %v3218_v24 = vsel %vm2778_vm2, %v5612_v19, 0.0 }
 0x3c6   : > { %v2785_v34 = vadd.f32 %v2784_v8, %v2783_v53  ;;  %v2520_v20 = vmul.f32 %v5272_v7, %v5609_v35 }
 0x3c7   : > { %2686 = vrot.lane.b32.xlu1 %v2508_v42, %s3973_s16  ;;  %v5608_v42 = vld [vmem:[#allocation2_spill] sm:$0xff] }
 0x3c8   : > { %v2599_v38 = vpop.permute.xlu0 %2598  ;;  %v3214_v50 = vsel %vm2778_vm2, %v5608_v42, 0.0  ;;  %v2518_v42 = vmul.f32 %v5282_v11, %v5605_v47 }
 0x3c9   : > { %3091 = vrot.lane.b32.xlu0 %v4983_v52, %s3973_s16 }
 0x3cb   : > { %2682 = vrot.lane.b32.xlu1 %v2506_v59, %s3973_s16  ;;  %v2790_v59 = vsel %vm2778_vm2, %v2599_v38, 0.0 }
 0x3cc   : > { %v2595_v43 = vpop.permute.xlu0 %2594 }
 0x3cd   : > { %3093 = vrot.lane.b32.xlu0 %v5599_v60, %s3973_s16  ;;  %v2786_v12 = vsel %vm2778_vm2, %v2595_v43, 0.0  ;;  %v3215_v43 = vadd.f32 %v3214_v50, %v3213_v44  ;;  %v5616_v44 = vld [vmem:[#allocation31_spill] sm:$0xff] }
 0x3ce   : > { %v2787_v49 = vadd.f32 %v2786_v12, %v2785_v34 }
 0x3cf   : > { %2688 = vrot.lane.b32.xlu1 %v2509_v58, %s3973_s16  ;;  %v3216_v58 = vsel %vm2778_vm2, %v5610_v61, 0.0 }
 0x3d0   : > { %v2601_v63 = vpop.permute.xlu0 %2600  ;;  %v3217_v57 = vadd.f32 %v3216_v58, %v3215_v43 }
 0x3d1   : > { %3095 = vrot.lane.b32.xlu0 %v5601_v51, %s3973_s16  ;;  %v5321_v0 = vpop.permute.xlu1 %2624  ;;  %v2792_v17 = vsel %vm2778_vm2, %v2601_v63, 0.0  ;;  %v2514_v63 = vmul.f32 %v5227_v10, %v4983_v52 }
 0x3d3   : > { %2684 = vrot.lane.b32.xlu1 %v2507_v30, %s3973_s16 }
 0x3d4   : > { %v2597_v31 = vpop.permute.xlu0 %2596 }
 0x3d5   : > { %3097 = vrot.lane.b32.xlu0 %v5603_v46, %s3973_s16  ;;  %v2788_v28 = vsel %vm2778_vm2, %v2597_v31, 0.0  ;;  %v3219_v31 = vadd.f32 %v3218_v24, %v3217_v57  ;;  %v2521_v57 = vmul.f32 %v5238_v6, %v5611_v39 }
 0x3d6   : > { %v2789_v25 = vadd.f32 %v2788_v28, %v2787_v49  ;;  %v5615_v49 = vld [vmem:[#allocation29_spill] sm:$0xff] }
 0x3d7   : > { %2694 = vrot.lane.b32.xlu1 %v2512_v22, %s3973_s16  ;;  %v3220_v22 = vsel %vm2778_vm2, %v5613_v4, 0.0  ;;  %v2816_v4 = vsel %vm2778_vm2, %v5321_v0, 0.0 }
 0x3d8   : > { %v2607_v9 = vpop.permute.xlu0 %2606  ;;  %v2791_v13 = vadd.f32 %v2790_v59, %v2789_v25  ;;  %v3221_v52 = vadd.f32 %v3220_v22, %v3219_v31 }
 0x3d9   : > { %3099 = vrot.lane.b32.xlu0 %v5605_v47, %s3973_s16  ;;  %v2798_v53 = vsel %vm2778_vm2, %v2607_v9, 0.0 }
 0x3da   : > { %v2793_v3 = vadd.f32 %v2792_v17, %v2791_v13  ;;  %v3223_v9 = vadd.f32 %v3222_v56, %v3221_v52  ;;  %v5617_v13 = vld [vmem:[#allocation33_spill] sm:$0xff] }
 0x3db   : > { %2690 = vrot.lane.b32.xlu1 %v2510_v21, %s3973_s16  ;;  %v2515_v21 = vmul.f32 %v5257_v62, %v5599_v60  ;;  %v3228_v43 = vsel %vm2778_vm2, %v5617_v13, 0.0 }
 0x3dc   : > { %v2603_v32 = vpop.permute.xlu0 %2602 }
 0x3dd   : > { %v5331_v23 = vpop.permute.xlu1 %2628  ;;  %3101 = vrot.lane.b32.xlu0 %v5607_v41, %s3973_s16  ;;  %v2794_v27 = vsel %vm2778_vm2, %v2603_v32, 0.0  ;;  %v3224_v32 = vsel %vm2778_vm2, %v5615_v49, 0.0 }
 0x3de   : > { %v2795_v30 = vadd.f32 %v2794_v27, %v2793_v3  ;;  %v5618_v3 = vld [vmem:[#allocation35_spill] sm:$0xff]  ;;  %v2820_v37 = vsel %vm2778_vm2, %v5331_v23, 0.0 }
 0x3df   : > { %2696 = vrot.lane.b32.xlu1 %v2513_v54, %s3973_s16  ;;  %v3225_v54 = vadd.f32 %v3224_v32, %v3223_v9  ;;  %v5622_v32 = vld [vmem:[#allocation9_spill] sm:$0xff] }
 0x3e0   : > { %v2609_v48 = vpop.permute.xlu0 %2608 }
 0x3e1   : > { %v5341_v2 = vpop.permute.xlu1 %2638  ;;  %3103 = vrot.lane.b32.xlu0 %v5609_v35, %s3973_s16  ;;  %v2800_v12 = vsel %vm2778_vm2, %v2609_v48, 0.0  ;;  %v3226_v48 = vsel %vm2778_vm2, %v5616_v44, 0.0 }
 0x3e2   : > { %v3227_v59 = vadd.f32 %v3226_v48, %v3225_v54  ;;  %v2830_v13 = vsel %vm2778_vm2, %v5341_v2, 0.0 }
 0x3e3   : > { %2692 = vrot.lane.b32.xlu1 %v2511_v26, %s3973_s16 }
 0x3e4   : > { %v2605_v1 = vpop.permute.xlu0 %2604 }
 0x3e5   : > { %v5352_v38 = vpop.permute.xlu1 %2634  ;;  %3105 = vrot.lane.b32.xlu0 %v5611_v39, %s3973_s16  ;;  %v2796_v45 = vsel %vm2778_vm2, %v2605_v1, 0.0  ;;  %v2519_v1 = vmul.f32 %v5249_v40, %v5607_v41 }
 0x3e6   : > { %v2797_v36 = vadd.f32 %v2796_v45, %v2795_v30  ;;  %v3230_v45 = vsel %vm2778_vm2, %v5618_v3, 0.0  ;;  %v2826_v54 = vsel %vm2778_vm2, %v5352_v38, 0.0 }
 0x3e7   : > { %2702 = vrot.lane.b32.xlu1 %v2516_v16, %s3973_s16  ;;  %v3229_v16 = vadd.f32 %v3228_v43, %v3227_v59 }
 0x3e8   : > { %v2615_v33 = vpop.permute.xlu0 %2614  ;;  %v2799_v55 = vadd.f32 %v2798_v53, %v2797_v36  ;;  %v5619_v36 = vld [vmem:[#allocation4_spill] sm:$0xff] }
 0x3e9   : > { %v5362_v51 = vpop.permute.xlu1 %2640  ;;  %v2806_v50 = vsel %vm2778_vm2, %v2615_v33, 0.0  ;;  %v3231_v19 = vadd.f32 %v3230_v45, %v3229_v16  ;;  %v3232_v31 = vsel %vm2778_vm2, %v5619_v36, 0.0 }
 0x3ea   : > { %v2801_v46 = vadd.f32 %v2800_v12, %v2799_v55  ;;  %v2832_v38 = vsel %vm2778_vm2, %v5362_v51, 0.0 }
 0x3eb   : > { %2698 = vrot.lane.b32.xlu1 %v2514_v63, %s3973_s16  ;;  %v3233_v6 = vadd.f32 %v3232_v31, %v3231_v19  ;;  %v5626_v31 = vld [vmem:[#allocation17_spill] sm:$0xff] }
 0x3ec   : > { %v2611_v5 = vpop.permute.xlu0 %2610 }
 0x3ed   : > { %v5370_v8 = vpop.permute.xlu1 %2646  ;;  %v2802_v34 = vsel %vm2778_vm2, %v2611_v5, 0.0 }
 0x3ee   : > { %v2803_v28 = vadd.f32 %v2802_v34, %v2801_v46  ;;  %v5621_v34 = vld [vmem:[#allocation7_spill] sm:$0xff] }
 0x3ef   : > { %2704 = vrot.lane.b32.xlu1 %v2517_v14, %s3973_s16  ;;  %v5620_v14 = vld [vmem:[#allocation5_spill] sm:$0xff]  ;;  %v3236_v0 = vsel %vm2778_vm2, %v5621_v34, 0.0 }
 0x3f0   : > { %v2617_v10 = vpop.permute.xlu0 %2616  ;;  %v3234_v53 = vsel %vm2778_vm2, %v5620_v14, 0.0 }
 0x3f1   : > { %v5379_v18 = vpop.permute.xlu1 %2648  ;;  %v2808_v61 = vsel %vm2778_vm2, %v2617_v10, 0.0  ;;  %v3235_v56 = vadd.f32 %v3234_v53, %v3233_v6 }
 0x3f2   : > { %v2840_v6 = vsel %vm2778_vm2, %v5379_v18, 0.0 }
 0x3f3   : > { %2700 = vrot.lane.b32.xlu1 %v2515_v21, %s3973_s16 }
 0x3f4   : > { %v2613_v15 = vpop.permute.xlu0 %2612 }
 0x3f5   : > { %v2804_v62 = vsel %vm2778_vm2, %v2613_v15, 0.0  ;;  %v5387_v60 = vpop.permute.xlu1 %2644 }
 0x3f6   : > { %v2805_v29 = vadd.f32 %v2804_v62, %v2803_v28  ;;  %v3237_v28 = vadd.f32 %v3236_v0, %v3235_v56 }
 0x3f7   : > { %2710 = vrot.lane.b32.xlu1 %v2520_v20, %s3973_s16  ;;  %v3238_v20 = vsel %vm2778_vm2, %v5622_v32, 0.0 }
 0x3f8   : > { %v2623_v25 = vpop.permute.xlu0 %2622  ;;  %v2807_v7 = vadd.f32 %v2806_v50, %v2805_v29 }
 0x3f9   : > { %v5395_v26 = vpop.permute.xlu1 %2654  ;;  %v2814_v33 = vsel %vm2778_vm2, %v2623_v25, 0.0  ;;  %v3239_v25 = vadd.f32 %v3238_v20, %v3237_v28  ;;  %v5628_v28 = vld [vmem:[#allocation26_spill] sm:$0xff] }
 0x3fa   : > { %v2809_v47 = vadd.f32 %v2808_v61, %v2807_v7  ;;  %v2846_v34 = vsel %vm2778_vm2, %v5395_v26, 0.0 }
 0x3fb   : > { %2706 = vrot.lane.b32.xlu1 %v2518_v42, %s3973_s16  ;;  %v5623_v42 = vld [vmem:[#allocation11_spill] sm:$0xff] }
 0x3fc   : > { %v2619_v35 = vpop.permute.xlu0 %2618  ;;  %v3240_v50 = vsel %vm2778_vm2, %v5623_v42, 0.0 }
 0x3fd   : > { %v2810_v58 = vsel %vm2778_vm2, %v2619_v35, 0.0  ;;  %v5404_v11 = vpop.permute.xlu1 %2650  ;;  %v3241_v43 = vadd.f32 %v3240_v50, %v3239_v25 }
 0x3fe   : > { %v2811_v17 = vadd.f32 %v2810_v58, %v2809_v47  ;;  %v5624_v58 = vld [vmem:[#allocation13_spill] sm:$0xff]  ;;  %v2842_v14 = vsel %vm2778_vm2, %v5404_v11, 0.0 }
 0x3ff   : > { %2708 = vrot.lane.b32.xlu1 %v2519_v1, %s3973_s16  ;;  %v3242_v47 = vsel %vm2778_vm2, %v5624_v58, 0.0 }
 0x400   : > { %v2621_v27 = vpop.permute.xlu0 %2620  ;;  %v3243_v3 = vadd.f32 %v3242_v47, %v3241_v43 }
 0x401   : > { %v2812_v40 = vsel %vm2778_vm2, %v2621_v27, 0.0  ;;  %v5412_v41 = vpop.permute.xlu1 %2656 }
 0x402   : > { %v2813_v30 = vadd.f32 %v2812_v40, %v2811_v17  ;;  %v5625_v40 = vld [vmem:[#allocation15_spill] sm:$0xff]  ;;  %v2848_v11 = vsel %vm2778_vm2, %v5412_v41, 0.0 }
 0x403   : > { %2712 = vrot.lane.b32.xlu1 %v2521_v57, %s3973_s16  ;;  %v3244_v2 = vsel %vm2778_vm2, %v5625_v40, 0.0 }
 0x404   : > { %v2815_v24 = vadd.f32 %v2814_v33, %v2813_v30  ;;  %v2631_v63 = vpop.permute.xlu0 %2630  ;;  %v2836_v30 = vsel %vm2778_vm2, %v5387_v60, 0.0  ;;  %v3245_v51 = vadd.f32 %v3244_v2, %v3243_v3 }
 0x405   : > { %v2653_v5 = vpop.permute.xlu1 %2652  ;;  %v2822_v9 = vsel %vm2778_vm2, %v2631_v63, 0.0 }
 0x406   : > { %v2817_v39 = vadd.f32 %v2816_v4, %v2815_v24  ;;  %v2838_v24 = vsel %vm2778_vm2, %v5370_v8, 0.0  ;;  %v3246_v4 = vsel %vm2778_vm2, %v5626_v31, 0.0 }
 0x407   : > { %v3247_v60 = vadd.f32 %v3246_v4, %v3245_v51 }
 0x408   : > { %v2627_v22 = vpop.permute.xlu0 %2626 }
 0x409   : > { %v2818_v55 = vsel %vm2778_vm2, %v2627_v22, 0.0  ;;  %v5423_v52 = vpop.permute.xlu1 %2662 }
 0x40a   : > { %v2819_v10 = vadd.f32 %v2818_v55, %v2817_v39  ;;  %v2854_v42 = vsel %vm2778_vm2, %v5423_v52, 0.0 }
 0x40c   : > { %v2821_v21 = vadd.f32 %v2820_v37, %v2819_v10  ;;  %v5427_v12 = vpop.permute.xlu0 %3069  ;;  %v5627_v10 = vld [vmem:[#allocation22_spill] sm:$0xff]  ;;  %v2844_v37 = vsel %vm2778_vm2, %v2653_v5, 0.0 }
 0x40d   : > { %v2659_v46 = vpop.permute.xlu1 %2658  ;;  %v3248_v8 = vsel %vm2778_vm2, %v5627_v10, 0.0 }
 0x40e   : > { %v2823_v15 = vadd.f32 %v2822_v9, %v2821_v21  ;;  %v3249_v0 = vadd.f32 %v3248_v8, %v3247_v60  ;;  %v2850_v20 = vsel %vm2778_vm2, %v2659_v46, 0.0 }
 0x410   : > { %v2633_v49 = vpop.permute.xlu0 %2632 }
 0x411   : > { %v2824_v62 = vsel %vm2778_vm2, %v2633_v49, 0.0  ;;  %v5435_v29 = vpop.permute.xlu1 %2664 }
 0x412   : > { %v2825_v23 = vadd.f32 %v2824_v62, %v2823_v15  ;;  %v3250_v15 = vsel %vm2778_vm2, %v5628_v28, 0.0  ;;  %v2856_v46 = vsel %vm2778_vm2, %v5435_v29, 0.0  ;;  %v5632_v29 = vld [vmem:[#allocation36_spill] sm:$0xff] }
 0x413   : > { %v3251_v62 = vadd.f32 %v3250_v15, %v3249_v0 }
 0x414   : > { %v2827_v44 = vadd.f32 %v2826_v54, %v2825_v23  ;;  %v2637_v48 = vpop.permute.xlu0 %2636  ;;  %v5629_v54 = vld [vmem:[#allocation30_spill] sm:$0xff] }
 0x415   : > { %v2828_v7 = vsel %vm2778_vm2, %v2637_v48, 0.0  ;;  %v2661_v59 = vpop.permute.xlu1 %2660  ;;  %v3252_v25 = vsel %vm2778_vm2, %v5629_v54, 0.0 }
 0x416   : > { %v2829_v35 = vadd.f32 %v2828_v7, %v2827_v44  ;;  %v2852_v26 = vsel %vm2778_vm2, %v2661_v59, 0.0  ;;  %v3253_v50 = vadd.f32 %v3252_v25, %v3251_v62 }
 0x418   : > { %v2831_v1 = vadd.f32 %v2830_v13, %v2829_v35  ;;  %v2643_v61 = vpop.permute.xlu0 %2642  ;;  %v5630_v35 = vld [vmem:[#allocation32_spill] sm:$0xff] }
 0x419   : > { %v2671_v16 = vpop.permute.xlu1 %2670  ;;  %v2834_v27 = vsel %vm2778_vm2, %v2643_v61, 0.0  ;;  %v3254_v13 = vsel %vm2778_vm2, %v5630_v35, 0.0 }
 0x41a   : > { %v2833_v17 = vadd.f32 %v2832_v38, %v2831_v1  ;;  %v3255_v58 = vadd.f32 %v3254_v13, %v3253_v50  ;;  %v5631_v38 = vld [vmem:[#allocation34_spill] sm:$0xff] }
 0x41c   : > { %v2835_v45 = vadd.f32 %v2834_v27, %v2833_v17  ;;  %v5449_v57 = vpop.permute.xlu0 %3071  ;;  %v3256_v17 = vsel %vm2778_vm2, %v5631_v38, 0.0 }
 0x41d   : > { %v2667_v33 = vpop.permute.xlu1 %2666  ;;  %v3257_v40 = vadd.f32 %v3256_v17, %v3255_v58 }
 0x41e   : > { %v2837_v19 = vadd.f32 %v2836_v30, %v2835_v45  ;;  %v2858_v61 = vsel %vm2778_vm2, %v2667_v33, 0.0  ;;  %v2862_v45 = vsel %vm2778_vm2, %v2671_v16, 0.0  ;;  %v3262_v16 = vsel %vm2778_vm2, %v5449_v57, 0.0 }
 0x420   : > { %v2839_v63 = vadd.f32 %v2838_v24, %v2837_v19  ;;  %v3074_v36 = vpop.permute.xlu0 %3073  ;;  %v3258_v19 = vsel %vm2778_vm2, %v5632_v29, 0.0 }
 0x421   : > { %v2673_v39 = vpop.permute.xlu1 %2672  ;;  %v3259_v4 = vadd.f32 %v3258_v19, %v3257_v40  ;;  %v3264_v10 = vsel %vm2778_vm2, %v3074_v36, 0.0 }
 0x422   : > { %v2841_v22 = vadd.f32 %v2840_v6, %v2839_v63  ;;  %v2864_v33 = vsel %vm2778_vm2, %v2673_v39, 0.0  ;;  %v3260_v63 = vsel %vm2778_vm2, %v5427_v12, 0.0 }
 0x423   : > { %v3261_v60 = vadd.f32 %v3260_v63, %v3259_v4 }
 0x424   : > { %v2843_v53 = vadd.f32 %v2842_v14, %v2841_v22  ;;  %v3076_v55 = vpop.permute.xlu0 %3075 }
 0x425   : > { %v2669_v56 = vpop.permute.xlu1 %2668  ;;  %v3263_v8 = vadd.f32 %v3262_v16, %v3261_v60 }
 0x426   : > { %v2845_v21 = vadd.f32 %v2844_v37, %v2843_v53  ;;  %v2860_v52 = vsel %vm2778_vm2, %v2669_v56, 0.0  ;;  %v3266_v56 = vsel %vm2778_vm2, %v3076_v55, 0.0 }
 0x428   : > { %v2847_v18 = vadd.f32 %v2846_v34, %v2845_v21  ;;  %v3078_v9 = vpop.permute.xlu0 %3077  ;;  %v3265_v21 = vadd.f32 %v3264_v10, %v3263_v8 }
 0x429   : > { %v2679_v49 = vpop.permute.xlu1 %2678  ;;  %v3268_v0 = vsel %vm2778_vm2, %v3078_v9, 0.0 }
 0x42a   : > { %v2849_v32 = vadd.f32 %v2848_v11, %v2847_v18  ;;  %v2870_v34 = vsel %vm2778_vm2, %v2679_v49, 0.0  ;;  %v3267_v28 = vadd.f32 %v3266_v56, %v3265_v21 }
 0x42c   : > { %v2851_v5 = vadd.f32 %v2850_v20, %v2849_v32  ;;  %v3080_v23 = vpop.permute.xlu0 %3079  ;;  %v3269_v32 = vadd.f32 %v3268_v0, %v3267_v28 }
 0x42d   : > { %v2675_v44 = vpop.permute.xlu1 %2674  ;;  %v3270_v15 = vsel %vm2778_vm2, %v3080_v23, 0.0 }
 0x42e   : > { %v2853_v48 = vadd.f32 %v2852_v26, %v2851_v5  ;;  %v2866_v31 = vsel %vm2778_vm2, %v2675_v44, 0.0  ;;  %v3271_v5 = vadd.f32 %v3270_v15, %v3269_v32 }
 0x430   : > { %v2855_v7 = vadd.f32 %v2854_v42, %v2853_v48  ;;  %v3082_v41 = vpop.permute.xlu0 %3081 }
 0x431   : > { %v2681_v43 = vpop.permute.xlu1 %2680  ;;  %v3272_v20 = vsel %vm2778_vm2, %v3082_v41, 0.0 }
 0x432   : > { %v2857_v1 = vadd.f32 %v2856_v46, %v2855_v7  ;;  %v2872_v36 = vsel %vm2778_vm2, %v2681_v43, 0.0  ;;  %v3273_v49 = vadd.f32 %v3272_v20, %v3271_v5 }
 0x434   : > { %v2859_v59 = vadd.f32 %v2858_v61, %v2857_v1  ;;  %v3084_v47 = vpop.permute.xlu0 %3083 }
 0x435   : > { %v2677_v27 = vpop.permute.xlu1 %2676  ;;  %v3274_v54 = vsel %vm2778_vm2, %v3084_v47, 0.0 }
 0x436   : > { %v2861_v3 = vadd.f32 %v2860_v52, %v2859_v59  ;;  %v2868_v53 = vsel %vm2778_vm2, %v2677_v27, 0.0  ;;  %v3275_v48 = vadd.f32 %v3274_v54, %v3273_v49 }
 0x438   : > { %v2863_v2 = vadd.f32 %v2862_v45, %v2861_v3  ;;  %v3086_v30 = vpop.permute.xlu0 %3085 }
 0x439   : > { %v2687_v24 = vpop.permute.xlu1 %2686  ;;  %v3276_v26 = vsel %vm2778_vm2, %v3086_v30, 0.0 }
 0x43a   : > { %v2865_v51 = vadd.f32 %v2864_v33, %v2863_v2  ;;  %v3277_v41 = vadd.f32 %v3276_v26, %v3275_v48  ;;  %v2878_v58 = vsel %vm2778_vm2, %v2687_v24, 0.0 }
 0x43c   : > { %v2867_v6 = vadd.f32 %v2866_v31, %v2865_v51  ;;  %v3088_v22 = vpop.permute.xlu0 %3087 }
 0x43d   : > { %v2683_v14 = vpop.permute.xlu1 %2682  ;;  %v3278_v50 = vsel %vm2778_vm2, %v3088_v22, 0.0 }
 0x43e   : > { %v2869_v39 = vadd.f32 %v2868_v53, %v2867_v6  ;;  %v2874_v9 = vsel %vm2778_vm2, %v2683_v14, 0.0  ;;  %v3279_v46 = vadd.f32 %v3278_v50, %v3277_v41 }
 0x440   : > { %v3090_v37 = vpop.permute.xlu0 %3089  ;;  %v2871_v18 = vadd.f32 %v2870_v34, %v2869_v39 }
 0x441   : > { %v2689_v12 = vpop.permute.xlu1 %2688  ;;  %v3280_v35 = vsel %vm2778_vm2, %v3090_v37, 0.0 }
 0x442   : > { %v2873_v62 = vadd.f32 %v2872_v36, %v2871_v18  ;;  %v3281_v59 = vadd.f32 %v3280_v35, %v3279_v46  ;;  %v2880_v45 = vsel %vm2778_vm2, %v2689_v12, 0.0 }
 0x444   : > { %v3092_v57 = vpop.permute.xlu0 %3091  ;;  %v2875_v44 = vadd.f32 %v2874_v9, %v2873_v62 }
 0x445   : > { %v2685_v11 = vpop.permute.xlu1 %2684  ;;  %v3282_v1 = vsel %vm2778_vm2, %v3092_v57, 0.0 }
 0x446   : > { %v2876_v23 = vsel %vm2778_vm2, %v2685_v11, 0.0  ;;  %v3283_v17 = vadd.f32 %v3282_v1, %v3281_v59 }
 0x447   : > { %v2877_v13 = vadd.f32 %v2876_v23, %v2875_v44 }
 0x448   : > { %v3094_v55 = vpop.permute.xlu0 %3093 }
 0x449   : > { %v2695_v25 = vpop.permute.xlu1 %2694  ;;  %v2879_v47 = vadd.f32 %v2878_v58, %v2877_v13  ;;  %v3284_v38 = vsel %vm2778_vm2, %v3094_v55, 0.0 }
 0x44a   : > { %v3285_v40 = vadd.f32 %v3284_v38, %v3283_v17  ;;  %v2886_v10 = vsel %vm2778_vm2, %v2695_v25, 0.0 }
 0x44b   : > { %v2881_v30 = vadd.f32 %v2880_v45, %v2879_v47 }
 0x44c   : > { %v3096_v42 = vpop.permute.xlu0 %3095 }
 0x44d   : > { %v2691_v7 = vpop.permute.xlu1 %2690  ;;  %v3286_v27 = vsel %vm2778_vm2, %v3096_v42, 0.0 }
 0x44e   : > { %v2882_v2 = vsel %vm2778_vm2, %v2691_v7, 0.0  ;;  %v3287_v19 = vadd.f32 %v3286_v27, %v3285_v40 }
 0x44f   : > { %v2883_v51 = vadd.f32 %v2882_v2, %v2881_v30 }
 0x450   : > { %v3098_v43 = vpop.permute.xlu0 %3097 }
 0x451   : > { %v2697_v61 = vpop.permute.xlu1 %2696  ;;  %v3288_v29 = vsel %vm2778_vm2, %v3098_v43, 0.0 }
 0x452   : > { %v3289_v4 = vadd.f32 %v3288_v29, %v3287_v19  ;;  %v2888_v34 = vsel %vm2778_vm2, %v2697_v61, 0.0 }
 0x454   : > { %v3100_v52 = vpop.permute.xlu0 %3099 }
 0x455   : > { %v2693_v3 = vpop.permute.xlu1 %2692  ;;  %v3290_v63 = vsel %vm2778_vm2, %v3100_v52, 0.0 }
 0x456   : > { %v2884_v33 = vsel %vm2778_vm2, %v2693_v3, 0.0  ;;  %v3291_v16 = vadd.f32 %v3290_v63, %v3289_v4  ;;  %v3307_v3 = vlaneseq }
 0x457   : > { %v2885_v6 = vadd.f32 %v2884_v33, %v2883_v51 }
 0x458   : > { %v3102_v24 = vpop.permute.xlu0 %3101  ;;  %v3308_v45 = vand.u32 127, %v3307_v3 }
 0x459   : > { %v2703_v31 = vpop.permute.xlu1 %2702  ;;  %v3292_v22 = vsel %vm2778_vm2, %v3102_v24, 0.0  ;;  %v2887_v8 = vadd.f32 %v2886_v10, %v2885_v6 }
 0x45a   : > { %v3293_v39 = vadd.f32 %v3292_v22, %v3291_v16  ;;  %v2894_v20 = vsel %vm2778_vm2, %v2703_v31, 0.0  ;;  %vm3310_vm3 = vcmp.eq.s32.totalorder %v3308_v45, 1  ;;  %vm3309_vm4 = vcmp.eq.s32.totalorder %v3308_v45, 0 }
 0x45b   : > { %v2889_v28 = vadd.f32 %v2888_v34, %v2887_v8 }
 0x45c   : > { %v3104_v14 = vpop.permute.xlu0 %3103 }
 0x45d   : > { %v3294_v60 = vsel %vm2778_vm2, %v3104_v14, 0.0  ;;  %v2699_v53 = vpop.permute.xlu1 %2698 }
 0x45e   : > { %v3295_v37 = vadd.f32 %v3294_v60, %v3293_v39  ;;  %v2890_v0 = vsel %vm2778_vm2, %v2699_v53, 0.0 }
 0x45f   : > { %v2891_v57 = vadd.f32 %v2890_v0, %v2889_v28 }
 0x460   : > { %v3106_v56 = vpop.permute.xlu0 %3105 }
 0x461   : > { %v3296_v12 = vsel %vm2778_vm2, %v3106_v56, 0.0  ;;  %v2705_v21 = vpop.permute.xlu1 %2704 }
 0x462   : > { %v3297_v18 = vadd.f32 %v3296_v12, %v3295_v37  ;;  %v2896_v55 = vsel %vm2778_vm2, %v2705_v21, 0.0 }
 0x464   : > { %3298 = vadd.xlane.f32.xlu0 %v3297_v18 }
 0x465   : > { %v2701_v15 = vpop.permute.xlu1 %2700 }
 0x466   : > { %v2892_v11 = vsel %vm2778_vm2, %v2701_v15, 0.0 }
 0x467   : > { %v2893_v32 = vadd.f32 %v2892_v11, %v2891_v57 }
 0x469   : > { %v2711_v36 = vpop.permute.xlu1 %2710  ;;  %v2895_v62 = vadd.f32 %v2894_v20, %v2893_v32 }
 0x46a   : > { %v2902_v48 = vsel %vm2778_vm2, %v2711_v36, 0.0 }
 0x46b   : > { %v2897_v25 = vadd.f32 %v2896_v55, %v2895_v62 }
 0x46d   : > { %v2707_v5 = vpop.permute.xlu1 %2706 }
 0x46e   : > { %v2898_v54 = vsel %vm2778_vm2, %v2707_v5, 0.0 }
 0x46f   : > { %v2899_v49 = vadd.f32 %v2898_v54, %v2897_v25 }
 0x471   : > { %v2709_v9 = vpop.permute.xlu1 %2708 }
 0x472   : > { %v2900_v26 = vsel %vm2778_vm2, %v2709_v9, 0.0 }
 0x473   : > { %v2901_v44 = vadd.f32 %v2900_v26, %v2899_v49 }
 0x475   : > { %v2713_v23 = vpop.permute.xlu1 %2712  ;;  %v2903_v42 = vadd.f32 %v2902_v48, %v2901_v44 }
 0x476   : > { %v2904_v50 = vsel %vm2778_vm2, %v2713_v23, 0.0 }
 0x477   : > { %v2905_v7 = vadd.f32 %v2904_v50, %v2903_v42 }
 0x479   : > { %2906 = vadd.xlane.f32.xlu1 %v2905_v7 }
 0x4f1   : > { %v3299_v41 = vpop.xlane.xlu0 %3298 }
 0x4f2   : > { %v3300_v35 = vrot.slane %v3299_v41, 4 }
 0x4f4   : > { %v3301_v13 = vadd.f32 %v3300_v35, %v3299_v41 }
 0x4f6   : > { %v3302_v46 = vrot.slane %v3301_v13, 2 }
 0x4f8   : > { %v3303_v58 = vadd.f32 %v3302_v46, %v3301_v13 }
 0x4fa   : > { %v3304_v38 = vrot.slane %v3303_v58, 1 }
 0x4fc   : > { %v3305_v27 = vadd.f32 %v3304_v38, %v3303_v58 }
 0x506   : > { %v2907_v43 = vpop.xlane.xlu1 %2906 }
 0x507   : > { %v2908_v1 = vrot.slane %v2907_v43, 4 }
 0x509   : > { %v2909_v61 = vadd.f32 %v2908_v1, %v2907_v43 }
 0x50b   : > { %v2910_v59 = vrot.slane %v2909_v61, 2 }
 0x50d   : > { %v2911_v47 = vadd.f32 %v2910_v59, %v2909_v61 }
 0x50f   : > { %v2912_v17 = vrot.slane %v2911_v47, 1 }
 0x511   : > { %v2913_v52 = vadd.f32 %v2912_v17, %v2911_v47 }
 0x513   : > { %3869 = vpush %v2913_v52 }
 0x514   : > { %3871 = vpush %v3305_v27 }
 0x544   : > { %s3870_s13 = spop %3869 }
 0x545   : > { %v3313_v40 = vstv %s3870_s13  ;;  %s3872_s24 = spop %3871 }
 0x546   : > { %v3311_v2 = vstv %s3872_s24 }
 0x547   : > { %v3312_v30 = vsel %vm3310_vm3, %v3311_v2, 0.0 }
 0x548   : > { %v3314_v29 = vsel %vm3309_vm4, %v3313_v40, %v3312_v30 }
 0x549   : > { %3315 = vst [vmem:[%s366_s27] sm:$0x1] %v3314_v29 }
 0x54a PF: > { %s20_s30 = sadd.s32 1, %s3971_s30  }
 0x54b   : > { %p17_p5 = scmp.ge.s32.totalorder %s20_s30, 5  }
 0x54d   :  { %19 = sbr.rel (!%p17_p5) target bundleno = 1 (0x1), region = 97 }

</bundles_post_ra>
